<compile_context>
chip_gen: v7x
topology: tpu7x:2x2x1
jax: 0.10.0
libtpu: 0.0.40
codegen_flags: <defaults>
</compile_context>

<pallas_src>
import functools

import numpy as np
import jax
import jax.numpy as jnp
from jax.experimental import pallas as pl
from jax.experimental.pallas import tpu as pltpu


# --------------------------------------------------------------------------
# Kernel 1: fused prompt_conv (3 x ConvDropoutNormNonlin), lane-dense layout
# --------------------------------------------------------------------------
def _conv_geometry(D, H, W):
    """Per-tap flat offsets and validity masks for a 3x3x3 conv with padding=1."""
    S = D * H * W
    s = np.arange(S)
    d = s // (H * W)
    h = (s // W) % H
    w = s % W
    offs, masks = [], []
    for kd in range(3):
        for kh in range(3):
            for kw in range(3):
                od, oh, ow = kd - 1, kh - 1, kw - 1
                offs.append(int(od * H * W + oh * W + ow))
                valid = ((d + od >= 0) & (d + od < D) &
                         (h + oh >= 0) & (h + oh < H) &
                         (w + ow >= 0) & (w + ow < W))
                masks.append(valid.astype(np.float32))
    masks = np.stack(masks)[:, None, :]                      # (27, 1, S)
    return tuple(offs), jnp.asarray(masks)


def _prompt_conv_kernel(x_ref, masks_ref,
                        w0_ref, b0_ref, g0_ref, t0_ref,
                        w1_ref, b1_ref, g1_ref, t1_ref,
                        w2_ref, b2_ref, g2_ref, t2_ref,
                        out_ref, pad_ref, *, S, PADL, offs):
    # Lane-padded staging buffer; the borders stay zero (= the conv's zero padding).
    pad_ref[...] = jnp.zeros_like(pad_ref)

    def block(h, w_ref, b_ref, g_ref, beta_ref):
        # h: (cin, S)  lane-dense activation.   w_ref: (27, cout, cin) tap-major weights.
        cin = h.shape[0]
        cout = w_ref.shape[1]
        pad_ref[0:cin, PADL:PADL + S] = h
        hp = pad_ref[...]                                    # (max_cin, PADL + S + PADL)
        acc = jnp.zeros((cout, S), jnp.float32) + b_ref[...]  # conv bias
        for tap in range(27):
            off = offs[tap]
            sl = hp[0:cin, PADL + off:PADL + off + S] * masks_ref[tap]
            acc = acc + jnp.dot(w_ref[tap], sl, preferred_element_type=jnp.float32)
        # Dropout3d: identity in eval mode.
        # InstanceNorm3d: per-channel stats over the spatial axis, biased var, eps=1e-5.
        mu = jnp.mean(acc, axis=-1, keepdims=True)
        var = jnp.mean(jnp.square(acc - mu), axis=-1, keepdims=True)
        y = (acc - mu) * jax.lax.rsqrt(var + 1e-5) * g_ref[...] + beta_ref[...]
        # LeakyReLU(negative_slope=0.01)
        return jnp.where(y >= 0.0, y, 0.01 * y)

    h = x_ref[0]                                             # (cin0, S)
    h = block(h, w0_ref, b0_ref, g0_ref, t0_ref)
    h = block(h, w1_ref, b1_ref, g1_ref, t1_ref)
    h = block(h, w2_ref, b2_ref, g2_ref, t2_ref)
    out_ref[0] = h                                           # (1, S) lane-dense


def prompt_conv(x, conv_blocks):
    """Fused prompt_conv. x: (B, 1, D, H, W) f32 -> (B, D*H*W) f32."""
    B, cin0, D, H, W = x.shape
    S = D * H * W
    offs, masks = _conv_geometry(D, H, W)
    PADL = ((max(abs(min(offs)), abs(max(offs))) + 127) // 128) * 128
    x_flat = x.reshape(B, cin0, S).astype(jnp.float32)

    args = [x_flat, masks]
    in_specs = [pl.BlockSpec((1, cin0, S), lambda b: (b, 0, 0)),
                pl.BlockSpec((27, 1, S), lambda b: (0, 0, 0))]
    max_cin = cin0
    for (w, bias, gamma, beta) in conv_blocks:
        co, ci = int(w.shape[0]), int(w.shape[1])
        max_cin = max(max_cin, ci)
        # (O, I, kd, kh, kw) -> (27, O, I) tap-major, ready for per-tap MXU dots.
        w_taps = jnp.transpose(w, (2, 3, 4, 0, 1)).reshape(27, co, ci).astype(jnp.float32)
        args += [w_taps, bias.reshape(co, 1).astype(jnp.float32),
                 gamma.reshape(co, 1).astype(jnp.float32),
                 beta.reshape(co, 1).astype(jnp.float32)]
        in_specs += [pl.BlockSpec((27, co, ci), lambda b: (0, 0, 0)),
                     pl.BlockSpec((co, 1), lambda b: (0, 0)),
                     pl.BlockSpec((co, 1), lambda b: (0, 0)),
                     pl.BlockSpec((co, 1), lambda b: (0, 0))]

    out = pl.pallas_call(
        functools.partial(_prompt_conv_kernel, S=S, PADL=PADL, offs=offs),
        out_shape=jax.ShapeDtypeStruct((B, 1, S), jnp.float32),
        grid=(B,),
        in_specs=in_specs,
        out_specs=pl.BlockSpec((1, 1, S), lambda b: (b, 0, 0)),
        scratch_shapes=[pltpu.VMEM((max_cin, PADL + S + PADL), jnp.float32)],
        compiler_params=pltpu.CompilerParams(dimension_semantics=("parallel",)),
    )(*args)
    return out.reshape(B, S)


# --------------------------------------------------------------------------
# Kernel 2: task_mu_module MLP + mean over batch, gridded over component t
# --------------------------------------------------------------------------
def _mlp_mean_kernel(a1_ref, a2_ref, inp_ref, w1_ref, b1_ref,
                     w2_ref, b2_ref, w3_ref, b3_ref, out_ref):
    t = pl.program_id(0)
    x = inp_ref[0]                                           # (B, IP) bf16 (pre-concat, padded)
    h1 = jnp.dot(x, w1_ref[0], preferred_element_type=jnp.float32) + b1_ref[0]
    h1 = jnp.where(h1 >= 0.0, h1, a1_ref[t] * h1)            # PReLU (f32)
    h2 = jnp.dot(h1.astype(jnp.bfloat16), w2_ref[0],
                 preferred_element_type=jnp.float32) + b2_ref[0]
    h2 = jnp.where(h2 >= 0.0, h2, a2_ref[t] * h2)            # PReLU (f32)
    h3 = jnp.tanh(jnp.dot(h2.astype(jnp.bfloat16), w3_ref[0],
                          preferred_element_type=jnp.float32) + b3_ref[0])
    out_ref[0] = jnp.mean(h3, axis=0, keepdims=True)         # (1, FP) mean over batch


def run_mlps(inp_all, mlp):
    """inp_all: (T, B, IP) bf16. Returns (T, 1, FP) f32."""
    T, B, IP = inp_all.shape
    H1 = mlp["w1"].shape[2]
    H2 = mlp["w2"].shape[2]
    FP = mlp["w3"].shape[2]
    smem = pl.BlockSpec(memory_space=pltpu.MemorySpace.SMEM)
    i3 = lambda t: (t, 0, 0)

    return pl.pallas_call(
        _mlp_mean_kernel,
        out_shape=jax.ShapeDtypeStruct((T, 1, FP), jnp.float32),
        grid=(T,),
        in_specs=[smem, smem,
                  pl.BlockSpec((1, B, IP), i3),
                  pl.BlockSpec((1, IP, H1), i3),
                  pl.BlockSpec((1, 1, H1), i3),
                  pl.BlockSpec((1, H1, H2), i3),
                  pl.BlockSpec((1, 1, H2), i3),
                  pl.BlockSpec((1, H2, FP), i3),
                  pl.BlockSpec((1, 1, FP), i3)],
        out_specs=pl.BlockSpec((1, 1, FP), i3),
        compiler_params=pltpu.CompilerParams(dimension_semantics=("parallel",)),
    )(mlp["a1"], mlp["a2"], inp_all,
      mlp["w1"], mlp["b1"], mlp["w2"], mlp["b2"], mlp["w3"], mlp["b3"])


# --------------------------------------------------------------------------
# Parameter init (deterministic, shapes follow the module __init__)
# --------------------------------------------------------------------------
def init_params(key, feature_space_dim, tp_dim, num_components, gmm_comps):
    K = num_components * gmm_comps
    F = feature_space_dim
    MV = F * K + K
    in_dim = MV + 1 + tp_dim                     # [means | vars | task_id | x]
    IP = ((in_dim + 127) // 128) * 128           # lane-aligned first-layer input width
    FP = ((F + 127) // 128) * 128                # lane-aligned output width
    ks = jax.random.split(key, 8)

    # prompt_conv: 1 -> 3 -> 3 -> 1, kernel 3x3x3, InstanceNorm3d(affine), LeakyReLU
    bottleneck = 3
    chans = [(1, bottleneck), (bottleneck, bottleneck), (bottleneck, 1)]
    conv_blocks = []
    for i, (ci, co) in enumerate(chans):
        kw_, kb_ = jax.random.split(ks[i])
        w = jax.random.normal(kw_, (co, ci, 3, 3, 3), jnp.float32) / jnp.sqrt(ci * 27.0)
        b = jax.random.normal(kb_, (co,), jnp.float32) * 0.01
        gamma = jnp.ones((co,), jnp.float32)     # InstanceNorm3d default affine init
        beta = jnp.zeros((co,), jnp.float32)
        conv_blocks.append((w, b, gamma, beta))

    # task_mu_modules: K x [Linear(in_dim,1024)->PReLU->Linear(1024,512)->PReLU->Linear(512,F)->Tanh]
    def lin(k, fan_in, fan_out):
        kw_, kb_ = jax.random.split(k)
        w = jax.random.normal(kw_, (K, fan_in, fan_out), jnp.float32) / jnp.sqrt(float(fan_in))
        b = jax.random.normal(kb_, (K, 1, fan_out), jnp.float32) * 0.01
        return w, b

    w1, b1 = lin(ks[4], in_dim, 1024)
    w2, b2 = lin(ks[5], 1024, 512)
    w3, b3 = lin(ks[6], 512, F)

    # pad to lane-aligned widths; store matmul weights as bf16 (halves HBM traffic).
    w1p = jnp.zeros((K, IP, 1024), jnp.float32).at[:, :in_dim, :].set(w1).astype(jnp.bfloat16)
    w3p = jnp.zeros((K, 512, FP), jnp.float32).at[:, :, :F].set(w3).astype(jnp.bfloat16)
    b3p = jnp.zeros((K, 1, FP), jnp.float32).at[:, :, :F].set(b3)

    mlp = dict(
        w1=w1p, b1=b1, a1=jnp.full((K,), 0.25, jnp.float32),   # PReLU default init
        w2=w2.astype(jnp.bfloat16), b2=b2, a2=jnp.full((K,), 0.25, jnp.float32),
        w3=w3p, b3=b3p,
    )
    return dict(conv_blocks=conv_blocks, mlp=mlp)


# --------------------------------------------------------------------------
# Forward pass (mirrors DynamicDistributionModel_DP.forward)
# --------------------------------------------------------------------------
def dynamic_distribution_forward(x, means, vars_, tc_inds, params, *,
                                 momentum, gmm_comps, with_momentum_update=True):
    B = x.shape[0]
    F = means.shape[-1]

    # x = self.prompt_conv(x);  x = x.reshape(B, -1)
    x_flat = prompt_conv(x, params["conv_blocks"])            # (B, tp_dim) lane-dense

    # MLP input pieces (repeated over batch, identical for all tasks except task_id)
    input_means = jnp.tile(means.reshape(-1)[None, :], (B, 1))   # (B, K*F)
    input_vars = jnp.tile(vars_.reshape(1, -1), (B, 1))          # (B, K)
    base = jnp.concatenate([input_means, input_vars], axis=-1)   # (B, MV)

    mlp = params["mlp"]
    IP = mlp["w1"].shape[1]
    T = len(tc_inds)
    tids = jnp.asarray(tc_inds, jnp.float32).reshape(T, 1, 1)

    # Pre-concatenate [means | vars | task_id | x] per task, pad to the aligned width IP.
    inp = jnp.concatenate([
        jnp.tile(base[None], (T, 1, 1)),
        jnp.tile(tids, (1, B, 1)),
        jnp.tile(x_flat[None], (T, 1, 1)),
    ], axis=-1)                                                  # (T, B, in_dim)
    pad = IP - inp.shape[-1]
    if pad:
        inp = jnp.pad(inp, ((0, 0), (0, 0), (0, pad)))
    # emulate torch `.to(dtype=torch.float16)`; feed the MXU in bf16.
    inp = inp.astype(jnp.float16).astype(jnp.bfloat16)

    mu_hat_all = run_mlps(inp, mlp)[:, 0, :F]                    # (T, F)

    mu_hats, sigma_hats = [], []
    if with_momentum_update:
        for t, task_id in enumerate(tc_inds):
            tid_col = jnp.full((B, 1), int(task_id), dtype=jnp.int32)
            comp = t - gmm_comps * tid_col
            sel = means[tid_col, comp]                           # (B, 1, F) advanced indexing
            mu_hats.append((1.0 - momentum) * sel + momentum * mu_hat_all[t])
    return mu_hats, sigma_hats


# --------------------------------------------------------------------------
if __name__ == "__main__":
    key = jax.random.PRNGKey(0)
    k_param, k_x, k_mu, k_var = jax.random.split(key, 4)

    # small, module-consistent shapes
    B = 2
    D_, H_, W_ = 4, 8, 8                     # prompt volume -> tp_dim = 256
    feature_space_dim = 32
    num_components = 3
    gmm_comps = 1
    tp_dim = D_ * H_ * W_
    momentum = 0.9
    tc_inds = [0, 1, 2]

    params = init_params(k_param, feature_space_dim, tp_dim, num_components, gmm_comps)

    x = jax.random.normal(k_x, (B, 1, D_, H_, W_), jnp.float32)
    means = jax.random.normal(k_mu, (num_components, gmm_comps, feature_space_dim), jnp.float32)
    vars_ = jax.random.uniform(k_var, (num_components * gmm_comps,), jnp.float32,
                               minval=0.1, maxval=1.0)

    mu_hats, sigma_hats = dynamic_distribution_forward(
        x, means, vars_, tc_inds, params,
        momentum=momentum, gmm_comps=gmm_comps, with_momentum_update=True)

    jax.block_until_ready(mu_hats)
    assert len(mu_hats) == len(tc_inds)
    assert all(m.shape == (B, 1, feature_space_dim) for m in mu_hats)
    assert all(bool(jnp.all(jnp.isfinite(m))) for m in mu_hats)
    print("KERNEL_OK")
</pallas_src>

<mosaic_0001>
module attributes {stable_mosaic.version = 11 : i64} {
  func.func @_prompt_conv_kernel(%arg0: i32, %arg1: memref<1x1x256xf32, #tpu.memory_space<vmem>>, %arg2: memref<27x1x256xf32, #tpu.memory_space<vmem>>, %arg3: memref<27x3x1xf32, #tpu.memory_space<vmem>>, %arg4: memref<3x1xf32, #tpu.memory_space<vmem>>, %arg5: memref<3x1xf32, #tpu.memory_space<vmem>>, %arg6: memref<3x1xf32, #tpu.memory_space<vmem>>, %arg7: memref<27x3x3xf32, #tpu.memory_space<vmem>>, %arg8: memref<3x1xf32, #tpu.memory_space<vmem>>, %arg9: memref<3x1xf32, #tpu.memory_space<vmem>>, %arg10: memref<3x1xf32, #tpu.memory_space<vmem>>, %arg11: memref<27x1x3xf32, #tpu.memory_space<vmem>>, %arg12: memref<1x1xf32, #tpu.memory_space<vmem>>, %arg13: memref<1x1xf32, #tpu.memory_space<vmem>>, %arg14: memref<1x1xf32, #tpu.memory_space<vmem>>, %arg15: memref<1x1x256xf32, #tpu.memory_space<vmem>>, %arg16: memref<3x512xf32, #tpu.memory_space<vmem>>) attributes {dimension_semantics = [#tpu.dimension_semantics<parallel>], iteration_bounds = array<i64: 2>, scalar_prefetch = 0 : i64, scratch_operands = 1 : i64, tpu.core_type = #tpu.core_type<tc>, window_params = [{transform_indices = @transform_0, window_bounds = array<i64: 1, 1, 256>}, {pipeline_mode = #tpu.pipeline_mode<synchronous>, transform_indices = @transform_1, window_bounds = array<i64: 27, 1, 256>}, {pipeline_mode = #tpu.pipeline_mode<synchronous>, transform_indices = @transform_2, window_bounds = array<i64: 27, 3, 1>}, {pipeline_mode = #tpu.pipeline_mode<synchronous>, transform_indices = @transform_3, window_bounds = array<i64: 3, 1>}, {pipeline_mode = #tpu.pipeline_mode<synchronous>, transform_indices = @transform_4, window_bounds = array<i64: 3, 1>}, {pipeline_mode = #tpu.pipeline_mode<synchronous>, transform_indices = @transform_5, window_bounds = array<i64: 3, 1>}, {pipeline_mode = #tpu.pipeline_mode<synchronous>, transform_indices = @transform_6, window_bounds = array<i64: 27, 3, 3>}, {pipeline_mode = #tpu.pipeline_mode<synchronous>, transform_indices = @transform_7, window_bounds = array<i64: 3, 1>}, {pipeline_mode = #tpu.pipeline_mode<synchronous>, transform_indices = @transform_8, window_bounds = array<i64: 3, 1>}, {pipeline_mode = #tpu.pipeline_mode<synchronous>, transform_indices = @transform_9, window_bounds = array<i64: 3, 1>}, {pipeline_mode = #tpu.pipeline_mode<synchronous>, transform_indices = @transform_10, window_bounds = array<i64: 27, 1, 3>}, {pipeline_mode = #tpu.pipeline_mode<synchronous>, transform_indices = @transform_11, window_bounds = array<i64: 1, 1>}, {pipeline_mode = #tpu.pipeline_mode<synchronous>, transform_indices = @transform_12, window_bounds = array<i64: 1, 1>}, {pipeline_mode = #tpu.pipeline_mode<synchronous>, transform_indices = @transform_13, window_bounds = array<i64: 1, 1>}, {transform_indices = @transform_14, window_bounds = array<i64: 1, 1, 256>}]} {
    %cst = arith.constant 0.000000e+00 : f32
    %0 = vector.broadcast %cst : f32 to vector<3x512xf32>
    %c0 = arith.constant 0 : index
    %c0_0 = arith.constant 0 : index
    %1 = vector.load %arg16[%c0, %c0_0] : memref<3x512xf32, #tpu.memory_space<vmem>>, vector<3x512xf32>
    tpu.vector_store %arg16[%c0, %c0_0], %0 {strides = array<i32>} : memref<3x512xf32, #tpu.memory_space<vmem>>, vector<3x512xf32>,
    %c0_1 = arith.constant 0 : index
    %c0_2 = arith.constant 0 : index
    %c0_3 = arith.constant 0 : index
    %2 = vector.load %arg1[%c0_1, %c0_2, %c0_3] : memref<1x1x256xf32, #tpu.memory_space<vmem>>, vector<1x1x256xf32>
    %3 = vector.shape_cast %2 : vector<1x1x256xf32> to vector<1x256xf32>
    %c0_4 = arith.constant 0 : index
    %c128 = arith.constant 128 : index
    %4 = vector.load %arg16[%c0_4, %c128] : memref<3x512xf32, #tpu.memory_space<vmem>>, vector<1x256xf32>
    tpu.vector_store %arg16[%c0_4, %c128], %3 {strides = array<i32>} : memref<3x512xf32, #tpu.memory_space<vmem>>, vector<1x256xf32>,
    %c0_5 = arith.constant 0 : index
    %c0_6 = arith.constant 0 : index
    %5 = vector.load %arg16[%c0_5, %c0_6] : memref<3x512xf32, #tpu.memory_space<vmem>>, vector<3x512xf32>
    %cst_7 = arith.constant 0.000000e+00 : f32
    %6 = vector.broadcast %cst_7 : f32 to vector<3x256xf32>
    %c0_8 = arith.constant 0 : index
    %c0_9 = arith.constant 0 : index
    %7 = vector.load %arg4[%c0_8, %c0_9] : memref<3x1xf32, #tpu.memory_space<vmem>>, vector<3x1xf32>
    %8 = vector.broadcast %7 : vector<3x1xf32> to vector<3x256xf32>
    %9 = arith.addf %6, %8 : vector<3x256xf32>
    %10 = vector.extract_strided_slice %5 {offsets = [0, 55], sizes = [1, 256], strides = [1, 1]} : vector<3x512xf32> to vector<1x256xf32>
    %c0_10 = arith.constant 0 : index
    %c0_11 = arith.constant 0 : index
    %c0_12 = arith.constant 0 : index
    %11 = vector.load %arg2[%c0_10, %c0_11, %c0_12] : memref<27x1x256xf32, #tpu.memory_space<vmem>>, vector<1x1x256xf32>
    %12 = vector.shape_cast %11 : vector<1x1x256xf32> to vector<1x256xf32>
    %13 = arith.mulf %10, %12 : vector<1x256xf32>
    %c0_13 = arith.constant 0 : index
    %c0_14 = arith.constant 0 : index
    %c0_15 = arith.constant 0 : index
    %14 = vector.load %arg3[%c0_13, %c0_14, %c0_15] : memref<27x3x1xf32, #tpu.memory_space<vmem>>, vector<1x3x1xf32>
    %15 = vector.shape_cast %14 : vector<1x3x1xf32> to vector<3x1xf32>
    %cst_16 = arith.constant dense<0.000000e+00> : vector<3x256xf32>
    %16 = tpu.matmul %15, %13, %cst_16 {dimension_numbers = #tpu.dot_dimension_numbers<[1], [0], [0], [1], [0, 0, 1, 1], [], []>} : vector<3x1xf32>, vector<1x256xf32>, vector<3x256xf32> -> vector<3x256xf32>
    %17 = arith.addf %9, %16 : vector<3x256xf32>
    %18 = vector.extract_strided_slice %5 {offsets = [0, 56], sizes = [1, 256], strides = [1, 1]} : vector<3x512xf32> to vector<1x256xf32>
    %c1 = arith.constant 1 : index
    %c0_17 = arith.constant 0 : index
    %c0_18 = arith.constant 0 : index
    %19 = vector.load %arg2[%c1, %c0_17, %c0_18] : memref<27x1x256xf32, #tpu.memory_space<vmem>>, vector<1x1x256xf32>
    %20 = vector.shape_cast %19 : vector<1x1x256xf32> to vector<1x256xf32>
    %21 = arith.mulf %18, %20 : vector<1x256xf32>
    %c1_19 = arith.constant 1 : index
    %c0_20 = arith.constant 0 : index
    %c0_21 = arith.constant 0 : index
    %22 = vector.load %arg3[%c1_19, %c0_20, %c0_21] : memref<27x3x1xf32, #tpu.memory_space<vmem>>, vector<1x3x1xf32>
    %23 = vector.shape_cast %22 : vector<1x3x1xf32> to vector<3x1xf32>
    %cst_22 = arith.constant dense<0.000000e+00> : vector<3x256xf32>
    %24 = tpu.matmul %23, %21, %cst_22 {dimension_numbers = #tpu.dot_dimension_numbers<[1], [0], [0], [1], [0, 0, 1, 1], [], []>} : vector<3x1xf32>, vector<1x256xf32>, vector<3x256xf32> -> vector<3x256xf32>
    %25 = arith.addf %17, %24 : vector<3x256xf32>
    %26 = vector.extract_strided_slice %5 {offsets = [0, 57], sizes = [1, 256], strides = [1, 1]} : vector<3x512xf32> to vector<1x256xf32>
    %c2 = arith.constant 2 : index
    %c0_23 = arith.constant 0 : index
    %c0_24 = arith.constant 0 : index
    %27 = vector.load %arg2[%c2, %c0_23, %c0_24] : memref<27x1x256xf32, #tpu.memory_space<vmem>>, vector<1x1x256xf32>
    %28 = vector.shape_cast %27 : vector<1x1x256xf32> to vector<1x256xf32>
    %29 = arith.mulf %26, %28 : vector<1x256xf32>
    %c2_25 = arith.constant 2 : index
    %c0_26 = arith.constant 0 : index
    %c0_27 = arith.constant 0 : index
    %30 = vector.load %arg3[%c2_25, %c0_26, %c0_27] : memref<27x3x1xf32, #tpu.memory_space<vmem>>, vector<1x3x1xf32>
    %31 = vector.shape_cast %30 : vector<1x3x1xf32> to vector<3x1xf32>
    %cst_28 = arith.constant dense<0.000000e+00> : vector<3x256xf32>
    %32 = tpu.matmul %31, %29, %cst_28 {dimension_numbers = #tpu.dot_dimension_numbers<[1], [0], [0], [1], [0, 0, 1, 1], [], []>} : vector<3x1xf32>, vector<1x256xf32>, vector<3x256xf32> -> vector<3x256xf32>
    %33 = arith.addf %25, %32 : vector<3x256xf32>
    %34 = vector.extract_strided_slice %5 {offsets = [0, 63], sizes = [1, 256], strides = [1, 1]} : vector<3x512xf32> to vector<1x256xf32>
    %c3 = arith.constant 3 : index
    %c0_29 = arith.constant 0 : index
    %c0_30 = arith.constant 0 : index
    %35 = vector.load %arg2[%c3, %c0_29, %c0_30] : memref<27x1x256xf32, #tpu.memory_space<vmem>>, vector<1x1x256xf32>
    %36 = vector.shape_cast %35 : vector<1x1x256xf32> to vector<1x256xf32>
    %37 = arith.mulf %34, %36 : vector<1x256xf32>
    %c3_31 = arith.constant 3 : index
    %c0_32 = arith.constant 0 : index
    %c0_33 = arith.constant 0 : index
    %38 = vector.load %arg3[%c3_31, %c0_32, %c0_33] : memref<27x3x1xf32, #tpu.memory_space<vmem>>, vector<1x3x1xf32>
    %39 = vector.shape_cast %38 : vector<1x3x1xf32> to vector<3x1xf32>
    %cst_34 = arith.constant dense<0.000000e+00> : vector<3x256xf32>
    %40 = tpu.matmul %39, %37, %cst_34 {dimension_numbers = #tpu.dot_dimension_numbers<[1], [0], [0], [1], [0, 0, 1, 1], [], []>} : vector<3x1xf32>, vector<1x256xf32>, vector<3x256xf32> -> vector<3x256xf32>
    %41 = arith.addf %33, %40 : vector<3x256xf32>
    %42 = vector.extract_strided_slice %5 {offsets = [0, 64], sizes = [1, 256], strides = [1, 1]} : vector<3x512xf32> to vector<1x256xf32>
    %c4 = arith.constant 4 : index
    %c0_35 = arith.constant 0 : index
    %c0_36 = arith.constant 0 : index
    %43 = vector.load %arg2[%c4, %c0_35, %c0_36] : memref<27x1x256xf32, #tpu.memory_space<vmem>>, vector<1x1x256xf32>
    %44 = vector.shape_cast %43 : vector<1x1x256xf32> to vector<1x256xf32>
    %45 = arith.mulf %42, %44 : vector<1x256xf32>
    %c4_37 = arith.constant 4 : index
    %c0_38 = arith.constant 0 : index
    %c0_39 = arith.constant 0 : index
    %46 = vector.load %arg3[%c4_37, %c0_38, %c0_39] : memref<27x3x1xf32, #tpu.memory_space<vmem>>, vector<1x3x1xf32>
    %47 = vector.shape_cast %46 : vector<1x3x1xf32> to vector<3x1xf32>
    %cst_40 = arith.constant dense<0.000000e+00> : vector<3x256xf32>
    %48 = tpu.matmul %47, %45, %cst_40 {dimension_numbers = #tpu.dot_dimension_numbers<[1], [0], [0], [1], [0, 0, 1, 1], [], []>} : vector<3x1xf32>, vector<1x256xf32>, vector<3x256xf32> -> vector<3x256xf32>
    %49 = arith.addf %41, %48 : vector<3x256xf32>
    %50 = vector.extract_strided_slice %5 {offsets = [0, 65], sizes = [1, 256], strides = [1, 1]} : vector<3x512xf32> to vector<1x256xf32>
    %c5 = arith.constant 5 : index
    %c0_41 = arith.constant 0 : index
    %c0_42 = arith.constant 0 : index
    %51 = vector.load %arg2[%c5, %c0_41, %c0_42] : memref<27x1x256xf32, #tpu.memory_space<vmem>>, vector<1x1x256xf32>
    %52 = vector.shape_cast %51 : vector<1x1x256xf32> to vector<1x256xf32>
    %53 = arith.mulf %50, %52 : vector<1x256xf32>
    %c5_43 = arith.constant 5 : index
    %c0_44 = arith.constant 0 : index
    %c0_45 = arith.constant 0 : index
    %54 = vector.load %arg3[%c5_43, %c0_44, %c0_45] : memref<27x3x1xf32, #tpu.memory_space<vmem>>, vector<1x3x1xf32>
    %55 = vector.shape_cast %54 : vector<1x3x1xf32> to vector<3x1xf32>
    %cst_46 = arith.constant dense<0.000000e+00> : vector<3x256xf32>
    %56 = tpu.matmul %55, %53, %cst_46 {dimension_numbers = #tpu.dot_dimension_numbers<[1], [0], [0], [1], [0, 0, 1, 1], [], []>} : vector<3x1xf32>, vector<1x256xf32>, vector<3x256xf32> -> vector<3x256xf32>
    %57 = arith.addf %49, %56 : vector<3x256xf32>
    %58 = vector.extract_strided_slice %5 {offsets = [0, 71], sizes = [1, 256], strides = [1, 1]} : vector<3x512xf32> to vector<1x256xf32>
    %c6 = arith.constant 6 : index
    %c0_47 = arith.constant 0 : index
    %c0_48 = arith.constant 0 : index
    %59 = vector.load %arg2[%c6, %c0_47, %c0_48] : memref<27x1x256xf32, #tpu.memory_space<vmem>>, vector<1x1x256xf32>
    %60 = vector.shape_cast %59 : vector<1x1x256xf32> to vector<1x256xf32>
    %61 = arith.mulf %58, %60 : vector<1x256xf32>
    %c6_49 = arith.constant 6 : index
    %c0_50 = arith.constant 0 : index
    %c0_51 = arith.constant 0 : index
    %62 = vector.load %arg3[%c6_49, %c0_50, %c0_51] : memref<27x3x1xf32, #tpu.memory_space<vmem>>, vector<1x3x1xf32>
    %63 = vector.shape_cast %62 : vector<1x3x1xf32> to vector<3x1xf32>
    %cst_52 = arith.constant dense<0.000000e+00> : vector<3x256xf32>
    %64 = tpu.matmul %63, %61, %cst_52 {dimension_numbers = #tpu.dot_dimension_numbers<[1], [0], [0], [1], [0, 0, 1, 1], [], []>} : vector<3x1xf32>, vector<1x256xf32>, vector<3x256xf32> -> vector<3x256xf32>
    %65 = arith.addf %57, %64 : vector<3x256xf32>
    %66 = vector.extract_strided_slice %5 {offsets = [0, 72], sizes = [1, 256], strides = [1, 1]} : vector<3x512xf32> to vector<1x256xf32>
    %c7 = arith.constant 7 : index
    %c0_53 = arith.constant 0 : index
    %c0_54 = arith.constant 0 : index
    %67 = vector.load %arg2[%c7, %c0_53, %c0_54] : memref<27x1x256xf32, #tpu.memory_space<vmem>>, vector<1x1x256xf32>
    %68 = vector.shape_cast %67 : vector<1x1x256xf32> to vector<1x256xf32>
    %69 = arith.mulf %66, %68 : vector<1x256xf32>
    %c7_55 = arith.constant 7 : index
    %c0_56 = arith.constant 0 : index
    %c0_57 = arith.constant 0 : index
    %70 = vector.load %arg3[%c7_55, %c0_56, %c0_57] : memref<27x3x1xf32, #tpu.memory_space<vmem>>, vector<1x3x1xf32>
    %71 = vector.shape_cast %70 : vector<1x3x1xf32> to vector<3x1xf32>
    %cst_58 = arith.constant dense<0.000000e+00> : vector<3x256xf32>
    %72 = tpu.matmul %71, %69, %cst_58 {dimension_numbers = #tpu.dot_dimension_numbers<[1], [0], [0], [1], [0, 0, 1, 1], [], []>} : vector<3x1xf32>, vector<1x256xf32>, vector<3x256xf32> -> vector<3x256xf32>
    %73 = arith.addf %65, %72 : vector<3x256xf32>
    %74 = vector.extract_strided_slice %5 {offsets = [0, 73], sizes = [1, 256], strides = [1, 1]} : vector<3x512xf32> to vector<1x256xf32>
    %c8 = arith.constant 8 : index
    %c0_59 = arith.constant 0 : index
    %c0_60 = arith.constant 0 : index
    %75 = vector.load %arg2[%c8, %c0_59, %c0_60] : memref<27x1x256xf32, #tpu.memory_space<vmem>>, vector<1x1x256xf32>
    %76 = vector.shape_cast %75 : vector<1x1x256xf32> to vector<1x256xf32>
    %77 = arith.mulf %74, %76 : vector<1x256xf32>
    %c8_61 = arith.constant 8 : index
    %c0_62 = arith.constant 0 : index
    %c0_63 = arith.constant 0 : index
    %78 = vector.load %arg3[%c8_61, %c0_62, %c0_63] : memref<27x3x1xf32, #tpu.memory_space<vmem>>, vector<1x3x1xf32>
    %79 = vector.shape_cast %78 : vector<1x3x1xf32> to vector<3x1xf32>
    %cst_64 = arith.constant dense<0.000000e+00> : vector<3x256xf32>
    %80 = tpu.matmul %79, %77, %cst_64 {dimension_numbers = #tpu.dot_dimension_numbers<[1], [0], [0], [1], [0, 0, 1, 1], [], []>} : vector<3x1xf32>, vector<1x256xf32>, vector<3x256xf32> -> vector<3x256xf32>
    %81 = arith.addf %73, %80 : vector<3x256xf32>
    %82 = vector.extract_strided_slice %5 {offsets = [0, 119], sizes = [1, 256], strides = [1, 1]} : vector<3x512xf32> to vector<1x256xf32>
    %c9 = arith.constant 9 : index
    %c0_65 = arith.constant 0 : index
    %c0_66 = arith.constant 0 : index
    %83 = vector.load %arg2[%c9, %c0_65, %c0_66] : memref<27x1x256xf32, #tpu.memory_space<vmem>>, vector<1x1x256xf32>
    %84 = vector.shape_cast %83 : vector<1x1x256xf32> to vector<1x256xf32>
    %85 = arith.mulf %82, %84 : vector<1x256xf32>
    %c9_67 = arith.constant 9 : index
    %c0_68 = arith.constant 0 : index
    %c0_69 = arith.constant 0 : index
    %86 = vector.load %arg3[%c9_67, %c0_68, %c0_69] : memref<27x3x1xf32, #tpu.memory_space<vmem>>, vector<1x3x1xf32>
    %87 = vector.shape_cast %86 : vector<1x3x1xf32> to vector<3x1xf32>
    %cst_70 = arith.constant dense<0.000000e+00> : vector<3x256xf32>
    %88 = tpu.matmul %87, %85, %cst_70 {dimension_numbers = #tpu.dot_dimension_numbers<[1], [0], [0], [1], [0, 0, 1, 1], [], []>} : vector<3x1xf32>, vector<1x256xf32>, vector<3x256xf32> -> vector<3x256xf32>
    %89 = arith.addf %81, %88 : vector<3x256xf32>
    %90 = vector.extract_strided_slice %5 {offsets = [0, 120], sizes = [1, 256], strides = [1, 1]} : vector<3x512xf32> to vector<1x256xf32>
    %c10 = arith.constant 10 : index
    %c0_71 = arith.constant 0 : index
    %c0_72 = arith.constant 0 : index
    %91 = vector.load %arg2[%c10, %c0_71, %c0_72] : memref<27x1x256xf32, #tpu.memory_space<vmem>>, vector<1x1x256xf32>
    %92 = vector.shape_cast %91 : vector<1x1x256xf32> to vector<1x256xf32>
    %93 = arith.mulf %90, %92 : vector<1x256xf32>
    %c10_73 = arith.constant 10 : index
    %c0_74 = arith.constant 0 : index
    %c0_75 = arith.constant 0 : index
    %94 = vector.load %arg3[%c10_73, %c0_74, %c0_75] : memref<27x3x1xf32, #tpu.memory_space<vmem>>, vector<1x3x1xf32>
    %95 = vector.shape_cast %94 : vector<1x3x1xf32> to vector<3x1xf32>
    %cst_76 = arith.constant dense<0.000000e+00> : vector<3x256xf32>
    %96 = tpu.matmul %95, %93, %cst_76 {dimension_numbers = #tpu.dot_dimension_numbers<[1], [0], [0], [1], [0, 0, 1, 1], [], []>} : vector<3x1xf32>, vector<1x256xf32>, vector<3x256xf32> -> vector<3x256xf32>
    %97 = arith.addf %89, %96 : vector<3x256xf32>
    %98 = vector.extract_strided_slice %5 {offsets = [0, 121], sizes = [1, 256], strides = [1, 1]} : vector<3x512xf32> to vector<1x256xf32>
    %c11 = arith.constant 11 : index
    %c0_77 = arith.constant 0 : index
    %c0_78 = arith.constant 0 : index
    %99 = vector.load %arg2[%c11, %c0_77, %c0_78] : memref<27x1x256xf32, #tpu.memory_space<vmem>>, vector<1x1x256xf32>
    %100 = vector.shape_cast %99 : vector<1x1x256xf32> to vector<1x256xf32>
    %101 = arith.mulf %98, %100 : vector<1x256xf32>
    %c11_79 = arith.constant 11 : index
    %c0_80 = arith.constant 0 : index
    %c0_81 = arith.constant 0 : index
    %102 = vector.load %arg3[%c11_79, %c0_80, %c0_81] : memref<27x3x1xf32, #tpu.memory_space<vmem>>, vector<1x3x1xf32>
    %103 = vector.shape_cast %102 : vector<1x3x1xf32> to vector<3x1xf32>
    %cst_82 = arith.constant dense<0.000000e+00> : vector<3x256xf32>
    %104 = tpu.matmul %103, %101, %cst_82 {dimension_numbers = #tpu.dot_dimension_numbers<[1], [0], [0], [1], [0, 0, 1, 1], [], []>} : vector<3x1xf32>, vector<1x256xf32>, vector<3x256xf32> -> vector<3x256xf32>
    %105 = arith.addf %97, %104 : vector<3x256xf32>
    %106 = vector.extract_strided_slice %5 {offsets = [0, 127], sizes = [1, 256], strides = [1, 1]} : vector<3x512xf32> to vector<1x256xf32>
    %c12 = arith.constant 12 : index
    %c0_83 = arith.constant 0 : index
    %c0_84 = arith.constant 0 : index
    %107 = vector.load %arg2[%c12, %c0_83, %c0_84] : memref<27x1x256xf32, #tpu.memory_space<vmem>>, vector<1x1x256xf32>
    %108 = vector.shape_cast %107 : vector<1x1x256xf32> to vector<1x256xf32>
    %109 = arith.mulf %106, %108 : vector<1x256xf32>
    %c12_85 = arith.constant 12 : index
    %c0_86 = arith.constant 0 : index
    %c0_87 = arith.constant 0 : index
    %110 = vector.load %arg3[%c12_85, %c0_86, %c0_87] : memref<27x3x1xf32, #tpu.memory_space<vmem>>, vector<1x3x1xf32>
    %111 = vector.shape_cast %110 : vector<1x3x1xf32> to vector<3x1xf32>
    %cst_88 = arith.constant dense<0.000000e+00> : vector<3x256xf32>
    %112 = tpu.matmul %111, %109, %cst_88 {dimension_numbers = #tpu.dot_dimension_numbers<[1], [0], [0], [1], [0, 0, 1, 1], [], []>} : vector<3x1xf32>, vector<1x256xf32>, vector<3x256xf32> -> vector<3x256xf32>
    %113 = arith.addf %105, %112 : vector<3x256xf32>
    %114 = vector.extract_strided_slice %5 {offsets = [0, 128], sizes = [1, 256], strides = [1, 1]} : vector<3x512xf32> to vector<1x256xf32>
    %c13 = arith.constant 13 : index
    %c0_89 = arith.constant 0 : index
    %c0_90 = arith.constant 0 : index
    %115 = vector.load %arg2[%c13, %c0_89, %c0_90] : memref<27x1x256xf32, #tpu.memory_space<vmem>>, vector<1x1x256xf32>
    %116 = vector.shape_cast %115 : vector<1x1x256xf32> to vector<1x256xf32>
    %117 = arith.mulf %114, %116 : vector<1x256xf32>
    %c13_91 = arith.constant 13 : index
    %c0_92 = arith.constant 0 : index
    %c0_93 = arith.constant 0 : index
    %118 = vector.load %arg3[%c13_91, %c0_92, %c0_93] : memref<27x3x1xf32, #tpu.memory_space<vmem>>, vector<1x3x1xf32>
    %119 = vector.shape_cast %118 : vector<1x3x1xf32> to vector<3x1xf32>
    %cst_94 = arith.constant dense<0.000000e+00> : vector<3x256xf32>
    %120 = tpu.matmul %119, %117, %cst_94 {dimension_numbers = #tpu.dot_dimension_numbers<[1], [0], [0], [1], [0, 0, 1, 1], [], []>} : vector<3x1xf32>, vector<1x256xf32>, vector<3x256xf32> -> vector<3x256xf32>
    %121 = arith.addf %113, %120 : vector<3x256xf32>
    %122 = vector.extract_strided_slice %5 {offsets = [0, 129], sizes = [1, 256], strides = [1, 1]} : vector<3x512xf32> to vector<1x256xf32>
    %c14 = arith.constant 14 : index
    %c0_95 = arith.constant 0 : index
    %c0_96 = arith.constant 0 : index
    %123 = vector.load %arg2[%c14, %c0_95, %c0_96] : memref<27x1x256xf32, #tpu.memory_space<vmem>>, vector<1x1x256xf32>
    %124 = vector.shape_cast %123 : vector<1x1x256xf32> to vector<1x256xf32>
    %125 = arith.mulf %122, %124 : vector<1x256xf32>
    %c14_97 = arith.constant 14 : index
    %c0_98 = arith.constant 0 : index
    %c0_99 = arith.constant 0 : index
    %126 = vector.load %arg3[%c14_97, %c0_98, %c0_99] : memref<27x3x1xf32, #tpu.memory_space<vmem>>, vector<1x3x1xf32>
    %127 = vector.shape_cast %126 : vector<1x3x1xf32> to vector<3x1xf32>
    %cst_100 = arith.constant dense<0.000000e+00> : vector<3x256xf32>
    %128 = tpu.matmul %127, %125, %cst_100 {dimension_numbers = #tpu.dot_dimension_numbers<[1], [0], [0], [1], [0, 0, 1, 1], [], []>} : vector<3x1xf32>, vector<1x256xf32>, vector<3x256xf32> -> vector<3x256xf32>
    %129 = arith.addf %121, %128 : vector<3x256xf32>
    %130 = vector.extract_strided_slice %5 {offsets = [0, 135], sizes = [1, 256], strides = [1, 1]} : vector<3x512xf32> to vector<1x256xf32>
    %c15 = arith.constant 15 : index
    %c0_101 = arith.constant 0 : index
    %c0_102 = arith.constant 0 : index
    %131 = vector.load %arg2[%c15, %c0_101, %c0_102] : memref<27x1x256xf32, #tpu.memory_space<vmem>>, vector<1x1x256xf32>
    %132 = vector.shape_cast %131 : vector<1x1x256xf32> to vector<1x256xf32>
    %133 = arith.mulf %130, %132 : vector<1x256xf32>
    %c15_103 = arith.constant 15 : index
    %c0_104 = arith.constant 0 : index
    %c0_105 = arith.constant 0 : index
    %134 = vector.load %arg3[%c15_103, %c0_104, %c0_105] : memref<27x3x1xf32, #tpu.memory_space<vmem>>, vector<1x3x1xf32>
    %135 = vector.shape_cast %134 : vector<1x3x1xf32> to vector<3x1xf32>
    %cst_106 = arith.constant dense<0.000000e+00> : vector<3x256xf32>
    %136 = tpu.matmul %135, %133, %cst_106 {dimension_numbers = #tpu.dot_dimension_numbers<[1], [0], [0], [1], [0, 0, 1, 1], [], []>} : vector<3x1xf32>, vector<1x256xf32>, vector<3x256xf32> -> vector<3x256xf32>
    %137 = arith.addf %129, %136 : vector<3x256xf32>
    %138 = vector.extract_strided_slice %5 {offsets = [0, 136], sizes = [1, 256], strides = [1, 1]} : vector<3x512xf32> to vector<1x256xf32>
    %c16 = arith.constant 16 : index
    %c0_107 = arith.constant 0 : index
    %c0_108 = arith.constant 0 : index
    %139 = vector.load %arg2[%c16, %c0_107, %c0_108] : memref<27x1x256xf32, #tpu.memory_space<vmem>>, vector<1x1x256xf32>
    %140 = vector.shape_cast %139 : vector<1x1x256xf32> to vector<1x256xf32>
    %141 = arith.mulf %138, %140 : vector<1x256xf32>
    %c16_109 = arith.constant 16 : index
    %c0_110 = arith.constant 0 : index
    %c0_111 = arith.constant 0 : index
    %142 = vector.load %arg3[%c16_109, %c0_110, %c0_111] : memref<27x3x1xf32, #tpu.memory_space<vmem>>, vector<1x3x1xf32>
    %143 = vector.shape_cast %142 : vector<1x3x1xf32> to vector<3x1xf32>
    %cst_112 = arith.constant dense<0.000000e+00> : vector<3x256xf32>
    %144 = tpu.matmul %143, %141, %cst_112 {dimension_numbers = #tpu.dot_dimension_numbers<[1], [0], [0], [1], [0, 0, 1, 1], [], []>} : vector<3x1xf32>, vector<1x256xf32>, vector<3x256xf32> -> vector<3x256xf32>
    %145 = arith.addf %137, %144 : vector<3x256xf32>
    %146 = vector.extract_strided_slice %5 {offsets = [0, 137], sizes = [1, 256], strides = [1, 1]} : vector<3x512xf32> to vector<1x256xf32>
    %c17 = arith.constant 17 : index
    %c0_113 = arith.constant 0 : index
    %c0_114 = arith.constant 0 : index
    %147 = vector.load %arg2[%c17, %c0_113, %c0_114] : memref<27x1x256xf32, #tpu.memory_space<vmem>>, vector<1x1x256xf32>
    %148 = vector.shape_cast %147 : vector<1x1x256xf32> to vector<1x256xf32>
    %149 = arith.mulf %146, %148 : vector<1x256xf32>
    %c17_115 = arith.constant 17 : index
    %c0_116 = arith.constant 0 : index
    %c0_117 = arith.constant 0 : index
    %150 = vector.load %arg3[%c17_115, %c0_116, %c0_117] : memref<27x3x1xf32, #tpu.memory_space<vmem>>, vector<1x3x1xf32>
    %151 = vector.shape_cast %150 : vector<1x3x1xf32> to vector<3x1xf32>
    %cst_118 = arith.constant dense<0.000000e+00> : vector<3x256xf32>
    %152 = tpu.matmul %151, %149, %cst_118 {dimension_numbers = #tpu.dot_dimension_numbers<[1], [0], [0], [1], [0, 0, 1, 1], [], []>} : vector<3x1xf32>, vector<1x256xf32>, vector<3x256xf32> -> vector<3x256xf32>
    %153 = arith.addf %145, %152 : vector<3x256xf32>
    %154 = vector.extract_strided_slice %5 {offsets = [0, 183], sizes = [1, 256], strides = [1, 1]} : vector<3x512xf32> to vector<1x256xf32>
    %c18 = arith.constant 18 : index
    %c0_119 = arith.constant 0 : index
    %c0_120 = arith.constant 0 : index
    %155 = vector.load %arg2[%c18, %c0_119, %c0_120] : memref<27x1x256xf32, #tpu.memory_space<vmem>>, vector<1x1x256xf32>
    %156 = vector.shape_cast %155 : vector<1x1x256xf32> to vector<1x256xf32>
    %157 = arith.mulf %154, %156 : vector<1x256xf32>
    %c18_121 = arith.constant 18 : index
    %c0_122 = arith.constant 0 : index
    %c0_123 = arith.constant 0 : index
    %158 = vector.load %arg3[%c18_121, %c0_122, %c0_123] : memref<27x3x1xf32, #tpu.memory_space<vmem>>, vector<1x3x1xf32>
    %159 = vector.shape_cast %158 : vector<1x3x1xf32> to vector<3x1xf32>
    %cst_124 = arith.constant dense<0.000000e+00> : vector<3x256xf32>
    %160 = tpu.matmul %159, %157, %cst_124 {dimension_numbers = #tpu.dot_dimension_numbers<[1], [0], [0], [1], [0, 0, 1, 1], [], []>} : vector<3x1xf32>, vector<1x256xf32>, vector<3x256xf32> -> vector<3x256xf32>
    %161 = arith.addf %153, %160 : vector<3x256xf32>
    %162 = vector.extract_strided_slice %5 {offsets = [0, 184], sizes = [1, 256], strides = [1, 1]} : vector<3x512xf32> to vector<1x256xf32>
    %c19 = arith.constant 19 : index
    %c0_125 = arith.constant 0 : index
    %c0_126 = arith.constant 0 : index
    %163 = vector.load %arg2[%c19, %c0_125, %c0_126] : memref<27x1x256xf32, #tpu.memory_space<vmem>>, vector<1x1x256xf32>
    %164 = vector.shape_cast %163 : vector<1x1x256xf32> to vector<1x256xf32>
    %165 = arith.mulf %162, %164 : vector<1x256xf32>
    %c19_127 = arith.constant 19 : index
    %c0_128 = arith.constant 0 : index
    %c0_129 = arith.constant 0 : index
    %166 = vector.load %arg3[%c19_127, %c0_128, %c0_129] : memref<27x3x1xf32, #tpu.memory_space<vmem>>, vector<1x3x1xf32>
    %167 = vector.shape_cast %166 : vector<1x3x1xf32> to vector<3x1xf32>
    %cst_130 = arith.constant dense<0.000000e+00> : vector<3x256xf32>
    %168 = tpu.matmul %167, %165, %cst_130 {dimension_numbers = #tpu.dot_dimension_numbers<[1], [0], [0], [1], [0, 0, 1, 1], [], []>} : vector<3x1xf32>, vector<1x256xf32>, vector<3x256xf32> -> vector<3x256xf32>
    %169 = arith.addf %161, %168 : vector<3x256xf32>
    %170 = vector.extract_strided_slice %5 {offsets = [0, 185], sizes = [1, 256], strides = [1, 1]} : vector<3x512xf32> to vector<1x256xf32>
    %c20 = arith.constant 20 : index
    %c0_131 = arith.constant 0 : index
    %c0_132 = arith.constant 0 : index
    %171 = vector.load %arg2[%c20, %c0_131, %c0_132] : memref<27x1x256xf32, #tpu.memory_space<vmem>>, vector<1x1x256xf32>
    %172 = vector.shape_cast %171 : vector<1x1x256xf32> to vector<1x256xf32>
    %173 = arith.mulf %170, %172 : vector<1x256xf32>
    %c20_133 = arith.constant 20 : index
    %c0_134 = arith.constant 0 : index
    %c0_135 = arith.constant 0 : index
    %174 = vector.load %arg3[%c20_133, %c0_134, %c0_135] : memref<27x3x1xf32, #tpu.memory_space<vmem>>, vector<1x3x1xf32>
    %175 = vector.shape_cast %174 : vector<1x3x1xf32> to vector<3x1xf32>
    %cst_136 = arith.constant dense<0.000000e+00> : vector<3x256xf32>
    %176 = tpu.matmul %175, %173, %cst_136 {dimension_numbers = #tpu.dot_dimension_numbers<[1], [0], [0], [1], [0, 0, 1, 1], [], []>} : vector<3x1xf32>, vector<1x256xf32>, vector<3x256xf32> -> vector<3x256xf32>
    %177 = arith.addf %169, %176 : vector<3x256xf32>
    %178 = vector.extract_strided_slice %5 {offsets = [0, 191], sizes = [1, 256], strides = [1, 1]} : vector<3x512xf32> to vector<1x256xf32>
    %c21 = arith.constant 21 : index
    %c0_137 = arith.constant 0 : index
    %c0_138 = arith.constant 0 : index
    %179 = vector.load %arg2[%c21, %c0_137, %c0_138] : memref<27x1x256xf32, #tpu.memory_space<vmem>>, vector<1x1x256xf32>
    %180 = vector.shape_cast %179 : vector<1x1x256xf32> to vector<1x256xf32>
    %181 = arith.mulf %178, %180 : vector<1x256xf32>
    %c21_139 = arith.constant 21 : index
    %c0_140 = arith.constant 0 : index
    %c0_141 = arith.constant 0 : index
    %182 = vector.load %arg3[%c21_139, %c0_140, %c0_141] : memref<27x3x1xf32, #tpu.memory_space<vmem>>, vector<1x3x1xf32>
    %183 = vector.shape_cast %182 : vector<1x3x1xf32> to vector<3x1xf32>
    %cst_142 = arith.constant dense<0.000000e+00> : vector<3x256xf32>
    %184 = tpu.matmul %183, %181, %cst_142 {dimension_numbers = #tpu.dot_dimension_numbers<[1], [0], [0], [1], [0, 0, 1, 1], [], []>} : vector<3x1xf32>, vector<1x256xf32>, vector<3x256xf32> -> vector<3x256xf32>
    %185 = arith.addf %177, %184 : vector<3x256xf32>
    %186 = vector.extract_strided_slice %5 {offsets = [0, 192], sizes = [1, 256], strides = [1, 1]} : vector<3x512xf32> to vector<1x256xf32>
    %c22 = arith.constant 22 : index
    %c0_143 = arith.constant 0 : index
    %c0_144 = arith.constant 0 : index
    %187 = vector.load %arg2[%c22, %c0_143, %c0_144] : memref<27x1x256xf32, #tpu.memory_space<vmem>>, vector<1x1x256xf32>
    %188 = vector.shape_cast %187 : vector<1x1x256xf32> to vector<1x256xf32>
    %189 = arith.mulf %186, %188 : vector<1x256xf32>
    %c22_145 = arith.constant 22 : index
    %c0_146 = arith.constant 0 : index
    %c0_147 = arith.constant 0 : index
    %190 = vector.load %arg3[%c22_145, %c0_146, %c0_147] : memref<27x3x1xf32, #tpu.memory_space<vmem>>, vector<1x3x1xf32>
    %191 = vector.shape_cast %190 : vector<1x3x1xf32> to vector<3x1xf32>
    %cst_148 = arith.constant dense<0.000000e+00> : vector<3x256xf32>
    %192 = tpu.matmul %191, %189, %cst_148 {dimension_numbers = #tpu.dot_dimension_numbers<[1], [0], [0], [1], [0, 0, 1, 1], [], []>} : vector<3x1xf32>, vector<1x256xf32>, vector<3x256xf32> -> vector<3x256xf32>
    %193 = arith.addf %185, %192 : vector<3x256xf32>
    %194 = vector.extract_strided_slice %5 {offsets = [0, 193], sizes = [1, 256], strides = [1, 1]} : vector<3x512xf32> to vector<1x256xf32>
    %c23 = arith.constant 23 : index
    %c0_149 = arith.constant 0 : index
    %c0_150 = arith.constant 0 : index
    %195 = vector.load %arg2[%c23, %c0_149, %c0_150] : memref<27x1x256xf32, #tpu.memory_space<vmem>>, vector<1x1x256xf32>
    %196 = vector.shape_cast %195 : vector<1x1x256xf32> to vector<1x256xf32>
    %197 = arith.mulf %194, %196 : vector<1x256xf32>
    %c23_151 = arith.constant 23 : index
    %c0_152 = arith.constant 0 : index
    %c0_153 = arith.constant 0 : index
    %198 = vector.load %arg3[%c23_151, %c0_152, %c0_153] : memref<27x3x1xf32, #tpu.memory_space<vmem>>, vector<1x3x1xf32>
    %199 = vector.shape_cast %198 : vector<1x3x1xf32> to vector<3x1xf32>
    %cst_154 = arith.constant dense<0.000000e+00> : vector<3x256xf32>
    %200 = tpu.matmul %199, %197, %cst_154 {dimension_numbers = #tpu.dot_dimension_numbers<[1], [0], [0], [1], [0, 0, 1, 1], [], []>} : vector<3x1xf32>, vector<1x256xf32>, vector<3x256xf32> -> vector<3x256xf32>
    %201 = arith.addf %193, %200 : vector<3x256xf32>
    %202 = vector.extract_strided_slice %5 {offsets = [0, 199], sizes = [1, 256], strides = [1, 1]} : vector<3x512xf32> to vector<1x256xf32>
    %c24 = arith.constant 24 : index
    %c0_155 = arith.constant 0 : index
    %c0_156 = arith.constant 0 : index
    %203 = vector.load %arg2[%c24, %c0_155, %c0_156] : memref<27x1x256xf32, #tpu.memory_space<vmem>>, vector<1x1x256xf32>
    %204 = vector.shape_cast %203 : vector<1x1x256xf32> to vector<1x256xf32>
    %205 = arith.mulf %202, %204 : vector<1x256xf32>
    %c24_157 = arith.constant 24 : index
    %c0_158 = arith.constant 0 : index
    %c0_159 = arith.constant 0 : index
    %206 = vector.load %arg3[%c24_157, %c0_158, %c0_159] : memref<27x3x1xf32, #tpu.memory_space<vmem>>, vector<1x3x1xf32>
    %207 = vector.shape_cast %206 : vector<1x3x1xf32> to vector<3x1xf32>
    %cst_160 = arith.constant dense<0.000000e+00> : vector<3x256xf32>
    %208 = tpu.matmul %207, %205, %cst_160 {dimension_numbers = #tpu.dot_dimension_numbers<[1], [0], [0], [1], [0, 0, 1, 1], [], []>} : vector<3x1xf32>, vector<1x256xf32>, vector<3x256xf32> -> vector<3x256xf32>
    %209 = arith.addf %201, %208 : vector<3x256xf32>
    %210 = vector.extract_strided_slice %5 {offsets = [0, 200], sizes = [1, 256], strides = [1, 1]} : vector<3x512xf32> to vector<1x256xf32>
    %c25 = arith.constant 25 : index
    %c0_161 = arith.constant 0 : index
    %c0_162 = arith.constant 0 : index
    %211 = vector.load %arg2[%c25, %c0_161, %c0_162] : memref<27x1x256xf32, #tpu.memory_space<vmem>>, vector<1x1x256xf32>
    %212 = vector.shape_cast %211 : vector<1x1x256xf32> to vector<1x256xf32>
    %213 = arith.mulf %210, %212 : vector<1x256xf32>
    %c25_163 = arith.constant 25 : index
    %c0_164 = arith.constant 0 : index
    %c0_165 = arith.constant 0 : index
    %214 = vector.load %arg3[%c25_163, %c0_164, %c0_165] : memref<27x3x1xf32, #tpu.memory_space<vmem>>, vector<1x3x1xf32>
    %215 = vector.shape_cast %214 : vector<1x3x1xf32> to vector<3x1xf32>
    %cst_166 = arith.constant dense<0.000000e+00> : vector<3x256xf32>
    %216 = tpu.matmul %215, %213, %cst_166 {dimension_numbers = #tpu.dot_dimension_numbers<[1], [0], [0], [1], [0, 0, 1, 1], [], []>} : vector<3x1xf32>, vector<1x256xf32>, vector<3x256xf32> -> vector<3x256xf32>
    %217 = arith.addf %209, %216 : vector<3x256xf32>
    %218 = vector.extract_strided_slice %5 {offsets = [0, 201], sizes = [1, 256], strides = [1, 1]} : vector<3x512xf32> to vector<1x256xf32>
    %c26 = arith.constant 26 : index
    %c0_167 = arith.constant 0 : index
    %c0_168 = arith.constant 0 : index
    %219 = vector.load %arg2[%c26, %c0_167, %c0_168] : memref<27x1x256xf32, #tpu.memory_space<vmem>>, vector<1x1x256xf32>
    %220 = vector.shape_cast %219 : vector<1x1x256xf32> to vector<1x256xf32>
    %221 = arith.mulf %218, %220 : vector<1x256xf32>
    %c26_169 = arith.constant 26 : index
    %c0_170 = arith.constant 0 : index
    %c0_171 = arith.constant 0 : index
    %222 = vector.load %arg3[%c26_169, %c0_170, %c0_171] : memref<27x3x1xf32, #tpu.memory_space<vmem>>, vector<1x3x1xf32>
    %223 = vector.shape_cast %222 : vector<1x3x1xf32> to vector<3x1xf32>
    %cst_172 = arith.constant dense<0.000000e+00> : vector<3x256xf32>
    %224 = tpu.matmul %223, %221, %cst_172 {dimension_numbers = #tpu.dot_dimension_numbers<[1], [0], [0], [1], [0, 0, 1, 1], [], []>} : vector<3x1xf32>, vector<1x256xf32>, vector<3x256xf32> -> vector<3x256xf32>
    %225 = arith.addf %217, %224 : vector<3x256xf32>
    %cst_173 = arith.constant dense<0.000000e+00> : vector<3xf32>
    %226 = vector.multi_reduction <add>, %225, %cst_173 [1] : vector<3x256xf32> to vector<3xf32>
    %227 = vector.shape_cast %226 : vector<3xf32> to vector<3x1xf32>
    %cst_174 = arith.constant 2.560000e+02 : f32
    %228 = vector.broadcast %cst_174 : f32 to vector<3x1xf32>
    %229 = arith.divf %227, %228 : vector<3x1xf32>
    %230 = vector.broadcast %229 : vector<3x1xf32> to vector<3x256xf32>
    %231 = arith.subf %225, %230 : vector<3x256xf32>
    %232 = arith.mulf %231, %231 : vector<3x256xf32>
    %cst_175 = arith.constant dense<0.000000e+00> : vector<3xf32>
    %233 = vector.multi_reduction <add>, %232, %cst_175 [1] : vector<3x256xf32> to vector<3xf32>
    %234 = vector.shape_cast %233 : vector<3xf32> to vector<3x1xf32>
    %cst_176 = arith.constant 2.560000e+02 : f32
    %235 = vector.broadcast %cst_176 : f32 to vector<3x1xf32>
    %236 = arith.divf %234, %235 : vector<3x1xf32>
    %237 = vector.broadcast %229 : vector<3x1xf32> to vector<3x256xf32>
    %238 = arith.subf %225, %237 : vector<3x256xf32>
    %cst_177 = arith.constant 9.99999974E-6 : f32
    %239 = vector.broadcast %cst_177 : f32 to vector<3x1xf32>
    %240 = arith.addf %236, %239 : vector<3x1xf32>
    %241 = math.rsqrt %240 : vector<3x1xf32>
    %242 = vector.broadcast %241 : vector<3x1xf32> to vector<3x256xf32>
    %243 = arith.mulf %238, %242 : vector<3x256xf32>
    %c0_178 = arith.constant 0 : index
    %c0_179 = arith.constant 0 : index
    %244 = vector.load %arg5[%c0_178, %c0_179] : memref<3x1xf32, #tpu.memory_space<vmem>>, vector<3x1xf32>
    %245 = vector.broadcast %244 : vector<3x1xf32> to vector<3x256xf32>
    %246 = arith.mulf %243, %245 : vector<3x256xf32>
    %c0_180 = arith.constant 0 : index
    %c0_181 = arith.constant 0 : index
    %247 = vector.load %arg6[%c0_180, %c0_181] : memref<3x1xf32, #tpu.memory_space<vmem>>, vector<3x1xf32>
    %248 = vector.broadcast %247 : vector<3x1xf32> to vector<3x256xf32>
    %249 = arith.addf %246, %248 : vector<3x256xf32>
    %cst_182 = arith.constant 0.000000e+00 : f32
    %250 = vector.broadcast %cst_182 : f32 to vector<3x256xf32>
    %251 = arith.cmpf oge, %249, %250 : vector<3x256xf32>
    %cst_183 = arith.constant 0.00999999977 : f32
    %252 = vector.broadcast %cst_183 : f32 to vector<3x256xf32>
    %253 = arith.mulf %252, %249 : vector<3x256xf32>
    %254 = arith.select %251, %249, %253 : vector<3x256xi1>, vector<3x256xf32>
    %c0_184 = arith.constant 0 : index
    %c128_185 = arith.constant 128 : index
    %255 = vector.load %arg16[%c0_184, %c128_185] : memref<3x512xf32, #tpu.memory_space<vmem>>, vector<3x256xf32>
    tpu.vector_store %arg16[%c0_184, %c128_185], %254 {strides = array<i32>} : memref<3x512xf32, #tpu.memory_space<vmem>>, vector<3x256xf32>,
    %c0_186 = arith.constant 0 : index
    %c0_187 = arith.constant 0 : index
    %256 = vector.load %arg16[%c0_186, %c0_187] : memref<3x512xf32, #tpu.memory_space<vmem>>, vector<3x512xf32>
    %cst_188 = arith.constant 0.000000e+00 : f32
    %257 = vector.broadcast %cst_188 : f32 to vector<3x256xf32>
    %c0_189 = arith.constant 0 : index
    %c0_190 = arith.constant 0 : index
    %258 = vector.load %arg8[%c0_189, %c0_190] : memref<3x1xf32, #tpu.memory_space<vmem>>, vector<3x1xf32>
    %259 = vector.broadcast %258 : vector<3x1xf32> to vector<3x256xf32>
    %260 = arith.addf %257, %259 : vector<3x256xf32>
    %261 = vector.extract_strided_slice %256 {offsets = [0, 55], sizes = [3, 256], strides = [1, 1]} : vector<3x512xf32> to vector<3x256xf32>
    %c0_191 = arith.constant 0 : index
    %c0_192 = arith.constant 0 : index
    %c0_193 = arith.constant 0 : index
    %262 = vector.load %arg2[%c0_191, %c0_192, %c0_193] : memref<27x1x256xf32, #tpu.memory_space<vmem>>, vector<1x1x256xf32>
    %263 = vector.shape_cast %262 : vector<1x1x256xf32> to vector<1x256xf32>
    %264 = vector.broadcast %263 : vector<1x256xf32> to vector<3x256xf32>
    %265 = arith.mulf %261, %264 : vector<3x256xf32>
    %c0_194 = arith.constant 0 : index
    %c0_195 = arith.constant 0 : index
    %c0_196 = arith.constant 0 : index
    %266 = vector.load %arg7[%c0_194, %c0_195, %c0_196] : memref<27x3x3xf32, #tpu.memory_space<vmem>>, vector<1x3x3xf32>
    %267 = vector.shape_cast %266 : vector<1x3x3xf32> to vector<3x3xf32>
    %cst_197 = arith.constant dense<0.000000e+00> : vector<3x256xf32>
    %268 = tpu.matmul %267, %265, %cst_197 {dimension_numbers = #tpu.dot_dimension_numbers<[1], [0], [0], [1], [0, 0, 1, 1], [], []>} : vector<3x3xf32>, vector<3x256xf32>, vector<3x256xf32> -> vector<3x256xf32>
    %269 = arith.addf %260, %268 : vector<3x256xf32>
    %270 = vector.extract_strided_slice %256 {offsets = [0, 56], sizes = [3, 256], strides = [1, 1]} : vector<3x512xf32> to vector<3x256xf32>
    %c1_198 = arith.constant 1 : index
    %c0_199 = arith.constant 0 : index
    %c0_200 = arith.constant 0 : index
    %271 = vector.load %arg2[%c1_198, %c0_199, %c0_200] : memref<27x1x256xf32, #tpu.memory_space<vmem>>, vector<1x1x256xf32>
    %272 = vector.shape_cast %271 : vector<1x1x256xf32> to vector<1x256xf32>
    %273 = vector.broadcast %272 : vector<1x256xf32> to vector<3x256xf32>
    %274 = arith.mulf %270, %273 : vector<3x256xf32>
    %c1_201 = arith.constant 1 : index
    %c0_202 = arith.constant 0 : index
    %c0_203 = arith.constant 0 : index
    %275 = vector.load %arg7[%c1_201, %c0_202, %c0_203] : memref<27x3x3xf32, #tpu.memory_space<vmem>>, vector<1x3x3xf32>
    %276 = vector.shape_cast %275 : vector<1x3x3xf32> to vector<3x3xf32>
    %cst_204 = arith.constant dense<0.000000e+00> : vector<3x256xf32>
    %277 = tpu.matmul %276, %274, %cst_204 {dimension_numbers = #tpu.dot_dimension_numbers<[1], [0], [0], [1], [0, 0, 1, 1], [], []>} : vector<3x3xf32>, vector<3x256xf32>, vector<3x256xf32> -> vector<3x256xf32>
    %278 = arith.addf %269, %277 : vector<3x256xf32>
    %279 = vector.extract_strided_slice %256 {offsets = [0, 57], sizes = [3, 256], strides = [1, 1]} : vector<3x512xf32> to vector<3x256xf32>
    %c2_205 = arith.constant 2 : index
    %c0_206 = arith.constant 0 : index
    %c0_207 = arith.constant 0 : index
    %280 = vector.load %arg2[%c2_205, %c0_206, %c0_207] : memref<27x1x256xf32, #tpu.memory_space<vmem>>, vector<1x1x256xf32>
    %281 = vector.shape_cast %280 : vector<1x1x256xf32> to vector<1x256xf32>
    %282 = vector.broadcast %281 : vector<1x256xf32> to vector<3x256xf32>
    %283 = arith.mulf %279, %282 : vector<3x256xf32>
    %c2_208 = arith.constant 2 : index
    %c0_209 = arith.constant 0 : index
    %c0_210 = arith.constant 0 : index
    %284 = vector.load %arg7[%c2_208, %c0_209, %c0_210] : memref<27x3x3xf32, #tpu.memory_space<vmem>>, vector<1x3x3xf32>
    %285 = vector.shape_cast %284 : vector<1x3x3xf32> to vector<3x3xf32>
    %cst_211 = arith.constant dense<0.000000e+00> : vector<3x256xf32>
    %286 = tpu.matmul %285, %283, %cst_211 {dimension_numbers = #tpu.dot_dimension_numbers<[1], [0], [0], [1], [0, 0, 1, 1], [], []>} : vector<3x3xf32>, vector<3x256xf32>, vector<3x256xf32> -> vector<3x256xf32>
    %287 = arith.addf %278, %286 : vector<3x256xf32>
    %288 = vector.extract_strided_slice %256 {offsets = [0, 63], sizes = [3, 256], strides = [1, 1]} : vector<3x512xf32> to vector<3x256xf32>
    %c3_212 = arith.constant 3 : index
    %c0_213 = arith.constant 0 : index
    %c0_214 = arith.constant 0 : index
    %289 = vector.load %arg2[%c3_212, %c0_213, %c0_214] : memref<27x1x256xf32, #tpu.memory_space<vmem>>, vector<1x1x256xf32>
    %290 = vector.shape_cast %289 : vector<1x1x256xf32> to vector<1x256xf32>
    %291 = vector.broadcast %290 : vector<1x256xf32> to vector<3x256xf32>
    %292 = arith.mulf %288, %291 : vector<3x256xf32>
    %c3_215 = arith.constant 3 : index
    %c0_216 = arith.constant 0 : index
    %c0_217 = arith.constant 0 : index
    %293 = vector.load %arg7[%c3_215, %c0_216, %c0_217] : memref<27x3x3xf32, #tpu.memory_space<vmem>>, vector<1x3x3xf32>
    %294 = vector.shape_cast %293 : vector<1x3x3xf32> to vector<3x3xf32>
    %cst_218 = arith.constant dense<0.000000e+00> : vector<3x256xf32>
    %295 = tpu.matmul %294, %292, %cst_218 {dimension_numbers = #tpu.dot_dimension_numbers<[1], [0], [0], [1], [0, 0, 1, 1], [], []>} : vector<3x3xf32>, vector<3x256xf32>, vector<3x256xf32> -> vector<3x256xf32>
    %296 = arith.addf %287, %295 : vector<3x256xf32>
    %297 = vector.extract_strided_slice %256 {offsets = [0, 64], sizes = [3, 256], strides = [1, 1]} : vector<3x512xf32> to vector<3x256xf32>
    %c4_219 = arith.constant 4 : index
    %c0_220 = arith.constant 0 : index
    %c0_221 = arith.constant 0 : index
    %298 = vector.load %arg2[%c4_219, %c0_220, %c0_221] : memref<27x1x256xf32, #tpu.memory_space<vmem>>, vector<1x1x256xf32>
    %299 = vector.shape_cast %298 : vector<1x1x256xf32> to vector<1x256xf32>
    %300 = vector.broadcast %299 : vector<1x256xf32> to vector<3x256xf32>
    %301 = arith.mulf %297, %300 : vector<3x256xf32>
    %c4_222 = arith.constant 4 : index
    %c0_223 = arith.constant 0 : index
    %c0_224 = arith.constant 0 : index
    %302 = vector.load %arg7[%c4_222, %c0_223, %c0_224] : memref<27x3x3xf32, #tpu.memory_space<vmem>>, vector<1x3x3xf32>
    %303 = vector.shape_cast %302 : vector<1x3x3xf32> to vector<3x3xf32>
    %cst_225 = arith.constant dense<0.000000e+00> : vector<3x256xf32>
    %304 = tpu.matmul %303, %301, %cst_225 {dimension_numbers = #tpu.dot_dimension_numbers<[1], [0], [0], [1], [0, 0, 1, 1], [], []>} : vector<3x3xf32>, vector<3x256xf32>, vector<3x256xf32> -> vector<3x256xf32>
    %305 = arith.addf %296, %304 : vector<3x256xf32>
    %306 = vector.extract_strided_slice %256 {offsets = [0, 65], sizes = [3, 256], strides = [1, 1]} : vector<3x512xf32> to vector<3x256xf32>
    %c5_226 = arith.constant 5 : index
    %c0_227 = arith.constant 0 : index
    %c0_228 = arith.constant 0 : index
    %307 = vector.load %arg2[%c5_226, %c0_227, %c0_228] : memref<27x1x256xf32, #tpu.memory_space<vmem>>, vector<1x1x256xf32>
    %308 = vector.shape_cast %307 : vector<1x1x256xf32> to vector<1x256xf32>
    %309 = vector.broadcast %308 : vector<1x256xf32> to vector<3x256xf32>
    %310 = arith.mulf %306, %309 : vector<3x256xf32>
    %c5_229 = arith.constant 5 : index
    %c0_230 = arith.constant 0 : index
    %c0_231 = arith.constant 0 : index
    %311 = vector.load %arg7[%c5_229, %c0_230, %c0_231] : memref<27x3x3xf32, #tpu.memory_space<vmem>>, vector<1x3x3xf32>
    %312 = vector.shape_cast %311 : vector<1x3x3xf32> to vector<3x3xf32>
    %cst_232 = arith.constant dense<0.000000e+00> : vector<3x256xf32>
    %313 = tpu.matmul %312, %310, %cst_232 {dimension_numbers = #tpu.dot_dimension_numbers<[1], [0], [0], [1], [0, 0, 1, 1], [], []>} : vector<3x3xf32>, vector<3x256xf32>, vector<3x256xf32> -> vector<3x256xf32>
    %314 = arith.addf %305, %313 : vector<3x256xf32>
    %315 = vector.extract_strided_slice %256 {offsets = [0, 71], sizes = [3, 256], strides = [1, 1]} : vector<3x512xf32> to vector<3x256xf32>
    %c6_233 = arith.constant 6 : index
    %c0_234 = arith.constant 0 : index
    %c0_235 = arith.constant 0 : index
    %316 = vector.load %arg2[%c6_233, %c0_234, %c0_235] : memref<27x1x256xf32, #tpu.memory_space<vmem>>, vector<1x1x256xf32>
    %317 = vector.shape_cast %316 : vector<1x1x256xf32> to vector<1x256xf32>
    %318 = vector.broadcast %317 : vector<1x256xf32> to vector<3x256xf32>
    %319 = arith.mulf %315, %318 : vector<3x256xf32>
    %c6_236 = arith.constant 6 : index
    %c0_237 = arith.constant 0 : index
    %c0_238 = arith.constant 0 : index
    %320 = vector.load %arg7[%c6_236, %c0_237, %c0_238] : memref<27x3x3xf32, #tpu.memory_space<vmem>>, vector<1x3x3xf32>
    %321 = vector.shape_cast %320 : vector<1x3x3xf32> to vector<3x3xf32>
    %cst_239 = arith.constant dense<0.000000e+00> : vector<3x256xf32>
    %322 = tpu.matmul %321, %319, %cst_239 {dimension_numbers = #tpu.dot_dimension_numbers<[1], [0], [0], [1], [0, 0, 1, 1], [], []>} : vector<3x3xf32>, vector<3x256xf32>, vector<3x256xf32> -> vector<3x256xf32>
    %323 = arith.addf %314, %322 : vector<3x256xf32>
    %324 = vector.extract_strided_slice %256 {offsets = [0, 72], sizes = [3, 256], strides = [1, 1]} : vector<3x512xf32> to vector<3x256xf32>
    %c7_240 = arith.constant 7 : index
    %c0_241 = arith.constant 0 : index
    %c0_242 = arith.constant 0 : index
    %325 = vector.load %arg2[%c7_240, %c0_241, %c0_242] : memref<27x1x256xf32, #tpu.memory_space<vmem>>, vector<1x1x256xf32>
    %326 = vector.shape_cast %325 : vector<1x1x256xf32> to vector<1x256xf32>
    %327 = vector.broadcast %326 : vector<1x256xf32> to vector<3x256xf32>
    %328 = arith.mulf %324, %327 : vector<3x256xf32>
    %c7_243 = arith.constant 7 : index
    %c0_244 = arith.constant 0 : index
    %c0_245 = arith.constant 0 : index
    %329 = vector.load %arg7[%c7_243, %c0_244, %c0_245] : memref<27x3x3xf32, #tpu.memory_space<vmem>>, vector<1x3x3xf32>
    %330 = vector.shape_cast %329 : vector<1x3x3xf32> to vector<3x3xf32>
    %cst_246 = arith.constant dense<0.000000e+00> : vector<3x256xf32>
    %331 = tpu.matmul %330, %328, %cst_246 {dimension_numbers = #tpu.dot_dimension_numbers<[1], [0], [0], [1], [0, 0, 1, 1], [], []>} : vector<3x3xf32>, vector<3x256xf32>, vector<3x256xf32> -> vector<3x256xf32>
    %332 = arith.addf %323, %331 : vector<3x256xf32>
    %333 = vector.extract_strided_slice %256 {offsets = [0, 73], sizes = [3, 256], strides = [1, 1]} : vector<3x512xf32> to vector<3x256xf32>
    %c8_247 = arith.constant 8 : index
    %c0_248 = arith.constant 0 : index
    %c0_249 = arith.constant 0 : index
    %334 = vector.load %arg2[%c8_247, %c0_248, %c0_249] : memref<27x1x256xf32, #tpu.memory_space<vmem>>, vector<1x1x256xf32>
    %335 = vector.shape_cast %334 : vector<1x1x256xf32> to vector<1x256xf32>
    %336 = vector.broadcast %335 : vector<1x256xf32> to vector<3x256xf32>
    %337 = arith.mulf %333, %336 : vector<3x256xf32>
    %c8_250 = arith.constant 8 : index
    %c0_251 = arith.constant 0 : index
    %c0_252 = arith.constant 0 : index
    %338 = vector.load %arg7[%c8_250, %c0_251, %c0_252] : memref<27x3x3xf32, #tpu.memory_space<vmem>>, vector<1x3x3xf32>
    %339 = vector.shape_cast %338 : vector<1x3x3xf32> to vector<3x3xf32>
    %cst_253 = arith.constant dense<0.000000e+00> : vector<3x256xf32>
    %340 = tpu.matmul %339, %337, %cst_253 {dimension_numbers = #tpu.dot_dimension_numbers<[1], [0], [0], [1], [0, 0, 1, 1], [], []>} : vector<3x3xf32>, vector<3x256xf32>, vector<3x256xf32> -> vector<3x256xf32>
    %341 = arith.addf %332, %340 : vector<3x256xf32>
    %342 = vector.extract_strided_slice %256 {offsets = [0, 119], sizes = [3, 256], strides = [1, 1]} : vector<3x512xf32> to vector<3x256xf32>
    %c9_254 = arith.constant 9 : index
    %c0_255 = arith.constant 0 : index
    %c0_256 = arith.constant 0 : index
    %343 = vector.load %arg2[%c9_254, %c0_255, %c0_256] : memref<27x1x256xf32, #tpu.memory_space<vmem>>, vector<1x1x256xf32>
    %344 = vector.shape_cast %343 : vector<1x1x256xf32> to vector<1x256xf32>
    %345 = vector.broadcast %344 : vector<1x256xf32> to vector<3x256xf32>
    %346 = arith.mulf %342, %345 : vector<3x256xf32>
    %c9_257 = arith.constant 9 : index
    %c0_258 = arith.constant 0 : index
    %c0_259 = arith.constant 0 : index
    %347 = vector.load %arg7[%c9_257, %c0_258, %c0_259] : memref<27x3x3xf32, #tpu.memory_space<vmem>>, vector<1x3x3xf32>
    %348 = vector.shape_cast %347 : vector<1x3x3xf32> to vector<3x3xf32>
    %cst_260 = arith.constant dense<0.000000e+00> : vector<3x256xf32>
    %349 = tpu.matmul %348, %346, %cst_260 {dimension_numbers = #tpu.dot_dimension_numbers<[1], [0], [0], [1], [0, 0, 1, 1], [], []>} : vector<3x3xf32>, vector<3x256xf32>, vector<3x256xf32> -> vector<3x256xf32>
    %350 = arith.addf %341, %349 : vector<3x256xf32>
    %351 = vector.extract_strided_slice %256 {offsets = [0, 120], sizes = [3, 256], strides = [1, 1]} : vector<3x512xf32> to vector<3x256xf32>
    %c10_261 = arith.constant 10 : index
    %c0_262 = arith.constant 0 : index
    %c0_263 = arith.constant 0 : index
    %352 = vector.load %arg2[%c10_261, %c0_262, %c0_263] : memref<27x1x256xf32, #tpu.memory_space<vmem>>, vector<1x1x256xf32>
    %353 = vector.shape_cast %352 : vector<1x1x256xf32> to vector<1x256xf32>
    %354 = vector.broadcast %353 : vector<1x256xf32> to vector<3x256xf32>
    %355 = arith.mulf %351, %354 : vector<3x256xf32>
    %c10_264 = arith.constant 10 : index
    %c0_265 = arith.constant 0 : index
    %c0_266 = arith.constant 0 : index
    %356 = vector.load %arg7[%c10_264, %c0_265, %c0_266] : memref<27x3x3xf32, #tpu.memory_space<vmem>>, vector<1x3x3xf32>
    %357 = vector.shape_cast %356 : vector<1x3x3xf32> to vector<3x3xf32>
    %cst_267 = arith.constant dense<0.000000e+00> : vector<3x256xf32>
    %358 = tpu.matmul %357, %355, %cst_267 {dimension_numbers = #tpu.dot_dimension_numbers<[1], [0], [0], [1], [0, 0, 1, 1], [], []>} : vector<3x3xf32>, vector<3x256xf32>, vector<3x256xf32> -> vector<3x256xf32>
    %359 = arith.addf %350, %358 : vector<3x256xf32>
    %360 = vector.extract_strided_slice %256 {offsets = [0, 121], sizes = [3, 256], strides = [1, 1]} : vector<3x512xf32> to vector<3x256xf32>
    %c11_268 = arith.constant 11 : index
    %c0_269 = arith.constant 0 : index
    %c0_270 = arith.constant 0 : index
    %361 = vector.load %arg2[%c11_268, %c0_269, %c0_270] : memref<27x1x256xf32, #tpu.memory_space<vmem>>, vector<1x1x256xf32>
    %362 = vector.shape_cast %361 : vector<1x1x256xf32> to vector<1x256xf32>
    %363 = vector.broadcast %362 : vector<1x256xf32> to vector<3x256xf32>
    %364 = arith.mulf %360, %363 : vector<3x256xf32>
    %c11_271 = arith.constant 11 : index
    %c0_272 = arith.constant 0 : index
    %c0_273 = arith.constant 0 : index
    %365 = vector.load %arg7[%c11_271, %c0_272, %c0_273] : memref<27x3x3xf32, #tpu.memory_space<vmem>>, vector<1x3x3xf32>
    %366 = vector.shape_cast %365 : vector<1x3x3xf32> to vector<3x3xf32>
    %cst_274 = arith.constant dense<0.000000e+00> : vector<3x256xf32>
    %367 = tpu.matmul %366, %364, %cst_274 {dimension_numbers = #tpu.dot_dimension_numbers<[1], [0], [0], [1], [0, 0, 1, 1], [], []>} : vector<3x3xf32>, vector<3x256xf32>, vector<3x256xf32> -> vector<3x256xf32>
    %368 = arith.addf %359, %367 : vector<3x256xf32>
    %369 = vector.extract_strided_slice %256 {offsets = [0, 127], sizes = [3, 256], strides = [1, 1]} : vector<3x512xf32> to vector<3x256xf32>
    %c12_275 = arith.constant 12 : index
    %c0_276 = arith.constant 0 : index
    %c0_277 = arith.constant 0 : index
    %370 = vector.load %arg2[%c12_275, %c0_276, %c0_277] : memref<27x1x256xf32, #tpu.memory_space<vmem>>, vector<1x1x256xf32>
    %371 = vector.shape_cast %370 : vector<1x1x256xf32> to vector<1x256xf32>
    %372 = vector.broadcast %371 : vector<1x256xf32> to vector<3x256xf32>
    %373 = arith.mulf %369, %372 : vector<3x256xf32>
    %c12_278 = arith.constant 12 : index
    %c0_279 = arith.constant 0 : index
    %c0_280 = arith.constant 0 : index
    %374 = vector.load %arg7[%c12_278, %c0_279, %c0_280] : memref<27x3x3xf32, #tpu.memory_space<vmem>>, vector<1x3x3xf32>
    %375 = vector.shape_cast %374 : vector<1x3x3xf32> to vector<3x3xf32>
    %cst_281 = arith.constant dense<0.000000e+00> : vector<3x256xf32>
    %376 = tpu.matmul %375, %373, %cst_281 {dimension_numbers = #tpu.dot_dimension_numbers<[1], [0], [0], [1], [0, 0, 1, 1], [], []>} : vector<3x3xf32>, vector<3x256xf32>, vector<3x256xf32> -> vector<3x256xf32>
    %377 = arith.addf %368, %376 : vector<3x256xf32>
    %378 = vector.extract_strided_slice %256 {offsets = [0, 128], sizes = [3, 256], strides = [1, 1]} : vector<3x512xf32> to vector<3x256xf32>
    %c13_282 = arith.constant 13 : index
    %c0_283 = arith.constant 0 : index
    %c0_284 = arith.constant 0 : index
    %379 = vector.load %arg2[%c13_282, %c0_283, %c0_284] : memref<27x1x256xf32, #tpu.memory_space<vmem>>, vector<1x1x256xf32>
    %380 = vector.shape_cast %379 : vector<1x1x256xf32> to vector<1x256xf32>
    %381 = vector.broadcast %380 : vector<1x256xf32> to vector<3x256xf32>
    %382 = arith.mulf %378, %381 : vector<3x256xf32>
    %c13_285 = arith.constant 13 : index
    %c0_286 = arith.constant 0 : index
    %c0_287 = arith.constant 0 : index
    %383 = vector.load %arg7[%c13_285, %c0_286, %c0_287] : memref<27x3x3xf32, #tpu.memory_space<vmem>>, vector<1x3x3xf32>
    %384 = vector.shape_cast %383 : vector<1x3x3xf32> to vector<3x3xf32>
    %cst_288 = arith.constant dense<0.000000e+00> : vector<3x256xf32>
    %385 = tpu.matmul %384, %382, %cst_288 {dimension_numbers = #tpu.dot_dimension_numbers<[1], [0], [0], [1], [0, 0, 1, 1], [], []>} : vector<3x3xf32>, vector<3x256xf32>, vector<3x256xf32> -> vector<3x256xf32>
    %386 = arith.addf %377, %385 : vector<3x256xf32>
    %387 = vector.extract_strided_slice %256 {offsets = [0, 129], sizes = [3, 256], strides = [1, 1]} : vector<3x512xf32> to vector<3x256xf32>
    %c14_289 = arith.constant 14 : index
    %c0_290 = arith.constant 0 : index
    %c0_291 = arith.constant 0 : index
    %388 = vector.load %arg2[%c14_289, %c0_290, %c0_291] : memref<27x1x256xf32, #tpu.memory_space<vmem>>, vector<1x1x256xf32>
    %389 = vector.shape_cast %388 : vector<1x1x256xf32> to vector<1x256xf32>
    %390 = vector.broadcast %389 : vector<1x256xf32> to vector<3x256xf32>
    %391 = arith.mulf %387, %390 : vector<3x256xf32>
    %c14_292 = arith.constant 14 : index
    %c0_293 = arith.constant 0 : index
    %c0_294 = arith.constant 0 : index
    %392 = vector.load %arg7[%c14_292, %c0_293, %c0_294] : memref<27x3x3xf32, #tpu.memory_space<vmem>>, vector<1x3x3xf32>
    %393 = vector.shape_cast %392 : vector<1x3x3xf32> to vector<3x3xf32>
    %cst_295 = arith.constant dense<0.000000e+00> : vector<3x256xf32>
    %394 = tpu.matmul %393, %391, %cst_295 {dimension_numbers = #tpu.dot_dimension_numbers<[1], [0], [0], [1], [0, 0, 1, 1], [], []>} : vector<3x3xf32>, vector<3x256xf32>, vector<3x256xf32> -> vector<3x256xf32>
    %395 = arith.addf %386, %394 : vector<3x256xf32>
    %396 = vector.extract_strided_slice %256 {offsets = [0, 135], sizes = [3, 256], strides = [1, 1]} : vector<3x512xf32> to vector<3x256xf32>
    %c15_296 = arith.constant 15 : index
    %c0_297 = arith.constant 0 : index
    %c0_298 = arith.constant 0 : index
    %397 = vector.load %arg2[%c15_296, %c0_297, %c0_298] : memref<27x1x256xf32, #tpu.memory_space<vmem>>, vector<1x1x256xf32>
    %398 = vector.shape_cast %397 : vector<1x1x256xf32> to vector<1x256xf32>
    %399 = vector.broadcast %398 : vector<1x256xf32> to vector<3x256xf32>
    %400 = arith.mulf %396, %399 : vector<3x256xf32>
    %c15_299 = arith.constant 15 : index
    %c0_300 = arith.constant 0 : index
    %c0_301 = arith.constant 0 : index
    %401 = vector.load %arg7[%c15_299, %c0_300, %c0_301] : memref<27x3x3xf32, #tpu.memory_space<vmem>>, vector<1x3x3xf32>
    %402 = vector.shape_cast %401 : vector<1x3x3xf32> to vector<3x3xf32>
    %cst_302 = arith.constant dense<0.000000e+00> : vector<3x256xf32>
    %403 = tpu.matmul %402, %400, %cst_302 {dimension_numbers = #tpu.dot_dimension_numbers<[1], [0], [0], [1], [0, 0, 1, 1], [], []>} : vector<3x3xf32>, vector<3x256xf32>, vector<3x256xf32> -> vector<3x256xf32>
    %404 = arith.addf %395, %403 : vector<3x256xf32>
    %405 = vector.extract_strided_slice %256 {offsets = [0, 136], sizes = [3, 256], strides = [1, 1]} : vector<3x512xf32> to vector<3x256xf32>
    %c16_303 = arith.constant 16 : index
    %c0_304 = arith.constant 0 : index
    %c0_305 = arith.constant 0 : index
    %406 = vector.load %arg2[%c16_303, %c0_304, %c0_305] : memref<27x1x256xf32, #tpu.memory_space<vmem>>, vector<1x1x256xf32>
    %407 = vector.shape_cast %406 : vector<1x1x256xf32> to vector<1x256xf32>
    %408 = vector.broadcast %407 : vector<1x256xf32> to vector<3x256xf32>
    %409 = arith.mulf %405, %408 : vector<3x256xf32>
    %c16_306 = arith.constant 16 : index
    %c0_307 = arith.constant 0 : index
    %c0_308 = arith.constant 0 : index
    %410 = vector.load %arg7[%c16_306, %c0_307, %c0_308] : memref<27x3x3xf32, #tpu.memory_space<vmem>>, vector<1x3x3xf32>
    %411 = vector.shape_cast %410 : vector<1x3x3xf32> to vector<3x3xf32>
    %cst_309 = arith.constant dense<0.000000e+00> : vector<3x256xf32>
    %412 = tpu.matmul %411, %409, %cst_309 {dimension_numbers = #tpu.dot_dimension_numbers<[1], [0], [0], [1], [0, 0, 1, 1], [], []>} : vector<3x3xf32>, vector<3x256xf32>, vector<3x256xf32> -> vector<3x256xf32>
    %413 = arith.addf %404, %412 : vector<3x256xf32>
    %414 = vector.extract_strided_slice %256 {offsets = [0, 137], sizes = [3, 256], strides = [1, 1]} : vector<3x512xf32> to vector<3x256xf32>
    %c17_310 = arith.constant 17 : index
    %c0_311 = arith.constant 0 : index
    %c0_312 = arith.constant 0 : index
    %415 = vector.load %arg2[%c17_310, %c0_311, %c0_312] : memref<27x1x256xf32, #tpu.memory_space<vmem>>, vector<1x1x256xf32>
    %416 = vector.shape_cast %415 : vector<1x1x256xf32> to vector<1x256xf32>
    %417 = vector.broadcast %416 : vector<1x256xf32> to vector<3x256xf32>
    %418 = arith.mulf %414, %417 : vector<3x256xf32>
    %c17_313 = arith.constant 17 : index
    %c0_314 = arith.constant 0 : index
    %c0_315 = arith.constant 0 : index
    %419 = vector.load %arg7[%c17_313, %c0_314, %c0_315] : memref<27x3x3xf32, #tpu.memory_space<vmem>>, vector<1x3x3xf32>
    %420 = vector.shape_cast %419 : vector<1x3x3xf32> to vector<3x3xf32>
    %cst_316 = arith.constant dense<0.000000e+00> : vector<3x256xf32>
    %421 = tpu.matmul %420, %418, %cst_316 {dimension_numbers = #tpu.dot_dimension_numbers<[1], [0], [0], [1], [0, 0, 1, 1], [], []>} : vector<3x3xf32>, vector<3x256xf32>, vector<3x256xf32> -> vector<3x256xf32>
    %422 = arith.addf %413, %421 : vector<3x256xf32>
    %423 = vector.extract_strided_slice %256 {offsets = [0, 183], sizes = [3, 256], strides = [1, 1]} : vector<3x512xf32> to vector<3x256xf32>
    %c18_317 = arith.constant 18 : index
    %c0_318 = arith.constant 0 : index
    %c0_319 = arith.constant 0 : index
    %424 = vector.load %arg2[%c18_317, %c0_318, %c0_319] : memref<27x1x256xf32, #tpu.memory_space<vmem>>, vector<1x1x256xf32>
    %425 = vector.shape_cast %424 : vector<1x1x256xf32> to vector<1x256xf32>
    %426 = vector.broadcast %425 : vector<1x256xf32> to vector<3x256xf32>
    %427 = arith.mulf %423, %426 : vector<3x256xf32>
    %c18_320 = arith.constant 18 : index
    %c0_321 = arith.constant 0 : index
    %c0_322 = arith.constant 0 : index
    %428 = vector.load %arg7[%c18_320, %c0_321, %c0_322] : memref<27x3x3xf32, #tpu.memory_space<vmem>>, vector<1x3x3xf32>
    %429 = vector.shape_cast %428 : vector<1x3x3xf32> to vector<3x3xf32>
    %cst_323 = arith.constant dense<0.000000e+00> : vector<3x256xf32>
    %430 = tpu.matmul %429, %427, %cst_323 {dimension_numbers = #tpu.dot_dimension_numbers<[1], [0], [0], [1], [0, 0, 1, 1], [], []>} : vector<3x3xf32>, vector<3x256xf32>, vector<3x256xf32> -> vector<3x256xf32>
    %431 = arith.addf %422, %430 : vector<3x256xf32>
    %432 = vector.extract_strided_slice %256 {offsets = [0, 184], sizes = [3, 256], strides = [1, 1]} : vector<3x512xf32> to vector<3x256xf32>
    %c19_324 = arith.constant 19 : index
    %c0_325 = arith.constant 0 : index
    %c0_326 = arith.constant 0 : index
    %433 = vector.load %arg2[%c19_324, %c0_325, %c0_326] : memref<27x1x256xf32, #tpu.memory_space<vmem>>, vector<1x1x256xf32>
    %434 = vector.shape_cast %433 : vector<1x1x256xf32> to vector<1x256xf32>
    %435 = vector.broadcast %434 : vector<1x256xf32> to vector<3x256xf32>
    %436 = arith.mulf %432, %435 : vector<3x256xf32>
    %c19_327 = arith.constant 19 : index
    %c0_328 = arith.constant 0 : index
    %c0_329 = arith.constant 0 : index
    %437 = vector.load %arg7[%c19_327, %c0_328, %c0_329] : memref<27x3x3xf32, #tpu.memory_space<vmem>>, vector<1x3x3xf32>
    %438 = vector.shape_cast %437 : vector<1x3x3xf32> to vector<3x3xf32>
    %cst_330 = arith.constant dense<0.000000e+00> : vector<3x256xf32>
    %439 = tpu.matmul %438, %436, %cst_330 {dimension_numbers = #tpu.dot_dimension_numbers<[1], [0], [0], [1], [0, 0, 1, 1], [], []>} : vector<3x3xf32>, vector<3x256xf32>, vector<3x256xf32> -> vector<3x256xf32>
    %440 = arith.addf %431, %439 : vector<3x256xf32>
    %441 = vector.extract_strided_slice %256 {offsets = [0, 185], sizes = [3, 256], strides = [1, 1]} : vector<3x512xf32> to vector<3x256xf32>
    %c20_331 = arith.constant 20 : index
    %c0_332 = arith.constant 0 : index
    %c0_333 = arith.constant 0 : index
    %442 = vector.load %arg2[%c20_331, %c0_332, %c0_333] : memref<27x1x256xf32, #tpu.memory_space<vmem>>, vector<1x1x256xf32>
    %443 = vector.shape_cast %442 : vector<1x1x256xf32> to vector<1x256xf32>
    %444 = vector.broadcast %443 : vector<1x256xf32> to vector<3x256xf32>
    %445 = arith.mulf %441, %444 : vector<3x256xf32>
    %c20_334 = arith.constant 20 : index
    %c0_335 = arith.constant 0 : index
    %c0_336 = arith.constant 0 : index
    %446 = vector.load %arg7[%c20_334, %c0_335, %c0_336] : memref<27x3x3xf32, #tpu.memory_space<vmem>>, vector<1x3x3xf32>
    %447 = vector.shape_cast %446 : vector<1x3x3xf32> to vector<3x3xf32>
    %cst_337 = arith.constant dense<0.000000e+00> : vector<3x256xf32>
    %448 = tpu.matmul %447, %445, %cst_337 {dimension_numbers = #tpu.dot_dimension_numbers<[1], [0], [0], [1], [0, 0, 1, 1], [], []>} : vector<3x3xf32>, vector<3x256xf32>, vector<3x256xf32> -> vector<3x256xf32>
    %449 = arith.addf %440, %448 : vector<3x256xf32>
    %450 = vector.extract_strided_slice %256 {offsets = [0, 191], sizes = [3, 256], strides = [1, 1]} : vector<3x512xf32> to vector<3x256xf32>
    %c21_338 = arith.constant 21 : index
    %c0_339 = arith.constant 0 : index
    %c0_340 = arith.constant 0 : index
    %451 = vector.load %arg2[%c21_338, %c0_339, %c0_340] : memref<27x1x256xf32, #tpu.memory_space<vmem>>, vector<1x1x256xf32>
    %452 = vector.shape_cast %451 : vector<1x1x256xf32> to vector<1x256xf32>
    %453 = vector.broadcast %452 : vector<1x256xf32> to vector<3x256xf32>
    %454 = arith.mulf %450, %453 : vector<3x256xf32>
    %c21_341 = arith.constant 21 : index
    %c0_342 = arith.constant 0 : index
    %c0_343 = arith.constant 0 : index
    %455 = vector.load %arg7[%c21_341, %c0_342, %c0_343] : memref<27x3x3xf32, #tpu.memory_space<vmem>>, vector<1x3x3xf32>
    %456 = vector.shape_cast %455 : vector<1x3x3xf32> to vector<3x3xf32>
    %cst_344 = arith.constant dense<0.000000e+00> : vector<3x256xf32>
    %457 = tpu.matmul %456, %454, %cst_344 {dimension_numbers = #tpu.dot_dimension_numbers<[1], [0], [0], [1], [0, 0, 1, 1], [], []>} : vector<3x3xf32>, vector<3x256xf32>, vector<3x256xf32> -> vector<3x256xf32>
    %458 = arith.addf %449, %457 : vector<3x256xf32>
    %459 = vector.extract_strided_slice %256 {offsets = [0, 192], sizes = [3, 256], strides = [1, 1]} : vector<3x512xf32> to vector<3x256xf32>
    %c22_345 = arith.constant 22 : index
    %c0_346 = arith.constant 0 : index
    %c0_347 = arith.constant 0 : index
    %460 = vector.load %arg2[%c22_345, %c0_346, %c0_347] : memref<27x1x256xf32, #tpu.memory_space<vmem>>, vector<1x1x256xf32>
    %461 = vector.shape_cast %460 : vector<1x1x256xf32> to vector<1x256xf32>
    %462 = vector.broadcast %461 : vector<1x256xf32> to vector<3x256xf32>
    %463 = arith.mulf %459, %462 : vector<3x256xf32>
    %c22_348 = arith.constant 22 : index
    %c0_349 = arith.constant 0 : index
    %c0_350 = arith.constant 0 : index
    %464 = vector.load %arg7[%c22_348, %c0_349, %c0_350] : memref<27x3x3xf32, #tpu.memory_space<vmem>>, vector<1x3x3xf32>
    %465 = vector.shape_cast %464 : vector<1x3x3xf32> to vector<3x3xf32>
    %cst_351 = arith.constant dense<0.000000e+00> : vector<3x256xf32>
    %466 = tpu.matmul %465, %463, %cst_351 {dimension_numbers = #tpu.dot_dimension_numbers<[1], [0], [0], [1], [0, 0, 1, 1], [], []>} : vector<3x3xf32>, vector<3x256xf32>, vector<3x256xf32> -> vector<3x256xf32>
    %467 = arith.addf %458, %466 : vector<3x256xf32>
    %468 = vector.extract_strided_slice %256 {offsets = [0, 193], sizes = [3, 256], strides = [1, 1]} : vector<3x512xf32> to vector<3x256xf32>
    %c23_352 = arith.constant 23 : index
    %c0_353 = arith.constant 0 : index
    %c0_354 = arith.constant 0 : index
    %469 = vector.load %arg2[%c23_352, %c0_353, %c0_354] : memref<27x1x256xf32, #tpu.memory_space<vmem>>, vector<1x1x256xf32>
    %470 = vector.shape_cast %469 : vector<1x1x256xf32> to vector<1x256xf32>
    %471 = vector.broadcast %470 : vector<1x256xf32> to vector<3x256xf32>
    %472 = arith.mulf %468, %471 : vector<3x256xf32>
    %c23_355 = arith.constant 23 : index
    %c0_356 = arith.constant 0 : index
    %c0_357 = arith.constant 0 : index
    %473 = vector.load %arg7[%c23_355, %c0_356, %c0_357] : memref<27x3x3xf32, #tpu.memory_space<vmem>>, vector<1x3x3xf32>
    %474 = vector.shape_cast %473 : vector<1x3x3xf32> to vector<3x3xf32>
    %cst_358 = arith.constant dense<0.000000e+00> : vector<3x256xf32>
    %475 = tpu.matmul %474, %472, %cst_358 {dimension_numbers = #tpu.dot_dimension_numbers<[1], [0], [0], [1], [0, 0, 1, 1], [], []>} : vector<3x3xf32>, vector<3x256xf32>, vector<3x256xf32> -> vector<3x256xf32>
    %476 = arith.addf %467, %475 : vector<3x256xf32>
    %477 = vector.extract_strided_slice %256 {offsets = [0, 199], sizes = [3, 256], strides = [1, 1]} : vector<3x512xf32> to vector<3x256xf32>
    %c24_359 = arith.constant 24 : index
    %c0_360 = arith.constant 0 : index
    %c0_361 = arith.constant 0 : index
    %478 = vector.load %arg2[%c24_359, %c0_360, %c0_361] : memref<27x1x256xf32, #tpu.memory_space<vmem>>, vector<1x1x256xf32>
    %479 = vector.shape_cast %478 : vector<1x1x256xf32> to vector<1x256xf32>
    %480 = vector.broadcast %479 : vector<1x256xf32> to vector<3x256xf32>
    %481 = arith.mulf %477, %480 : vector<3x256xf32>
    %c24_362 = arith.constant 24 : index
    %c0_363 = arith.constant 0 : index
    %c0_364 = arith.constant 0 : index
    %482 = vector.load %arg7[%c24_362, %c0_363, %c0_364] : memref<27x3x3xf32, #tpu.memory_space<vmem>>, vector<1x3x3xf32>
    %483 = vector.shape_cast %482 : vector<1x3x3xf32> to vector<3x3xf32>
    %cst_365 = arith.constant dense<0.000000e+00> : vector<3x256xf32>
    %484 = tpu.matmul %483, %481, %cst_365 {dimension_numbers = #tpu.dot_dimension_numbers<[1], [0], [0], [1], [0, 0, 1, 1], [], []>} : vector<3x3xf32>, vector<3x256xf32>, vector<3x256xf32> -> vector<3x256xf32>
    %485 = arith.addf %476, %484 : vector<3x256xf32>
    %486 = vector.extract_strided_slice %256 {offsets = [0, 200], sizes = [3, 256], strides = [1, 1]} : vector<3x512xf32> to vector<3x256xf32>
    %c25_366 = arith.constant 25 : index
    %c0_367 = arith.constant 0 : index
    %c0_368 = arith.constant 0 : index
    %487 = vector.load %arg2[%c25_366, %c0_367, %c0_368] : memref<27x1x256xf32, #tpu.memory_space<vmem>>, vector<1x1x256xf32>
    %488 = vector.shape_cast %487 : vector<1x1x256xf32> to vector<1x256xf32>
    %489 = vector.broadcast %488 : vector<1x256xf32> to vector<3x256xf32>
    %490 = arith.mulf %486, %489 : vector<3x256xf32>
    %c25_369 = arith.constant 25 : index
    %c0_370 = arith.constant 0 : index
    %c0_371 = arith.constant 0 : index
    %491 = vector.load %arg7[%c25_369, %c0_370, %c0_371] : memref<27x3x3xf32, #tpu.memory_space<vmem>>, vector<1x3x3xf32>
    %492 = vector.shape_cast %491 : vector<1x3x3xf32> to vector<3x3xf32>
    %cst_372 = arith.constant dense<0.000000e+00> : vector<3x256xf32>
    %493 = tpu.matmul %492, %490, %cst_372 {dimension_numbers = #tpu.dot_dimension_numbers<[1], [0], [0], [1], [0, 0, 1, 1], [], []>} : vector<3x3xf32>, vector<3x256xf32>, vector<3x256xf32> -> vector<3x256xf32>
    %494 = arith.addf %485, %493 : vector<3x256xf32>
    %495 = vector.extract_strided_slice %256 {offsets = [0, 201], sizes = [3, 256], strides = [1, 1]} : vector<3x512xf32> to vector<3x256xf32>
    %c26_373 = arith.constant 26 : index
    %c0_374 = arith.constant 0 : index
    %c0_375 = arith.constant 0 : index
    %496 = vector.load %arg2[%c26_373, %c0_374, %c0_375] : memref<27x1x256xf32, #tpu.memory_space<vmem>>, vector<1x1x256xf32>
    %497 = vector.shape_cast %496 : vector<1x1x256xf32> to vector<1x256xf32>
    %498 = vector.broadcast %497 : vector<1x256xf32> to vector<3x256xf32>
    %499 = arith.mulf %495, %498 : vector<3x256xf32>
    %c26_376 = arith.constant 26 : index
    %c0_377 = arith.constant 0 : index
    %c0_378 = arith.constant 0 : index
    %500 = vector.load %arg7[%c26_376, %c0_377, %c0_378] : memref<27x3x3xf32, #tpu.memory_space<vmem>>, vector<1x3x3xf32>
    %501 = vector.shape_cast %500 : vector<1x3x3xf32> to vector<3x3xf32>
    %cst_379 = arith.constant dense<0.000000e+00> : vector<3x256xf32>
    %502 = tpu.matmul %501, %499, %cst_379 {dimension_numbers = #tpu.dot_dimension_numbers<[1], [0], [0], [1], [0, 0, 1, 1], [], []>} : vector<3x3xf32>, vector<3x256xf32>, vector<3x256xf32> -> vector<3x256xf32>
    %503 = arith.addf %494, %502 : vector<3x256xf32>
    %cst_380 = arith.constant dense<0.000000e+00> : vector<3xf32>
    %504 = vector.multi_reduction <add>, %503, %cst_380 [1] : vector<3x256xf32> to vector<3xf32>
    %505 = vector.shape_cast %504 : vector<3xf32> to vector<3x1xf32>
    %cst_381 = arith.constant 2.560000e+02 : f32
    %506 = vector.broadcast %cst_381 : f32 to vector<3x1xf32>
    %507 = arith.divf %505, %506 : vector<3x1xf32>
    %508 = vector.broadcast %507 : vector<3x1xf32> to vector<3x256xf32>
    %509 = arith.subf %503, %508 : vector<3x256xf32>
    %510 = arith.mulf %509, %509 : vector<3x256xf32>
    %cst_382 = arith.constant dense<0.000000e+00> : vector<3xf32>
    %511 = vector.multi_reduction <add>, %510, %cst_382 [1] : vector<3x256xf32> to vector<3xf32>
    %512 = vector.shape_cast %511 : vector<3xf32> to vector<3x1xf32>
    %cst_383 = arith.constant 2.560000e+02 : f32
    %513 = vector.broadcast %cst_383 : f32 to vector<3x1xf32>
    %514 = arith.divf %512, %513 : vector<3x1xf32>
    %515 = vector.broadcast %507 : vector<3x1xf32> to vector<3x256xf32>
    %516 = arith.subf %503, %515 : vector<3x256xf32>
    %cst_384 = arith.constant 9.99999974E-6 : f32
    %517 = vector.broadcast %cst_384 : f32 to vector<3x1xf32>
    %518 = arith.addf %514, %517 : vector<3x1xf32>
    %519 = math.rsqrt %518 : vector<3x1xf32>
    %520 = vector.broadcast %519 : vector<3x1xf32> to vector<3x256xf32>
    %521 = arith.mulf %516, %520 : vector<3x256xf32>
    %c0_385 = arith.constant 0 : index
    %c0_386 = arith.constant 0 : index
    %522 = vector.load %arg9[%c0_385, %c0_386] : memref<3x1xf32, #tpu.memory_space<vmem>>, vector<3x1xf32>
    %523 = vector.broadcast %522 : vector<3x1xf32> to vector<3x256xf32>
    %524 = arith.mulf %521, %523 : vector<3x256xf32>
    %c0_387 = arith.constant 0 : index
    %c0_388 = arith.constant 0 : index
    %525 = vector.load %arg10[%c0_387, %c0_388] : memref<3x1xf32, #tpu.memory_space<vmem>>, vector<3x1xf32>
    %526 = vector.broadcast %525 : vector<3x1xf32> to vector<3x256xf32>
    %527 = arith.addf %524, %526 : vector<3x256xf32>
    %cst_389 = arith.constant 0.000000e+00 : f32
    %528 = vector.broadcast %cst_389 : f32 to vector<3x256xf32>
    %529 = arith.cmpf oge, %527, %528 : vector<3x256xf32>
    %cst_390 = arith.constant 0.00999999977 : f32
    %530 = vector.broadcast %cst_390 : f32 to vector<3x256xf32>
    %531 = arith.mulf %530, %527 : vector<3x256xf32>
    %532 = arith.select %529, %527, %531 : vector<3x256xi1>, vector<3x256xf32>
    %c0_391 = arith.constant 0 : index
    %c128_392 = arith.constant 128 : index
    %533 = vector.load %arg16[%c0_391, %c128_392] : memref<3x512xf32, #tpu.memory_space<vmem>>, vector<3x256xf32>
    tpu.vector_store %arg16[%c0_391, %c128_392], %532 {strides = array<i32>} : memref<3x512xf32, #tpu.memory_space<vmem>>, vector<3x256xf32>,
    %c0_393 = arith.constant 0 : index
    %c0_394 = arith.constant 0 : index
    %534 = vector.load %arg16[%c0_393, %c0_394] : memref<3x512xf32, #tpu.memory_space<vmem>>, vector<3x512xf32>
    %cst_395 = arith.constant 0.000000e+00 : f32
    %535 = vector.broadcast %cst_395 : f32 to vector<1x256xf32>
    %c0_396 = arith.constant 0 : index
    %c0_397 = arith.constant 0 : index
    %536 = vector.load %arg12[%c0_396, %c0_397] : memref<1x1xf32, #tpu.memory_space<vmem>>, vector<1x1xf32>
    %537 = vector.broadcast %536 : vector<1x1xf32> to vector<1x256xf32>
    %538 = arith.addf %535, %537 : vector<1x256xf32>
    %539 = vector.extract_strided_slice %534 {offsets = [0, 55], sizes = [3, 256], strides = [1, 1]} : vector<3x512xf32> to vector<3x256xf32>
    %c0_398 = arith.constant 0 : index
    %c0_399 = arith.constant 0 : index
    %c0_400 = arith.constant 0 : index
    %540 = vector.load %arg2[%c0_398, %c0_399, %c0_400] : memref<27x1x256xf32, #tpu.memory_space<vmem>>, vector<1x1x256xf32>
    %541 = vector.shape_cast %540 : vector<1x1x256xf32> to vector<1x256xf32>
    %542 = vector.broadcast %541 : vector<1x256xf32> to vector<3x256xf32>
    %543 = arith.mulf %539, %542 : vector<3x256xf32>
    %c0_401 = arith.constant 0 : index
    %c0_402 = arith.constant 0 : index
    %c0_403 = arith.constant 0 : index
    %544 = vector.load %arg11[%c0_401, %c0_402, %c0_403] : memref<27x1x3xf32, #tpu.memory_space<vmem>>, vector<1x1x3xf32>
    %545 = vector.shape_cast %544 : vector<1x1x3xf32> to vector<1x3xf32>
    %cst_404 = arith.constant dense<0.000000e+00> : vector<1x256xf32>
    %546 = tpu.matmul %545, %543, %cst_404 {dimension_numbers = #tpu.dot_dimension_numbers<[1], [0], [0], [1], [0, 0, 1, 1], [], []>} : vector<1x3xf32>, vector<3x256xf32>, vector<1x256xf32> -> vector<1x256xf32>
    %547 = arith.addf %538, %546 : vector<1x256xf32>
    %548 = vector.extract_strided_slice %534 {offsets = [0, 56], sizes = [3, 256], strides = [1, 1]} : vector<3x512xf32> to vector<3x256xf32>
    %c1_405 = arith.constant 1 : index
    %c0_406 = arith.constant 0 : index
    %c0_407 = arith.constant 0 : index
    %549 = vector.load %arg2[%c1_405, %c0_406, %c0_407] : memref<27x1x256xf32, #tpu.memory_space<vmem>>, vector<1x1x256xf32>
    %550 = vector.shape_cast %549 : vector<1x1x256xf32> to vector<1x256xf32>
    %551 = vector.broadcast %550 : vector<1x256xf32> to vector<3x256xf32>
    %552 = arith.mulf %548, %551 : vector<3x256xf32>
    %c1_408 = arith.constant 1 : index
    %c0_409 = arith.constant 0 : index
    %c0_410 = arith.constant 0 : index
    %553 = vector.load %arg11[%c1_408, %c0_409, %c0_410] : memref<27x1x3xf32, #tpu.memory_space<vmem>>, vector<1x1x3xf32>
    %554 = vector.shape_cast %553 : vector<1x1x3xf32> to vector<1x3xf32>
    %cst_411 = arith.constant dense<0.000000e+00> : vector<1x256xf32>
    %555 = tpu.matmul %554, %552, %cst_411 {dimension_numbers = #tpu.dot_dimension_numbers<[1], [0], [0], [1], [0, 0, 1, 1], [], []>} : vector<1x3xf32>, vector<3x256xf32>, vector<1x256xf32> -> vector<1x256xf32>
    %556 = arith.addf %547, %555 : vector<1x256xf32>
    %557 = vector.extract_strided_slice %534 {offsets = [0, 57], sizes = [3, 256], strides = [1, 1]} : vector<3x512xf32> to vector<3x256xf32>
    %c2_412 = arith.constant 2 : index
    %c0_413 = arith.constant 0 : index
    %c0_414 = arith.constant 0 : index
    %558 = vector.load %arg2[%c2_412, %c0_413, %c0_414] : memref<27x1x256xf32, #tpu.memory_space<vmem>>, vector<1x1x256xf32>
    %559 = vector.shape_cast %558 : vector<1x1x256xf32> to vector<1x256xf32>
    %560 = vector.broadcast %559 : vector<1x256xf32> to vector<3x256xf32>
    %561 = arith.mulf %557, %560 : vector<3x256xf32>
    %c2_415 = arith.constant 2 : index
    %c0_416 = arith.constant 0 : index
    %c0_417 = arith.constant 0 : index
    %562 = vector.load %arg11[%c2_415, %c0_416, %c0_417] : memref<27x1x3xf32, #tpu.memory_space<vmem>>, vector<1x1x3xf32>
    %563 = vector.shape_cast %562 : vector<1x1x3xf32> to vector<1x3xf32>
    %cst_418 = arith.constant dense<0.000000e+00> : vector<1x256xf32>
    %564 = tpu.matmul %563, %561, %cst_418 {dimension_numbers = #tpu.dot_dimension_numbers<[1], [0], [0], [1], [0, 0, 1, 1], [], []>} : vector<1x3xf32>, vector<3x256xf32>, vector<1x256xf32> -> vector<1x256xf32>
    %565 = arith.addf %556, %564 : vector<1x256xf32>
    %566 = vector.extract_strided_slice %534 {offsets = [0, 63], sizes = [3, 256], strides = [1, 1]} : vector<3x512xf32> to vector<3x256xf32>
    %c3_419 = arith.constant 3 : index
    %c0_420 = arith.constant 0 : index
    %c0_421 = arith.constant 0 : index
    %567 = vector.load %arg2[%c3_419, %c0_420, %c0_421] : memref<27x1x256xf32, #tpu.memory_space<vmem>>, vector<1x1x256xf32>
    %568 = vector.shape_cast %567 : vector<1x1x256xf32> to vector<1x256xf32>
    %569 = vector.broadcast %568 : vector<1x256xf32> to vector<3x256xf32>
    %570 = arith.mulf %566, %569 : vector<3x256xf32>
    %c3_422 = arith.constant 3 : index
    %c0_423 = arith.constant 0 : index
    %c0_424 = arith.constant 0 : index
    %571 = vector.load %arg11[%c3_422, %c0_423, %c0_424] : memref<27x1x3xf32, #tpu.memory_space<vmem>>, vector<1x1x3xf32>
    %572 = vector.shape_cast %571 : vector<1x1x3xf32> to vector<1x3xf32>
    %cst_425 = arith.constant dense<0.000000e+00> : vector<1x256xf32>
    %573 = tpu.matmul %572, %570, %cst_425 {dimension_numbers = #tpu.dot_dimension_numbers<[1], [0], [0], [1], [0, 0, 1, 1], [], []>} : vector<1x3xf32>, vector<3x256xf32>, vector<1x256xf32> -> vector<1x256xf32>
    %574 = arith.addf %565, %573 : vector<1x256xf32>
    %575 = vector.extract_strided_slice %534 {offsets = [0, 64], sizes = [3, 256], strides = [1, 1]} : vector<3x512xf32> to vector<3x256xf32>
    %c4_426 = arith.constant 4 : index
    %c0_427 = arith.constant 0 : index
    %c0_428 = arith.constant 0 : index
    %576 = vector.load %arg2[%c4_426, %c0_427, %c0_428] : memref<27x1x256xf32, #tpu.memory_space<vmem>>, vector<1x1x256xf32>
    %577 = vector.shape_cast %576 : vector<1x1x256xf32> to vector<1x256xf32>
    %578 = vector.broadcast %577 : vector<1x256xf32> to vector<3x256xf32>
    %579 = arith.mulf %575, %578 : vector<3x256xf32>
    %c4_429 = arith.constant 4 : index
    %c0_430 = arith.constant 0 : index
    %c0_431 = arith.constant 0 : index
    %580 = vector.load %arg11[%c4_429, %c0_430, %c0_431] : memref<27x1x3xf32, #tpu.memory_space<vmem>>, vector<1x1x3xf32>
    %581 = vector.shape_cast %580 : vector<1x1x3xf32> to vector<1x3xf32>
    %cst_432 = arith.constant dense<0.000000e+00> : vector<1x256xf32>
    %582 = tpu.matmul %581, %579, %cst_432 {dimension_numbers = #tpu.dot_dimension_numbers<[1], [0], [0], [1], [0, 0, 1, 1], [], []>} : vector<1x3xf32>, vector<3x256xf32>, vector<1x256xf32> -> vector<1x256xf32>
    %583 = arith.addf %574, %582 : vector<1x256xf32>
    %584 = vector.extract_strided_slice %534 {offsets = [0, 65], sizes = [3, 256], strides = [1, 1]} : vector<3x512xf32> to vector<3x256xf32>
    %c5_433 = arith.constant 5 : index
    %c0_434 = arith.constant 0 : index
    %c0_435 = arith.constant 0 : index
    %585 = vector.load %arg2[%c5_433, %c0_434, %c0_435] : memref<27x1x256xf32, #tpu.memory_space<vmem>>, vector<1x1x256xf32>
    %586 = vector.shape_cast %585 : vector<1x1x256xf32> to vector<1x256xf32>
    %587 = vector.broadcast %586 : vector<1x256xf32> to vector<3x256xf32>
    %588 = arith.mulf %584, %587 : vector<3x256xf32>
    %c5_436 = arith.constant 5 : index
    %c0_437 = arith.constant 0 : index
    %c0_438 = arith.constant 0 : index
    %589 = vector.load %arg11[%c5_436, %c0_437, %c0_438] : memref<27x1x3xf32, #tpu.memory_space<vmem>>, vector<1x1x3xf32>
    %590 = vector.shape_cast %589 : vector<1x1x3xf32> to vector<1x3xf32>
    %cst_439 = arith.constant dense<0.000000e+00> : vector<1x256xf32>
    %591 = tpu.matmul %590, %588, %cst_439 {dimension_numbers = #tpu.dot_dimension_numbers<[1], [0], [0], [1], [0, 0, 1, 1], [], []>} : vector<1x3xf32>, vector<3x256xf32>, vector<1x256xf32> -> vector<1x256xf32>
    %592 = arith.addf %583, %591 : vector<1x256xf32>
    %593 = vector.extract_strided_slice %534 {offsets = [0, 71], sizes = [3, 256], strides = [1, 1]} : vector<3x512xf32> to vector<3x256xf32>
    %c6_440 = arith.constant 6 : index
    %c0_441 = arith.constant 0 : index
    %c0_442 = arith.constant 0 : index
    %594 = vector.load %arg2[%c6_440, %c0_441, %c0_442] : memref<27x1x256xf32, #tpu.memory_space<vmem>>, vector<1x1x256xf32>
    %595 = vector.shape_cast %594 : vector<1x1x256xf32> to vector<1x256xf32>
    %596 = vector.broadcast %595 : vector<1x256xf32> to vector<3x256xf32>
    %597 = arith.mulf %593, %596 : vector<3x256xf32>
    %c6_443 = arith.constant 6 : index
    %c0_444 = arith.constant 0 : index
    %c0_445 = arith.constant 0 : index
    %598 = vector.load %arg11[%c6_443, %c0_444, %c0_445] : memref<27x1x3xf32, #tpu.memory_space<vmem>>, vector<1x1x3xf32>
    %599 = vector.shape_cast %598 : vector<1x1x3xf32> to vector<1x3xf32>
    %cst_446 = arith.constant dense<0.000000e+00> : vector<1x256xf32>
    %600 = tpu.matmul %599, %597, %cst_446 {dimension_numbers = #tpu.dot_dimension_numbers<[1], [0], [0], [1], [0, 0, 1, 1], [], []>} : vector<1x3xf32>, vector<3x256xf32>, vector<1x256xf32> -> vector<1x256xf32>
    %601 = arith.addf %592, %600 : vector<1x256xf32>
    %602 = vector.extract_strided_slice %534 {offsets = [0, 72], sizes = [3, 256], strides = [1, 1]} : vector<3x512xf32> to vector<3x256xf32>
    %c7_447 = arith.constant 7 : index
    %c0_448 = arith.constant 0 : index
    %c0_449 = arith.constant 0 : index
    %603 = vector.load %arg2[%c7_447, %c0_448, %c0_449] : memref<27x1x256xf32, #tpu.memory_space<vmem>>, vector<1x1x256xf32>
    %604 = vector.shape_cast %603 : vector<1x1x256xf32> to vector<1x256xf32>
    %605 = vector.broadcast %604 : vector<1x256xf32> to vector<3x256xf32>
    %606 = arith.mulf %602, %605 : vector<3x256xf32>
    %c7_450 = arith.constant 7 : index
    %c0_451 = arith.constant 0 : index
    %c0_452 = arith.constant 0 : index
    %607 = vector.load %arg11[%c7_450, %c0_451, %c0_452] : memref<27x1x3xf32, #tpu.memory_space<vmem>>, vector<1x1x3xf32>
    %608 = vector.shape_cast %607 : vector<1x1x3xf32> to vector<1x3xf32>
    %cst_453 = arith.constant dense<0.000000e+00> : vector<1x256xf32>
    %609 = tpu.matmul %608, %606, %cst_453 {dimension_numbers = #tpu.dot_dimension_numbers<[1], [0], [0], [1], [0, 0, 1, 1], [], []>} : vector<1x3xf32>, vector<3x256xf32>, vector<1x256xf32> -> vector<1x256xf32>
    %610 = arith.addf %601, %609 : vector<1x256xf32>
    %611 = vector.extract_strided_slice %534 {offsets = [0, 73], sizes = [3, 256], strides = [1, 1]} : vector<3x512xf32> to vector<3x256xf32>
    %c8_454 = arith.constant 8 : index
    %c0_455 = arith.constant 0 : index
    %c0_456 = arith.constant 0 : index
    %612 = vector.load %arg2[%c8_454, %c0_455, %c0_456] : memref<27x1x256xf32, #tpu.memory_space<vmem>>, vector<1x1x256xf32>
    %613 = vector.shape_cast %612 : vector<1x1x256xf32> to vector<1x256xf32>
    %614 = vector.broadcast %613 : vector<1x256xf32> to vector<3x256xf32>
    %615 = arith.mulf %611, %614 : vector<3x256xf32>
    %c8_457 = arith.constant 8 : index
    %c0_458 = arith.constant 0 : index
    %c0_459 = arith.constant 0 : index
    %616 = vector.load %arg11[%c8_457, %c0_458, %c0_459] : memref<27x1x3xf32, #tpu.memory_space<vmem>>, vector<1x1x3xf32>
    %617 = vector.shape_cast %616 : vector<1x1x3xf32> to vector<1x3xf32>
    %cst_460 = arith.constant dense<0.000000e+00> : vector<1x256xf32>
    %618 = tpu.matmul %617, %615, %cst_460 {dimension_numbers = #tpu.dot_dimension_numbers<[1], [0], [0], [1], [0, 0, 1, 1], [], []>} : vector<1x3xf32>, vector<3x256xf32>, vector<1x256xf32> -> vector<1x256xf32>
    %619 = arith.addf %610, %618 : vector<1x256xf32>
    %620 = vector.extract_strided_slice %534 {offsets = [0, 119], sizes = [3, 256], strides = [1, 1]} : vector<3x512xf32> to vector<3x256xf32>
    %c9_461 = arith.constant 9 : index
    %c0_462 = arith.constant 0 : index
    %c0_463 = arith.constant 0 : index
    %621 = vector.load %arg2[%c9_461, %c0_462, %c0_463] : memref<27x1x256xf32, #tpu.memory_space<vmem>>, vector<1x1x256xf32>
    %622 = vector.shape_cast %621 : vector<1x1x256xf32> to vector<1x256xf32>
    %623 = vector.broadcast %622 : vector<1x256xf32> to vector<3x256xf32>
    %624 = arith.mulf %620, %623 : vector<3x256xf32>
    %c9_464 = arith.constant 9 : index
    %c0_465 = arith.constant 0 : index
    %c0_466 = arith.constant 0 : index
    %625 = vector.load %arg11[%c9_464, %c0_465, %c0_466] : memref<27x1x3xf32, #tpu.memory_space<vmem>>, vector<1x1x3xf32>
    %626 = vector.shape_cast %625 : vector<1x1x3xf32> to vector<1x3xf32>
    %cst_467 = arith.constant dense<0.000000e+00> : vector<1x256xf32>
    %627 = tpu.matmul %626, %624, %cst_467 {dimension_numbers = #tpu.dot_dimension_numbers<[1], [0], [0], [1], [0, 0, 1, 1], [], []>} : vector<1x3xf32>, vector<3x256xf32>, vector<1x256xf32> -> vector<1x256xf32>
    %628 = arith.addf %619, %627 : vector<1x256xf32>
    %629 = vector.extract_strided_slice %534 {offsets = [0, 120], sizes = [3, 256], strides = [1, 1]} : vector<3x512xf32> to vector<3x256xf32>
    %c10_468 = arith.constant 10 : index
    %c0_469 = arith.constant 0 : index
    %c0_470 = arith.constant 0 : index
    %630 = vector.load %arg2[%c10_468, %c0_469, %c0_470] : memref<27x1x256xf32, #tpu.memory_space<vmem>>, vector<1x1x256xf32>
    %631 = vector.shape_cast %630 : vector<1x1x256xf32> to vector<1x256xf32>
    %632 = vector.broadcast %631 : vector<1x256xf32> to vector<3x256xf32>
    %633 = arith.mulf %629, %632 : vector<3x256xf32>
    %c10_471 = arith.constant 10 : index
    %c0_472 = arith.constant 0 : index
    %c0_473 = arith.constant 0 : index
    %634 = vector.load %arg11[%c10_471, %c0_472, %c0_473] : memref<27x1x3xf32, #tpu.memory_space<vmem>>, vector<1x1x3xf32>
    %635 = vector.shape_cast %634 : vector<1x1x3xf32> to vector<1x3xf32>
    %cst_474 = arith.constant dense<0.000000e+00> : vector<1x256xf32>
    %636 = tpu.matmul %635, %633, %cst_474 {dimension_numbers = #tpu.dot_dimension_numbers<[1], [0], [0], [1], [0, 0, 1, 1], [], []>} : vector<1x3xf32>, vector<3x256xf32>, vector<1x256xf32> -> vector<1x256xf32>
    %637 = arith.addf %628, %636 : vector<1x256xf32>
    %638 = vector.extract_strided_slice %534 {offsets = [0, 121], sizes = [3, 256], strides = [1, 1]} : vector<3x512xf32> to vector<3x256xf32>
    %c11_475 = arith.constant 11 : index
    %c0_476 = arith.constant 0 : index
    %c0_477 = arith.constant 0 : index
    %639 = vector.load %arg2[%c11_475, %c0_476, %c0_477] : memref<27x1x256xf32, #tpu.memory_space<vmem>>, vector<1x1x256xf32>
    %640 = vector.shape_cast %639 : vector<1x1x256xf32> to vector<1x256xf32>
    %641 = vector.broadcast %640 : vector<1x256xf32> to vector<3x256xf32>
    %642 = arith.mulf %638, %641 : vector<3x256xf32>
    %c11_478 = arith.constant 11 : index
    %c0_479 = arith.constant 0 : index
    %c0_480 = arith.constant 0 : index
    %643 = vector.load %arg11[%c11_478, %c0_479, %c0_480] : memref<27x1x3xf32, #tpu.memory_space<vmem>>, vector<1x1x3xf32>
    %644 = vector.shape_cast %643 : vector<1x1x3xf32> to vector<1x3xf32>
    %cst_481 = arith.constant dense<0.000000e+00> : vector<1x256xf32>
    %645 = tpu.matmul %644, %642, %cst_481 {dimension_numbers = #tpu.dot_dimension_numbers<[1], [0], [0], [1], [0, 0, 1, 1], [], []>} : vector<1x3xf32>, vector<3x256xf32>, vector<1x256xf32> -> vector<1x256xf32>
    %646 = arith.addf %637, %645 : vector<1x256xf32>
    %647 = vector.extract_strided_slice %534 {offsets = [0, 127], sizes = [3, 256], strides = [1, 1]} : vector<3x512xf32> to vector<3x256xf32>
    %c12_482 = arith.constant 12 : index
    %c0_483 = arith.constant 0 : index
    %c0_484 = arith.constant 0 : index
    %648 = vector.load %arg2[%c12_482, %c0_483, %c0_484] : memref<27x1x256xf32, #tpu.memory_space<vmem>>, vector<1x1x256xf32>
    %649 = vector.shape_cast %648 : vector<1x1x256xf32> to vector<1x256xf32>
    %650 = vector.broadcast %649 : vector<1x256xf32> to vector<3x256xf32>
    %651 = arith.mulf %647, %650 : vector<3x256xf32>
    %c12_485 = arith.constant 12 : index
    %c0_486 = arith.constant 0 : index
    %c0_487 = arith.constant 0 : index
    %652 = vector.load %arg11[%c12_485, %c0_486, %c0_487] : memref<27x1x3xf32, #tpu.memory_space<vmem>>, vector<1x1x3xf32>
    %653 = vector.shape_cast %652 : vector<1x1x3xf32> to vector<1x3xf32>
    %cst_488 = arith.constant dense<0.000000e+00> : vector<1x256xf32>
    %654 = tpu.matmul %653, %651, %cst_488 {dimension_numbers = #tpu.dot_dimension_numbers<[1], [0], [0], [1], [0, 0, 1, 1], [], []>} : vector<1x3xf32>, vector<3x256xf32>, vector<1x256xf32> -> vector<1x256xf32>
    %655 = arith.addf %646, %654 : vector<1x256xf32>
    %656 = vector.extract_strided_slice %534 {offsets = [0, 128], sizes = [3, 256], strides = [1, 1]} : vector<3x512xf32> to vector<3x256xf32>
    %c13_489 = arith.constant 13 : index
    %c0_490 = arith.constant 0 : index
    %c0_491 = arith.constant 0 : index
    %657 = vector.load %arg2[%c13_489, %c0_490, %c0_491] : memref<27x1x256xf32, #tpu.memory_space<vmem>>, vector<1x1x256xf32>
    %658 = vector.shape_cast %657 : vector<1x1x256xf32> to vector<1x256xf32>
    %659 = vector.broadcast %658 : vector<1x256xf32> to vector<3x256xf32>
    %660 = arith.mulf %656, %659 : vector<3x256xf32>
    %c13_492 = arith.constant 13 : index
    %c0_493 = arith.constant 0 : index
    %c0_494 = arith.constant 0 : index
    %661 = vector.load %arg11[%c13_492, %c0_493, %c0_494] : memref<27x1x3xf32, #tpu.memory_space<vmem>>, vector<1x1x3xf32>
    %662 = vector.shape_cast %661 : vector<1x1x3xf32> to vector<1x3xf32>
    %cst_495 = arith.constant dense<0.000000e+00> : vector<1x256xf32>
    %663 = tpu.matmul %662, %660, %cst_495 {dimension_numbers = #tpu.dot_dimension_numbers<[1], [0], [0], [1], [0, 0, 1, 1], [], []>} : vector<1x3xf32>, vector<3x256xf32>, vector<1x256xf32> -> vector<1x256xf32>
    %664 = arith.addf %655, %663 : vector<1x256xf32>
    %665 = vector.extract_strided_slice %534 {offsets = [0, 129], sizes = [3, 256], strides = [1, 1]} : vector<3x512xf32> to vector<3x256xf32>
    %c14_496 = arith.constant 14 : index
    %c0_497 = arith.constant 0 : index
    %c0_498 = arith.constant 0 : index
    %666 = vector.load %arg2[%c14_496, %c0_497, %c0_498] : memref<27x1x256xf32, #tpu.memory_space<vmem>>, vector<1x1x256xf32>
    %667 = vector.shape_cast %666 : vector<1x1x256xf32> to vector<1x256xf32>
    %668 = vector.broadcast %667 : vector<1x256xf32> to vector<3x256xf32>
    %669 = arith.mulf %665, %668 : vector<3x256xf32>
    %c14_499 = arith.constant 14 : index
    %c0_500 = arith.constant 0 : index
    %c0_501 = arith.constant 0 : index
    %670 = vector.load %arg11[%c14_499, %c0_500, %c0_501] : memref<27x1x3xf32, #tpu.memory_space<vmem>>, vector<1x1x3xf32>
    %671 = vector.shape_cast %670 : vector<1x1x3xf32> to vector<1x3xf32>
    %cst_502 = arith.constant dense<0.000000e+00> : vector<1x256xf32>
    %672 = tpu.matmul %671, %669, %cst_502 {dimension_numbers = #tpu.dot_dimension_numbers<[1], [0], [0], [1], [0, 0, 1, 1], [], []>} : vector<1x3xf32>, vector<3x256xf32>, vector<1x256xf32> -> vector<1x256xf32>
    %673 = arith.addf %664, %672 : vector<1x256xf32>
    %674 = vector.extract_strided_slice %534 {offsets = [0, 135], sizes = [3, 256], strides = [1, 1]} : vector<3x512xf32> to vector<3x256xf32>
    %c15_503 = arith.constant 15 : index
    %c0_504 = arith.constant 0 : index
    %c0_505 = arith.constant 0 : index
    %675 = vector.load %arg2[%c15_503, %c0_504, %c0_505] : memref<27x1x256xf32, #tpu.memory_space<vmem>>, vector<1x1x256xf32>
    %676 = vector.shape_cast %675 : vector<1x1x256xf32> to vector<1x256xf32>
    %677 = vector.broadcast %676 : vector<1x256xf32> to vector<3x256xf32>
    %678 = arith.mulf %674, %677 : vector<3x256xf32>
    %c15_506 = arith.constant 15 : index
    %c0_507 = arith.constant 0 : index
    %c0_508 = arith.constant 0 : index
    %679 = vector.load %arg11[%c15_506, %c0_507, %c0_508] : memref<27x1x3xf32, #tpu.memory_space<vmem>>, vector<1x1x3xf32>
    %680 = vector.shape_cast %679 : vector<1x1x3xf32> to vector<1x3xf32>
    %cst_509 = arith.constant dense<0.000000e+00> : vector<1x256xf32>
    %681 = tpu.matmul %680, %678, %cst_509 {dimension_numbers = #tpu.dot_dimension_numbers<[1], [0], [0], [1], [0, 0, 1, 1], [], []>} : vector<1x3xf32>, vector<3x256xf32>, vector<1x256xf32> -> vector<1x256xf32>
    %682 = arith.addf %673, %681 : vector<1x256xf32>
    %683 = vector.extract_strided_slice %534 {offsets = [0, 136], sizes = [3, 256], strides = [1, 1]} : vector<3x512xf32> to vector<3x256xf32>
    %c16_510 = arith.constant 16 : index
    %c0_511 = arith.constant 0 : index
    %c0_512 = arith.constant 0 : index
    %684 = vector.load %arg2[%c16_510, %c0_511, %c0_512] : memref<27x1x256xf32, #tpu.memory_space<vmem>>, vector<1x1x256xf32>
    %685 = vector.shape_cast %684 : vector<1x1x256xf32> to vector<1x256xf32>
    %686 = vector.broadcast %685 : vector<1x256xf32> to vector<3x256xf32>
    %687 = arith.mulf %683, %686 : vector<3x256xf32>
    %c16_513 = arith.constant 16 : index
    %c0_514 = arith.constant 0 : index
    %c0_515 = arith.constant 0 : index
    %688 = vector.load %arg11[%c16_513, %c0_514, %c0_515] : memref<27x1x3xf32, #tpu.memory_space<vmem>>, vector<1x1x3xf32>
    %689 = vector.shape_cast %688 : vector<1x1x3xf32> to vector<1x3xf32>
    %cst_516 = arith.constant dense<0.000000e+00> : vector<1x256xf32>
    %690 = tpu.matmul %689, %687, %cst_516 {dimension_numbers = #tpu.dot_dimension_numbers<[1], [0], [0], [1], [0, 0, 1, 1], [], []>} : vector<1x3xf32>, vector<3x256xf32>, vector<1x256xf32> -> vector<1x256xf32>
    %691 = arith.addf %682, %690 : vector<1x256xf32>
    %692 = vector.extract_strided_slice %534 {offsets = [0, 137], sizes = [3, 256], strides = [1, 1]} : vector<3x512xf32> to vector<3x256xf32>
    %c17_517 = arith.constant 17 : index
    %c0_518 = arith.constant 0 : index
    %c0_519 = arith.constant 0 : index
    %693 = vector.load %arg2[%c17_517, %c0_518, %c0_519] : memref<27x1x256xf32, #tpu.memory_space<vmem>>, vector<1x1x256xf32>
    %694 = vector.shape_cast %693 : vector<1x1x256xf32> to vector<1x256xf32>
    %695 = vector.broadcast %694 : vector<1x256xf32> to vector<3x256xf32>
    %696 = arith.mulf %692, %695 : vector<3x256xf32>
    %c17_520 = arith.constant 17 : index
    %c0_521 = arith.constant 0 : index
    %c0_522 = arith.constant 0 : index
    %697 = vector.load %arg11[%c17_520, %c0_521, %c0_522] : memref<27x1x3xf32, #tpu.memory_space<vmem>>, vector<1x1x3xf32>
    %698 = vector.shape_cast %697 : vector<1x1x3xf32> to vector<1x3xf32>
    %cst_523 = arith.constant dense<0.000000e+00> : vector<1x256xf32>
    %699 = tpu.matmul %698, %696, %cst_523 {dimension_numbers = #tpu.dot_dimension_numbers<[1], [0], [0], [1], [0, 0, 1, 1], [], []>} : vector<1x3xf32>, vector<3x256xf32>, vector<1x256xf32> -> vector<1x256xf32>
    %700 = arith.addf %691, %699 : vector<1x256xf32>
    %701 = vector.extract_strided_slice %534 {offsets = [0, 183], sizes = [3, 256], strides = [1, 1]} : vector<3x512xf32> to vector<3x256xf32>
    %c18_524 = arith.constant 18 : index
    %c0_525 = arith.constant 0 : index
    %c0_526 = arith.constant 0 : index
    %702 = vector.load %arg2[%c18_524, %c0_525, %c0_526] : memref<27x1x256xf32, #tpu.memory_space<vmem>>, vector<1x1x256xf32>
    %703 = vector.shape_cast %702 : vector<1x1x256xf32> to vector<1x256xf32>
    %704 = vector.broadcast %703 : vector<1x256xf32> to vector<3x256xf32>
    %705 = arith.mulf %701, %704 : vector<3x256xf32>
    %c18_527 = arith.constant 18 : index
    %c0_528 = arith.constant 0 : index
    %c0_529 = arith.constant 0 : index
    %706 = vector.load %arg11[%c18_527, %c0_528, %c0_529] : memref<27x1x3xf32, #tpu.memory_space<vmem>>, vector<1x1x3xf32>
    %707 = vector.shape_cast %706 : vector<1x1x3xf32> to vector<1x3xf32>
    %cst_530 = arith.constant dense<0.000000e+00> : vector<1x256xf32>
    %708 = tpu.matmul %707, %705, %cst_530 {dimension_numbers = #tpu.dot_dimension_numbers<[1], [0], [0], [1], [0, 0, 1, 1], [], []>} : vector<1x3xf32>, vector<3x256xf32>, vector<1x256xf32> -> vector<1x256xf32>
    %709 = arith.addf %700, %708 : vector<1x256xf32>
    %710 = vector.extract_strided_slice %534 {offsets = [0, 184], sizes = [3, 256], strides = [1, 1]} : vector<3x512xf32> to vector<3x256xf32>
    %c19_531 = arith.constant 19 : index
    %c0_532 = arith.constant 0 : index
    %c0_533 = arith.constant 0 : index
    %711 = vector.load %arg2[%c19_531, %c0_532, %c0_533] : memref<27x1x256xf32, #tpu.memory_space<vmem>>, vector<1x1x256xf32>
    %712 = vector.shape_cast %711 : vector<1x1x256xf32> to vector<1x256xf32>
    %713 = vector.broadcast %712 : vector<1x256xf32> to vector<3x256xf32>
    %714 = arith.mulf %710, %713 : vector<3x256xf32>
    %c19_534 = arith.constant 19 : index
    %c0_535 = arith.constant 0 : index
    %c0_536 = arith.constant 0 : index
    %715 = vector.load %arg11[%c19_534, %c0_535, %c0_536] : memref<27x1x3xf32, #tpu.memory_space<vmem>>, vector<1x1x3xf32>
    %716 = vector.shape_cast %715 : vector<1x1x3xf32> to vector<1x3xf32>
    %cst_537 = arith.constant dense<0.000000e+00> : vector<1x256xf32>
    %717 = tpu.matmul %716, %714, %cst_537 {dimension_numbers = #tpu.dot_dimension_numbers<[1], [0], [0], [1], [0, 0, 1, 1], [], []>} : vector<1x3xf32>, vector<3x256xf32>, vector<1x256xf32> -> vector<1x256xf32>
    %718 = arith.addf %709, %717 : vector<1x256xf32>
    %719 = vector.extract_strided_slice %534 {offsets = [0, 185], sizes = [3, 256], strides = [1, 1]} : vector<3x512xf32> to vector<3x256xf32>
    %c20_538 = arith.constant 20 : index
    %c0_539 = arith.constant 0 : index
    %c0_540 = arith.constant 0 : index
    %720 = vector.load %arg2[%c20_538, %c0_539, %c0_540] : memref<27x1x256xf32, #tpu.memory_space<vmem>>, vector<1x1x256xf32>
    %721 = vector.shape_cast %720 : vector<1x1x256xf32> to vector<1x256xf32>
    %722 = vector.broadcast %721 : vector<1x256xf32> to vector<3x256xf32>
    %723 = arith.mulf %719, %722 : vector<3x256xf32>
    %c20_541 = arith.constant 20 : index
    %c0_542 = arith.constant 0 : index
    %c0_543 = arith.constant 0 : index
    %724 = vector.load %arg11[%c20_541, %c0_542, %c0_543] : memref<27x1x3xf32, #tpu.memory_space<vmem>>, vector<1x1x3xf32>
    %725 = vector.shape_cast %724 : vector<1x1x3xf32> to vector<1x3xf32>
    %cst_544 = arith.constant dense<0.000000e+00> : vector<1x256xf32>
    %726 = tpu.matmul %725, %723, %cst_544 {dimension_numbers = #tpu.dot_dimension_numbers<[1], [0], [0], [1], [0, 0, 1, 1], [], []>} : vector<1x3xf32>, vector<3x256xf32>, vector<1x256xf32> -> vector<1x256xf32>
    %727 = arith.addf %718, %726 : vector<1x256xf32>
    %728 = vector.extract_strided_slice %534 {offsets = [0, 191], sizes = [3, 256], strides = [1, 1]} : vector<3x512xf32> to vector<3x256xf32>
    %c21_545 = arith.constant 21 : index
    %c0_546 = arith.constant 0 : index
    %c0_547 = arith.constant 0 : index
    %729 = vector.load %arg2[%c21_545, %c0_546, %c0_547] : memref<27x1x256xf32, #tpu.memory_space<vmem>>, vector<1x1x256xf32>
    %730 = vector.shape_cast %729 : vector<1x1x256xf32> to vector<1x256xf32>
    %731 = vector.broadcast %730 : vector<1x256xf32> to vector<3x256xf32>
    %732 = arith.mulf %728, %731 : vector<3x256xf32>
    %c21_548 = arith.constant 21 : index
    %c0_549 = arith.constant 0 : index
    %c0_550 = arith.constant 0 : index
    %733 = vector.load %arg11[%c21_548, %c0_549, %c0_550] : memref<27x1x3xf32, #tpu.memory_space<vmem>>, vector<1x1x3xf32>
    %734 = vector.shape_cast %733 : vector<1x1x3xf32> to vector<1x3xf32>
    %cst_551 = arith.constant dense<0.000000e+00> : vector<1x256xf32>
    %735 = tpu.matmul %734, %732, %cst_551 {dimension_numbers = #tpu.dot_dimension_numbers<[1], [0], [0], [1], [0, 0, 1, 1], [], []>} : vector<1x3xf32>, vector<3x256xf32>, vector<1x256xf32> -> vector<1x256xf32>
    %736 = arith.addf %727, %735 : vector<1x256xf32>
    %737 = vector.extract_strided_slice %534 {offsets = [0, 192], sizes = [3, 256], strides = [1, 1]} : vector<3x512xf32> to vector<3x256xf32>
    %c22_552 = arith.constant 22 : index
    %c0_553 = arith.constant 0 : index
    %c0_554 = arith.constant 0 : index
    %738 = vector.load %arg2[%c22_552, %c0_553, %c0_554] : memref<27x1x256xf32, #tpu.memory_space<vmem>>, vector<1x1x256xf32>
    %739 = vector.shape_cast %738 : vector<1x1x256xf32> to vector<1x256xf32>
    %740 = vector.broadcast %739 : vector<1x256xf32> to vector<3x256xf32>
    %741 = arith.mulf %737, %740 : vector<3x256xf32>
    %c22_555 = arith.constant 22 : index
    %c0_556 = arith.constant 0 : index
    %c0_557 = arith.constant 0 : index
    %742 = vector.load %arg11[%c22_555, %c0_556, %c0_557] : memref<27x1x3xf32, #tpu.memory_space<vmem>>, vector<1x1x3xf32>
    %743 = vector.shape_cast %742 : vector<1x1x3xf32> to vector<1x3xf32>
    %cst_558 = arith.constant dense<0.000000e+00> : vector<1x256xf32>
    %744 = tpu.matmul %743, %741, %cst_558 {dimension_numbers = #tpu.dot_dimension_numbers<[1], [0], [0], [1], [0, 0, 1, 1], [], []>} : vector<1x3xf32>, vector<3x256xf32>, vector<1x256xf32> -> vector<1x256xf32>
    %745 = arith.addf %736, %744 : vector<1x256xf32>
    %746 = vector.extract_strided_slice %534 {offsets = [0, 193], sizes = [3, 256], strides = [1, 1]} : vector<3x512xf32> to vector<3x256xf32>
    %c23_559 = arith.constant 23 : index
    %c0_560 = arith.constant 0 : index
    %c0_561 = arith.constant 0 : index
    %747 = vector.load %arg2[%c23_559, %c0_560, %c0_561] : memref<27x1x256xf32, #tpu.memory_space<vmem>>, vector<1x1x256xf32>
    %748 = vector.shape_cast %747 : vector<1x1x256xf32> to vector<1x256xf32>
    %749 = vector.broadcast %748 : vector<1x256xf32> to vector<3x256xf32>
    %750 = arith.mulf %746, %749 : vector<3x256xf32>
    %c23_562 = arith.constant 23 : index
    %c0_563 = arith.constant 0 : index
    %c0_564 = arith.constant 0 : index
    %751 = vector.load %arg11[%c23_562, %c0_563, %c0_564] : memref<27x1x3xf32, #tpu.memory_space<vmem>>, vector<1x1x3xf32>
    %752 = vector.shape_cast %751 : vector<1x1x3xf32> to vector<1x3xf32>
    %cst_565 = arith.constant dense<0.000000e+00> : vector<1x256xf32>
    %753 = tpu.matmul %752, %750, %cst_565 {dimension_numbers = #tpu.dot_dimension_numbers<[1], [0], [0], [1], [0, 0, 1, 1], [], []>} : vector<1x3xf32>, vector<3x256xf32>, vector<1x256xf32> -> vector<1x256xf32>
    %754 = arith.addf %745, %753 : vector<1x256xf32>
    %755 = vector.extract_strided_slice %534 {offsets = [0, 199], sizes = [3, 256], strides = [1, 1]} : vector<3x512xf32> to vector<3x256xf32>
    %c24_566 = arith.constant 24 : index
    %c0_567 = arith.constant 0 : index
    %c0_568 = arith.constant 0 : index
    %756 = vector.load %arg2[%c24_566, %c0_567, %c0_568] : memref<27x1x256xf32, #tpu.memory_space<vmem>>, vector<1x1x256xf32>
    %757 = vector.shape_cast %756 : vector<1x1x256xf32> to vector<1x256xf32>
    %758 = vector.broadcast %757 : vector<1x256xf32> to vector<3x256xf32>
    %759 = arith.mulf %755, %758 : vector<3x256xf32>
    %c24_569 = arith.constant 24 : index
    %c0_570 = arith.constant 0 : index
    %c0_571 = arith.constant 0 : index
    %760 = vector.load %arg11[%c24_569, %c0_570, %c0_571] : memref<27x1x3xf32, #tpu.memory_space<vmem>>, vector<1x1x3xf32>
    %761 = vector.shape_cast %760 : vector<1x1x3xf32> to vector<1x3xf32>
    %cst_572 = arith.constant dense<0.000000e+00> : vector<1x256xf32>
    %762 = tpu.matmul %761, %759, %cst_572 {dimension_numbers = #tpu.dot_dimension_numbers<[1], [0], [0], [1], [0, 0, 1, 1], [], []>} : vector<1x3xf32>, vector<3x256xf32>, vector<1x256xf32> -> vector<1x256xf32>
    %763 = arith.addf %754, %762 : vector<1x256xf32>
    %764 = vector.extract_strided_slice %534 {offsets = [0, 200], sizes = [3, 256], strides = [1, 1]} : vector<3x512xf32> to vector<3x256xf32>
    %c25_573 = arith.constant 25 : index
    %c0_574 = arith.constant 0 : index
    %c0_575 = arith.constant 0 : index
    %765 = vector.load %arg2[%c25_573, %c0_574, %c0_575] : memref<27x1x256xf32, #tpu.memory_space<vmem>>, vector<1x1x256xf32>
    %766 = vector.shape_cast %765 : vector<1x1x256xf32> to vector<1x256xf32>
    %767 = vector.broadcast %766 : vector<1x256xf32> to vector<3x256xf32>
    %768 = arith.mulf %764, %767 : vector<3x256xf32>
    %c25_576 = arith.constant 25 : index
    %c0_577 = arith.constant 0 : index
    %c0_578 = arith.constant 0 : index
    %769 = vector.load %arg11[%c25_576, %c0_577, %c0_578] : memref<27x1x3xf32, #tpu.memory_space<vmem>>, vector<1x1x3xf32>
    %770 = vector.shape_cast %769 : vector<1x1x3xf32> to vector<1x3xf32>
    %cst_579 = arith.constant dense<0.000000e+00> : vector<1x256xf32>
    %771 = tpu.matmul %770, %768, %cst_579 {dimension_numbers = #tpu.dot_dimension_numbers<[1], [0], [0], [1], [0, 0, 1, 1], [], []>} : vector<1x3xf32>, vector<3x256xf32>, vector<1x256xf32> -> vector<1x256xf32>
    %772 = arith.addf %763, %771 : vector<1x256xf32>
    %773 = vector.extract_strided_slice %534 {offsets = [0, 201], sizes = [3, 256], strides = [1, 1]} : vector<3x512xf32> to vector<3x256xf32>
    %c26_580 = arith.constant 26 : index
    %c0_581 = arith.constant 0 : index
    %c0_582 = arith.constant 0 : index
    %774 = vector.load %arg2[%c26_580, %c0_581, %c0_582] : memref<27x1x256xf32, #tpu.memory_space<vmem>>, vector<1x1x256xf32>
    %775 = vector.shape_cast %774 : vector<1x1x256xf32> to vector<1x256xf32>
    %776 = vector.broadcast %775 : vector<1x256xf32> to vector<3x256xf32>
    %777 = arith.mulf %773, %776 : vector<3x256xf32>
    %c26_583 = arith.constant 26 : index
    %c0_584 = arith.constant 0 : index
    %c0_585 = arith.constant 0 : index
    %778 = vector.load %arg11[%c26_583, %c0_584, %c0_585] : memref<27x1x3xf32, #tpu.memory_space<vmem>>, vector<1x1x3xf32>
    %779 = vector.shape_cast %778 : vector<1x1x3xf32> to vector<1x3xf32>
    %cst_586 = arith.constant dense<0.000000e+00> : vector<1x256xf32>
    %780 = tpu.matmul %779, %777, %cst_586 {dimension_numbers = #tpu.dot_dimension_numbers<[1], [0], [0], [1], [0, 0, 1, 1], [], []>} : vector<1x3xf32>, vector<3x256xf32>, vector<1x256xf32> -> vector<1x256xf32>
    %781 = arith.addf %772, %780 : vector<1x256xf32>
    %cst_587 = arith.constant dense<0.000000e+00> : vector<1xf32>
    %782 = vector.multi_reduction <add>, %781, %cst_587 [1] : vector<1x256xf32> to vector<1xf32>
    %783 = vector.shape_cast %782 : vector<1xf32> to vector<1x1xf32>
    %cst_588 = arith.constant 2.560000e+02 : f32
    %784 = vector.broadcast %cst_588 : f32 to vector<1x1xf32>
    %785 = arith.divf %783, %784 : vector<1x1xf32>
    %786 = vector.broadcast %785 : vector<1x1xf32> to vector<1x256xf32>
    %787 = arith.subf %781, %786 : vector<1x256xf32>
    %788 = arith.mulf %787, %787 : vector<1x256xf32>
    %cst_589 = arith.constant dense<0.000000e+00> : vector<1xf32>
    %789 = vector.multi_reduction <add>, %788, %cst_589 [1] : vector<1x256xf32> to vector<1xf32>
    %790 = vector.shape_cast %789 : vector<1xf32> to vector<1x1xf32>
    %cst_590 = arith.constant 2.560000e+02 : f32
    %791 = vector.broadcast %cst_590 : f32 to vector<1x1xf32>
    %792 = arith.divf %790, %791 : vector<1x1xf32>
    %793 = vector.broadcast %785 : vector<1x1xf32> to vector<1x256xf32>
    %794 = arith.subf %781, %793 : vector<1x256xf32>
    %cst_591 = arith.constant 9.99999974E-6 : f32
    %795 = vector.broadcast %cst_591 : f32 to vector<1x1xf32>
    %796 = arith.addf %792, %795 : vector<1x1xf32>
    %797 = math.rsqrt %796 : vector<1x1xf32>
    %798 = vector.broadcast %797 : vector<1x1xf32> to vector<1x256xf32>
    %799 = arith.mulf %794, %798 : vector<1x256xf32>
    %c0_592 = arith.constant 0 : index
    %c0_593 = arith.constant 0 : index
    %800 = vector.load %arg13[%c0_592, %c0_593] : memref<1x1xf32, #tpu.memory_space<vmem>>, vector<1x1xf32>
    %801 = vector.broadcast %800 : vector<1x1xf32> to vector<1x256xf32>
    %802 = arith.mulf %799, %801 : vector<1x256xf32>
    %c0_594 = arith.constant 0 : index
    %c0_595 = arith.constant 0 : index
    %803 = vector.load %arg14[%c0_594, %c0_595] : memref<1x1xf32, #tpu.memory_space<vmem>>, vector<1x1xf32>
    %804 = vector.broadcast %803 : vector<1x1xf32> to vector<1x256xf32>
    %805 = arith.addf %802, %804 : vector<1x256xf32>
    %cst_596 = arith.constant 0.000000e+00 : f32
    %806 = vector.broadcast %cst_596 : f32 to vector<1x256xf32>
    %807 = arith.cmpf oge, %805, %806 : vector<1x256xf32>
    %cst_597 = arith.constant 0.00999999977 : f32
    %808 = vector.broadcast %cst_597 : f32 to vector<1x256xf32>
    %809 = arith.mulf %808, %805 : vector<1x256xf32>
    %810 = arith.select %807, %805, %809 : vector<1x256xi1>, vector<1x256xf32>
    %c0_598 = arith.constant 0 : index
    %c0_599 = arith.constant 0 : index
    %c0_600 = arith.constant 0 : index
    %811 = vector.load %arg15[%c0_598, %c0_599, %c0_600] : memref<1x1x256xf32, #tpu.memory_space<vmem>>, vector<1x1x256xf32>
    %812 = vector.shape_cast %811 : vector<1x1x256xf32> to vector<1x256xf32>
    %813 = vector.shape_cast %810 : vector<1x256xf32> to vector<1x1x256xf32>
    tpu.vector_store %arg15[%c0_598, %c0_599, %c0_600], %813 {strides = array<i32>} : memref<1x1x256xf32, #tpu.memory_space<vmem>>, vector<1x1x256xf32>,
    return
  }
  func.func @transform_0(%arg0: i32) -> (i32, i32, i32) {
    %c0_i32 = arith.constant 0 : i32
    %c0_i32_0 = arith.constant 0 : i32
    %c0_i32_1 = arith.constant 0 : i32
    return %arg0, %c0_i32, %c0_i32_0 : i32, i32, i32
  }
  func.func @transform_1(%arg0: i32) -> (i32, i32, i32) {
    %c0_i32 = arith.constant 0 : i32
    %c0_i32_0 = arith.constant 0 : i32
    %c0_i32_1 = arith.constant 0 : i32
    %c0_i32_2 = arith.constant 0 : i32
    return %c0_i32, %c0_i32_0, %c0_i32_1 : i32, i32, i32
  }
  func.func @transform_2(%arg0: i32) -> (i32, i32, i32) {
    %c0_i32 = arith.constant 0 : i32
    %c0_i32_0 = arith.constant 0 : i32
    %c0_i32_1 = arith.constant 0 : i32
    %c0_i32_2 = arith.constant 0 : i32
    return %c0_i32, %c0_i32_0, %c0_i32_1 : i32, i32, i32
  }
  func.func @transform_3(%arg0: i32) -> (i32, i32) {
    %c0_i32 = arith.constant 0 : i32
    %c0_i32_0 = arith.constant 0 : i32
    %c0_i32_1 = arith.constant 0 : i32
    return %c0_i32, %c0_i32_0 : i32, i32
  }
  func.func @transform_4(%arg0: i32) -> (i32, i32) {
    %c0_i32 = arith.constant 0 : i32
    %c0_i32_0 = arith.constant 0 : i32
    %c0_i32_1 = arith.constant 0 : i32
    return %c0_i32, %c0_i32_0 : i32, i32
  }
  func.func @transform_5(%arg0: i32) -> (i32, i32) {
    %c0_i32 = arith.constant 0 : i32
    %c0_i32_0 = arith.constant 0 : i32
    %c0_i32_1 = arith.constant 0 : i32
    return %c0_i32, %c0_i32_0 : i32, i32
  }
  func.func @transform_6(%arg0: i32) -> (i32, i32, i32) {
    %c0_i32 = arith.constant 0 : i32
    %c0_i32_0 = arith.constant 0 : i32
    %c0_i32_1 = arith.constant 0 : i32
    %c0_i32_2 = arith.constant 0 : i32
    return %c0_i32, %c0_i32_0, %c0_i32_1 : i32, i32, i32
  }
  func.func @transform_7(%arg0: i32) -> (i32, i32) {
    %c0_i32 = arith.constant 0 : i32
    %c0_i32_0 = arith.constant 0 : i32
    %c0_i32_1 = arith.constant 0 : i32
    return %c0_i32, %c0_i32_0 : i32, i32
  }
  func.func @transform_8(%arg0: i32) -> (i32, i32) {
    %c0_i32 = arith.constant 0 : i32
    %c0_i32_0 = arith.constant 0 : i32
    %c0_i32_1 = arith.constant 0 : i32
    return %c0_i32, %c0_i32_0 : i32, i32
  }
  func.func @transform_9(%arg0: i32) -> (i32, i32) {
    %c0_i32 = arith.constant 0 : i32
    %c0_i32_0 = arith.constant 0 : i32
    %c0_i32_1 = arith.constant 0 : i32
    return %c0_i32, %c0_i32_0 : i32, i32
  }
  func.func @transform_10(%arg0: i32) -> (i32, i32, i32) {
    %c0_i32 = arith.constant 0 : i32
    %c0_i32_0 = arith.constant 0 : i32
    %c0_i32_1 = arith.constant 0 : i32
    %c0_i32_2 = arith.constant 0 : i32
    return %c0_i32, %c0_i32_0, %c0_i32_1 : i32, i32, i32
  }
  func.func @transform_11(%arg0: i32) -> (i32, i32) {
    %c0_i32 = arith.constant 0 : i32
    %c0_i32_0 = arith.constant 0 : i32
    %c0_i32_1 = arith.constant 0 : i32
    return %c0_i32, %c0_i32_0 : i32, i32
  }
  func.func @transform_12(%arg0: i32) -> (i32, i32) {
    %c0_i32 = arith.constant 0 : i32
    %c0_i32_0 = arith.constant 0 : i32
    %c0_i32_1 = arith.constant 0 : i32
    return %c0_i32, %c0_i32_0 : i32, i32
  }
  func.func @transform_13(%arg0: i32) -> (i32, i32) {
    %c0_i32 = arith.constant 0 : i32
    %c0_i32_0 = arith.constant 0 : i32
    %c0_i32_1 = arith.constant 0 : i32
    return %c0_i32, %c0_i32_0 : i32, i32
  }
  func.func @transform_14(%arg0: i32) -> (i32, i32, i32) {
    %c0_i32 = arith.constant 0 : i32
    %c0_i32_0 = arith.constant 0 : i32
    %c0_i32_1 = arith.constant 0 : i32
    return %arg0, %c0_i32, %c0_i32_0 : i32, i32, i32
  }
}

</mosaic_0001>

<bundles_post_ra>
// kernel: tpu_custom_call.1
= control target key start
LH: loop header
LB: loop body
LE: loop exit
PB: predicated region body
PF: predicated region fallthrough
CT: control target
= control target key end

     0   :  { %s12434_s0 = inlined_call_operand.vmem [shape: f32[2,1,256], index: 0, kind: input, shape index: {}]   ;;  %s12435_s1 = inlined_call_operand.vmem [shape: f32[27,1,256], index: 1, kind: input, shape index: {}]   ;;  %s12436_s2 = inlined_call_operand.vmem [shape: f32[27,3,1], index: 2, kind: input, shape index: {}]   ;;  %s12437_s3 = inlined_call_operand.vmem [shape: f32[3,1], index: 3, kind: input, shape index: {}]   ;;  %s12438_s4 = inlined_call_operand.vmem [shape: f32[3,1], index: 4, kind: input, shape index: {}]   ;;  %s12439_s5 = inlined_call_operand.vmem [shape: f32[3,1], index: 5, kind: input, shape index: {}]   ;;  %s12440_s6 = inlined_call_operand.vmem [shape: f32[27,3,3], index: 6, kind: input, shape index: {}]   ;;  %s12441_s7 = inlined_call_operand.vmem [shape: f32[3,1], index: 7, kind: input, shape index: {}]   ;;  %s12442_s8 = inlined_call_operand.vmem [shape: f32[3,1], index: 8, kind: input, shape index: {}]   ;;  %s12443_s9 = inlined_call_operand.vmem [shape: f32[3,1], index: 9, kind: input, shape index: {}]   ;;  %s12444_s10 = inlined_call_operand.vmem [shape: f32[27,1,3], index: 10, kind: input, shape index: {}]   ;;  %s12445_s11 = inlined_call_operand.<no memory space> [shape: f32[1,1], index: 11, kind: input, shape index: {}]   ;;  %s12446_s14 = inlined_call_operand.hbm [shape: f32[2,1,256], index: 14, kind: output, shape index: {}]   ;;  %s12447_s12 = inlined_call_operand.<no memory space> [shape: f32[1,1], index: 12, kind: input, shape index: {}]   ;;  %s12448_s13 = inlined_call_operand.<no memory space> [shape: f32[1,1], index: 13, kind: input, shape index: {}]  }
   0x1   :  { %12499 = sst [smem:[#allocation15_spill]] %s12434_s0  ;;  %v19_v0 = vstv %s12445_s11  ;;  %v21_v1 = vstv %s12447_s12  ;;  %v23_v2 = vstv %s12448_s13 }
   0x2   :  { %12500 = sst [smem:[#allocation16_spill]] %s12436_s2  ;;  %20 = vst [vmem:[#allocation3] sm:$0x1] %v19_v0  ;;  %22 = vst [vmem:[#allocation4] sm:$0x1] %v21_v1 }
   0x3   :  { %12501 = sst [smem:[#allocation17_spill]] %s12437_s3  ;;  %24 = vst [vmem:[#allocation5] sm:$0x1] %v23_v2 }
   0x4   :  { %12502 = sst [smem:[#allocation18_spill]] %s12438_s4 }
   0x5   :  { %12503 = sst [smem:[#allocation19_spill]] %s12439_s5 }
   0x6   :  { %12504 = sst [smem:[#allocation20_spill]] %s12441_s7 }
   0x7   :  { %12505 = sst [smem:[#allocation21_spill]] %s12446_s14 }
   0x8   :  { %25 = vsyncpa [#allocation7], 0 }
   0x9   :  { %27 = vsyncpa [#allocation7 + $0x1], 0  ;;  %s10600_s19 = smov 0   ;;  %s10602_s20 = smov 0  }
   0xa   :  { %s10604_s21 = smov 0   ;;  %s10606_s11 = smov 0  }
   0xb LB: > { %12506 = sst [smem:[#allocation9_spill]] %s10480_s19  ;;  %s10621_s12 = sadd.s32 4294967295, %s10492_s11   ;;  %s10492_s11 = sphi %s10606_s11, %s12603_s11   ;;  %s10488_s21 = sphi %s10604_s21, %s12605_s21   ;;  %s10484_s20 = sphi %s10602_s20, %s12607_s20   ;;  %s10480_s19 = sphi %s10600_s19, %s12606_s19  }
   0xc   : > { %12507 = sst [smem:[#allocation10_spill]] %s10488_s21  ;;  %s9789_s13 = sadd.s32 4294967294, %s10492_s11  }
   0xd   : > { %12508 = sst [smem:[#allocation11_spill]] %s10492_s11  ;;  %s10625_s22 = sadd.s32 1, %s10492_s11  }
   0xe   : > { %12509 = sst [smem:[#allocation12_spill]] %s10625_s22  ;;  %s339_s23 = sadd.s32 1, %s10488_s21 }
   0xf   : > { %s336_s24 = ssub.s32 %s10492_s11, %s10625_s22  ;;  %p349_p0 = scmp.ne.s32.totalorder %s10488_s21, %s10484_s20 }
  0x10   : > { %p337_p1 = scmp.eq.s32.totalorder %s336_s24, 0  ;;  %p350_p2 = scmp.eq.s32.totalorder %s10621_s12, 1 }
  0x11   : > { %p355_p3 = scmp.ne.s32.totalorder %s10484_s20, %s10480_s19  ;;  %p356_p4 = scmp.eq.s32.totalorder %s9789_s13, 1 }
  0x12   : > { %s10636_s25 = scalar_select %p337_p1, %s10488_s21, %s339_s23  }
  0x13   : > { %p10638_p5 = por %p350_p2, %p349_p0  ;;  %p10642_p6 = por %p356_p4, %p355_p3 }
  0x14   : > { %12510 = sst [smem:[#allocation13_spill]] %s10636_s25  ;;  %p9792_p7 = scmp.ge.s32.totalorder %s10492_s11, 1 }
  0x15   : > { %s12512_s27 = scalar_select %p10642_p6, 1, 0 }
  0x16   : > { %p420_p8 = scmp.lt.s32.totalorder %s10492_s11, 3 }
  0x17   : > { %12513 = sst [smem:[#allocation14_spill]] %s12512_s27 }
  0x18   : > { %p421_p9 = pnand %p9792_p7, %p420_p8 }
  0x19   : > { %v472_v3 = vlaneseq (!%p421_p9)  ;;  %v10494_v4 = vmov (!%p421_p9), 286326784   ;;  %v10495_v8 = vmov (!%p421_p9), 0.0   ;;  %v9803_v9 = vld [vmem:[%s12435_s1 + $0x4] sm:$0x3] (!%p421_p9)  ;;  %v487_v10 = vld [vmem:[%s12435_s1] sm:$0x3] (!%p421_p9) }
  0x1a   : > { %424 = sbr.rel (%p421_p9) target bundleno = 2802 (0xaf2), region = 76  ;;  %v490_v5 = vunpack.c.l.s4 (!%p421_p9), %v10494_v4  ;;  %469 = vst [vmem:[#allocation2] sm:$0x77] (!%p421_p9), %v10495_v8  ;;  %470 = vst [vmem:[#allocation2 + $0x8] sm:$0x77] (!%p421_p9), %v10495_v8  ;;  %2190 = vmatprep.mubr.f32.mxu0 (!%p421_p9), %v10495_v8  ;;  %602 = vmatprep.mubr.f32.mxu1 (!%p421_p9), %v10495_v8  ;;  %p465_p10 = scmp.lt.s32.totalorder (!%p421_p9), %s10621_s12, 1 }
  0x1b   : > { %v10648_v6 = vshrl.u32 (!%p421_p9), %v472_v3, 7  ;;  %v9808_v12 = vld [vmem:[%s12435_s1 + $0x6] sm:$0x3] (!%p421_p9)  ;;  %v9798_v13 = vld [vmem:[%s12435_s1 + $0x2] sm:$0x3] (!%p421_p9)  ;;  %vm10673_vm0 = vcmp.lt.s32.totalorder (!%p421_p9), %v472_v3, 256 }
  0x1c   : > { %v491_v7 = vunpack.c.0.s8 (!%p421_p9), %v490_v5  ;;  %s12453_s28 = smov (!%p421_p9), 57   ;;  %s12449_s29 = smov (!%p421_p9), 55   ;;  %v9818_v18 = vld [vmem:[%s12435_s1 + $0xa] sm:$0x3] (!%p421_p9)  ;;  %v9813_v20 = vld [vmem:[%s12435_s1 + $0x8] sm:$0x3] (!%p421_p9) }
  0x1d   : > { %s12516_s0 = sld [smem:[#allocation15_spill]] (!%p421_p9)  ;;  %s12451_s30 = smov (!%p421_p9), 56   ;;  %v9823_v24 = vld [vmem:[%s12435_s1 + $0xc] sm:$0x3] (!%p421_p9)  ;;  %v9828_v25 = vld [vmem:[%s12435_s1 + $0xe] sm:$0x3] (!%p421_p9) }
  0x1e   : > { %v10662_v11 = vsub.s32 (!%p421_p9), %v491_v7, %v10648_v6  ;;  %s12455_s13 = smov (!%p421_p9), 64   ;;  %v9833_v29 = vld [vmem:[%s12435_s1 + $0x10] sm:$0x3] (!%p421_p9)  ;;  %s12459_s16 = smov (!%p421_p9), 127   ;;  %v9838_v32 = vld [vmem:[%s12435_s1 + $0x12] sm:$0x3] (!%p421_p9) }
  0x1f   : > { %s12470_s17 = smov (!%p421_p9), 73   ;;  %v9843_v34 = vld [vmem:[%s12435_s1 + $0x14] sm:$0x3] (!%p421_p9)  ;;  %v9848_v36 = vld [vmem:[%s12435_s1 + $0x16] sm:$0x3] (!%p421_p9)  ;;  %vm12490_vm1 = vcmask (!%p421_p9), 1043456  }
  0x20   : > { %v744_v14 = vrot.slane (!%p421_p9), %v9803_v9, %v10662_v11  ;;  %v495_v15 = vrot.slane (!%p421_p9), %v487_v10, %v10662_v11  ;;  %v868_v17 = vrot.slane (!%p421_p9), %v9808_v12, %v10662_v11  ;;  %v620_v19 = vrot.slane (!%p421_p9), %v9798_v13, %v10662_v11  ;;  %v9858_v38 = vld [vmem:[%s12435_s1 + $0x1a] sm:$0x3] (!%p421_p9)  ;;  %s12517_s15 = smov (!%p421_p9), 65   ;;  %v9853_v42 = vld [vmem:[%s12435_s1 + $0x18] sm:$0x3] (!%p421_p9)  ;;  %s12518_s2 = sld [smem:[#allocation16_spill]] (!%p421_p9) }
  0x21   : > { %s466_s23 = scalar_select %p465_p10, %s10621_s12, 1  ;;  %v1115_v22 = vrot.slane %v9818_v18, %v10662_v11  ;;  %v992_v23 = vrot.slane %v9813_v20, %v10662_v11  ;;  %v1237_v26 = vrot.slane %v9823_v24, %v10662_v11  ;;  %v1359_v27 = vrot.slane %v9828_v25, %v10662_v11  ;;  %v9863_v9 = vld [vmem:[%s12435_s1 + $0x1c] sm:$0x3] }
  0x22   : > { %745 = vrot.lane.b32.xlu1 %v744_v14, %s12453_s28  ;;  %496 = vrot.lane.b32.xlu0 %v495_v15, %s12449_s29  ;;  %s12457_s29 = smov 63   ;;  %v1481_v31 = vrot.slane %v9833_v29, %v10662_v11  ;;  %s12465_s28 = smov 121   ;;  %v1603_v33 = vrot.slane %v9838_v32, %v10662_v11  ;;  %v1727_v35 = vrot.slane %v9843_v34, %v10662_v11  ;;  %v10767_v44 = vsub.s32 4, %v10648_v6  ;;  %v9868_v32 = vld [vmem:[%s12435_s1 + $0x1e] sm:$0x3] }
  0x23   : > { %s9794_s24 = sshll.u32 %s466_s23, 1  ;;  %s12472_s23 = smov 71   ;;  %v1851_v37 = vrot.slane %v9848_v36, %v10662_v11  ;;  %v2105_v41 = vrot.slane %v9858_v38, %v10662_v11  ;;  %v10770_v46 = vsub.s32 0, %v10648_v6  ;;  %v1975_v47 = vrot.slane %v9853_v42, %v10662_v11 }
  0x24   : > { %s468_s18 = scalar_lea.vmem %s12516_s0, %s9794_s24  ;;  %vm12488_vm2 = vcmask 1040384   ;;  %vm12489_vm3 = vcmask 7168   ;;  %vm12469_vm4 = vcmask 449536   ;;  %vm624_vm5 = vcmask 457728   ;;  %s12523_s24 = smov 55  }
  0x25   : > { %v471_v21 = vld [vmem:[%s468_s18] sm:$0x3]  ;;  %s12461_s18 = smov 65   ;;  %vm12484_vm6 = vcmask 1039360   ;;  %v2217_v12 = vrot.slane %v9863_v9, %v10662_v11  ;;  %vm748_vm7 = vcmask 465920   ;;  %vm12485_vm8 = vcmask 990208  }
  0x26   : > { %477 = vst.msk [vmem:[#allocation2 + $0x4] ss:$4 sm:$0x3] %vm10673_vm0, %v471_v21  ;;  %869 = vrot.lane.b32.xlu1 %v868_v17, %s12457_s29  ;;  %621 = vrot.lane.b32.xlu0 %v620_v19, %s12451_s30  ;;  %s12476_s30 = smov 72   ;;  %s12467_s29 = smov 119   ;;  %vm872_vm9 = vcmask 515072  }
  0x27   : > { %v9859_v50 = vld [vmem:[%s12518_s2 + $0x34] sm:$0x7]  ;;  %vm900_vm10 = vcmask 531456   ;;  %vm12486_vm11 = vcmask 982016   ;;  %vm996_vm12 = vcmask 523264   ;;  %vm1607_vm13 = vcmask 973824  }
  0x28   : > { %vm652_vm14 = vcmask 588800   ;;  %vm526_vm15 = vcmask 596992   ;;  %s12525_s3 = sld [smem:[#allocation17_spill]]  ;;  %s12529_s4 = sld [smem:[#allocation18_spill]] }
  0x29   : > { %s12531_s5 = sld [smem:[#allocation19_spill]]  ;;  %s12533_s25 = smov 73  }
  0x2a   : > { %1116 = vrot.lane.b32.xlu1 %v1115_v22, %s12461_s18  ;;  %993 = vrot.lane.b32.xlu0 %v992_v23, %s12455_s13  ;;  %s12463_s13 = smov 120   ;;  %s12520_s18 = smov 63  }
  0x2b   : > { %s12538_s0 = smov 9   ;;  %s12542_s21 = smov 7  }
  0x2c   : > { %s12544_s22 = smov 1   ;;  %s12547_s7 = sld [smem:[#allocation20_spill]] }
  0x2d   : > { %v10708_v28 = vld [vmem:[#allocation2] sm:$0x77]  ;;  %v10713_v30 = vld [vmem:[#allocation2 + $0x8] sm:$0x77] }
  0x2e   : > { %1238 = vrot.lane.b32.xlu0 %v1237_v26, %s12472_s23  ;;  %1360 = vrot.lane.b32.xlu1 %v1359_v27, %s12476_s30  ;;  %v2093_v39 = vrot.slane %v10708_v28, 4  ;;  %v2094_v40 = vrot.slane %v10713_v30, 4 }
  0x30   : > { %v2096_v43 = vsel %vm12490_vm1, %v2093_v39, %v2094_v40  ;;  %v2329_v40 = vrot.slane %v9868_v32, %v10662_v11 }
  0x31   : > { %v2107_v45 = vmul.f32 %v2105_v41, %v2096_v43  ;;  %v9864_v43 = vld [vmem:[%s12518_s2 + $0x38] sm:$0x7] }
  0x32   : > { %2201 = vrot.lane.b32.xlu0 %v10708_v28, %s12459_s16  ;;  %2203 = vrot.lane.b32.xlu1 %v10713_v30, %s12459_s16  ;;  %s12519_s16 = smov 127  }
  0x33   : > { %v2118_v48 = vrot.slane %v2107_v45, %v10767_v44  ;;  %v2114_v49 = vrot.slane %v2107_v45, %v10770_v46 }
  0x35   : > { %9860 = vmatprep.subr.msk.mxu0 %vm12488_vm2, %v2118_v48 }
  0x36   : > { %1482 = vrot.lane.b32.xlu0 %v1481_v31, %s12470_s17  ;;  %2315 = vrot.lane.b32.xlu1 %v10713_v30, %s12465_s28 }
  0x37   : > { %9861 = vmatpush1.msk.msra.mxu0 %vm12488_vm2, %v2114_v49 }
  0x38   : > { %9862 = vmatmul.mubr.msk.f32.vlgmr.msra.gmra.mrb[0].mxu0 %vm12489_vm3, %v9859_v50 }
  0x39   : > { %2302 = vmatprep.mubr.f32.mxu0 %v10495_v8 }
  0x3a   : > { %2313 = vrot.lane.b32.xlu0 %v10708_v28, %s12465_s28  ;;  %2427 = vrot.lane.b32.xlu1 %v10713_v30, %s12463_s13 }
  0x3e   : > { %1604 = vrot.lane.b32.xlu0 %v1603_v33, %s12467_s29  ;;  %2539 = vrot.lane.b32.xlu1 %v10713_v30, %s12467_s29 }
  0x42   : > { %2425 = vrot.lane.b32.xlu0 %v10708_v28, %s12463_s13  ;;  %2651 = vrot.lane.b32.xlu1 %v10713_v30, %s12470_s17 }
  0x46   : > { %1728 = vrot.lane.b32.xlu0 %v1727_v35, %s12463_s13  ;;  %2763 = vrot.lane.b32.xlu1 %v10713_v30, %s12476_s30  ;;  %s12478_s13 = smov 8  }
  0x4a   : > { %2537 = vrot.lane.b32.xlu0 %v10708_v28, %s12467_s29  ;;  %2873 = vrot.lane.b32.xlu1 %v10708_v28, %s12472_s23  ;;  %s12522_s29 = smov 57  }
  0x4e   : > { %1852 = vrot.lane.b32.xlu0 %v1851_v37, %s12465_s28  ;;  %2987 = vrot.lane.b32.xlu1 %v10713_v30, %s12517_s15  ;;  %s12521_s28 = smov 64  }
  0x52   : > { %2649 = vrot.lane.b32.xlu0 %v10708_v28, %s12470_s17 }
  0x56   : > { %1976 = vrot.lane.b32.xlu0 %v1975_v47, %s12519_s16 }
  0x94   : > { %v746_v51 = vpop.permute.xlu1 %745  ;;  %v497_v52 = vpop.permute.xlu0 %496 }
  0x95   : > { %v498_v53 = vrot.slane %v497_v52, 4  ;;  %v747_v4 = vrot.slane %v746_v51, 4 }
  0x97   : > { %v504_v54 = vmul.f32 %v498_v53, %v10713_v30  ;;  %v500_v63 = vsel %vm12469_vm4, %v498_v53, %v497_v52  ;;  %v753_v14 = vmul.f32 %v747_v4, %v10713_v30  ;;  %v749_v41 = vsel %vm748_vm7, %v747_v4, %v746_v51 }
  0x98   : > { %v10786_v55 = vpop.permute.xlu1 %869  ;;  %v622_v56 = vpop.permute.xlu0 %621  ;;  %v503_v5 = vmul.f32 %v500_v63, %v10708_v28  ;;  %v752_v51 = vmul.f32 %v749_v41, %v10708_v28  ;;  %vm776_vm4 = vcmask 580608  }
  0x99   : > { %v519_v57 = vrot.slane %v504_v54, %v10770_v46  ;;  %v623_v58 = vrot.slane %v622_v56, 4  ;;  %v871_v21 = vrot.slane %v10786_v55, 4  ;;  %v769_v26 = vrot.slane %v753_v14, %v10770_v46 }
  0x9a   : > { %v515_v15 = vrot.slane %v503_v5, %v10767_v44  ;;  %v511_v27 = vrot.slane %v503_v5, %v10770_v46  ;;  %v765_v4 = vrot.slane %v752_v51, %v10767_v44 }
  0x9b   : > { %524 = vrot.lane.b32.xlu0 %v519_v57, %s12470_s17  ;;  %v629_v59 = vmul.f32 %v623_v58, %v10713_v30  ;;  %v625_v19 = vsel %vm624_vm5, %v623_v58, %v622_v56  ;;  %v877_v37 = vmul.f32 %v871_v21, %v10713_v30  ;;  %v9873_v57 = vld [vmem:[%s12435_s1 + $0x20] sm:$0x3]  ;;  %v873_v9 = vsel %vm872_vm9, %v871_v21, %v10786_v55 }
  0x9c   : > { %v10791_v60 = vpop.permute.xlu1 %1116  ;;  %v10793_v61 = vpop.permute.xlu0 %993  ;;  %v628_v25 = vmul.f32 %v625_v19, %v10708_v28 }
  0x9d   : > { %v1118_v62 = vrot.slane %v10791_v60, 4  ;;  %v645_v1 = vrot.slane %v629_v59, %v10770_v46  ;;  %v995_v31 = vrot.slane %v10793_v61, 4  ;;  %v893_v52 = vrot.slane %v877_v37, %v10770_v46 }
  0x9e   : > { %v641_v38 = vrot.slane %v628_v25, %v10767_v44  ;;  %v637_v53 = vrot.slane %v628_v25, %v10770_v46 }
  0x9f   : > { %v1123_v0 = vmul.f32 %v1118_v62, %v10713_v30  ;;  %2761 = vrot.lane.b32.xlu0 %v10708_v28, %s12476_s30  ;;  %v1001_v42 = vmul.f32 %v995_v31, %v10713_v30 }
  0xa0   : > { %v10803_v2 = vpop.permute.xlu0 %1238  ;;  %v10805_v3 = vpop.permute.xlu1 %1360 }
  0xa1   : > { %v1139_v7 = vrot.slane %v1123_v0, %v10770_v46  ;;  %v1240_v45 = vrot.slane %v10803_v2, 4  ;;  %v1017_v56 = vrot.slane %v1001_v42, %v10770_v46 }
  0xa3   : > { %1144 = vrot.lane.b32.xlu1 %v1139_v7, %s12520_s18  ;;  %650 = vrot.lane.b32.xlu0 %v645_v1, %s12476_s30  ;;  %v1245_v58 = vmul.f32 %v1240_v45, %v10713_v30  ;;  %v2441_v7 = vrot.slane %v9873_v57, %v10662_v11 }
  0xa4   : > { %v2202_v10 = vpop.permute.xlu0 %2201  ;;  %v2204_v13 = vpop.permute.xlu1 %2203 }
  0xa5   : > { %v2205_v17 = vrot.slane %v2202_v10, 4  ;;  %v2206_v18 = vrot.slane %v2204_v13, 4  ;;  %v1119_v10 = vsel %vm900_vm10, %v1118_v62, %v10791_v60  ;;  %v876_v60 = vmul.f32 %v873_v9, %v10708_v28 }
  0xa6   : > { %v1122_v62 = vmul.f32 %v1119_v10, %v10708_v28 }
  0xa7   : > { %2875 = vrot.lane.b32.xlu0 %v10713_v30, %s12472_s23  ;;  %522 = vrot.lane.b32.xlu1 %v515_v15, %s12470_s17  ;;  %v2207_v20 = vsel %vm12490_vm1, %v2205_v17, %v2206_v18  ;;  %v761_v18 = vrot.slane %v752_v51, %v10770_v46  ;;  %v885_v41 = vrot.slane %v876_v60, %v10770_v46 }
  0xa8   : > { %v10823_v22 = vpop.permute.xlu0 %1482  ;;  %v2208_v23 = vsel %vm12484_vm6, %v2207_v20, %v2204_v13  ;;  %v2316_v24 = vpop.permute.xlu1 %2315  ;;  %v1261_v13 = vrot.slane %v1245_v58, %v10770_v46  ;;  %v9878_v20 = vld [vmem:[%s12435_s1 + $0x22] sm:$0x3] }
  0xa9   : > { %v2219_v29 = vmul.f32 %v2217_v12, %v2208_v23  ;;  %v2318_v33 = vrot.slane %v2316_v24, 4  ;;  %v9869_v12 = vld [vmem:[%s12518_s2 + $0x3c] sm:$0x7]  ;;  %v2553_v32 = vrot.slane %v9878_v20, %v10662_v11 }
  0xab   : > { %774 = vrot.lane.b32.xlu0 %v769_v26, %s12472_s23  ;;  %520 = vrot.lane.b32.xlu1 %v511_v27, %s12470_s17  ;;  %v2226_v34 = vrot.slane %v2219_v29, %v10770_v46  ;;  %v2230_v35 = vrot.slane %v2219_v29, %v10767_v44  ;;  %v1135_v26 = vrot.slane %v1122_v62, %v10767_v44  ;;  %s12474_s17 = smov 9  }
  0xac   : > { %v2314_v36 = vpop.permute.xlu0 %2313  ;;  %v2428_v50 = vpop.permute.xlu1 %2427  ;;  %v889_v27 = vrot.slane %v876_v60, %v10767_v44 }
  0xad   : > { %v2317_v39 = vrot.slane %v2314_v36, 4  ;;  %9865 = vmatprep.subr.msk.mxu0 %vm12488_vm2, %v2230_v35  ;;  %v2430_v0 = vrot.slane %v2428_v50, 4  ;;  %v1484_v35 = vrot.slane %v10823_v22, 4  ;;  %v1362_v36 = vrot.slane %v10805_v3, 4 }
  0xae   : > { %9866 = vmatpush1.msk.msra.mxu0 %vm12488_vm2, %v2226_v34  ;;  %v9874_v34 = vld [vmem:[%s12518_s2 + $0x40] sm:$0x7] }
  0xaf   : > { %2985 = vrot.lane.b32.xlu0 %v10708_v28, %s12517_s15  ;;  %648 = vrot.lane.b32.xlu1 %v641_v38, %s12476_s30  ;;  %v2319_v47 = vsel %vm12490_vm1, %v2317_v39, %v2318_v33  ;;  %v997_v33 = vsel %vm996_vm12, %v995_v31, %v10793_v61 }
  0xb0   : > { %v2320_v48 = vsel %vm12485_vm8, %v2319_v47, %v2316_v24  ;;  %v10854_v49 = vpop.permute.xlu0 %1604  ;;  %9867 = vmatmul.mubr.msk.f32.vlgmr.msra.gmra.mrb[0].mxu0 %vm12489_vm3, %v9864_v43  ;;  %v2540_v17 = vpop.permute.xlu1 %2539  ;;  %v1000_v39 = vmul.f32 %v997_v33, %v10708_v28  ;;  %v9883_v43 = vld [vmem:[%s12435_s1 + $0x24] sm:$0x3]  ;;  %v1489_v47 = vmul.f32 %v1484_v35, %v10713_v30 }
  0xb1   : > { %v2331_v54 = vmul.f32 %v2329_v40, %v2320_v48  ;;  %2414 = vmatprep.mubr.f32.mxu0 %v10495_v8  ;;  %v2542_v24 = vrot.slane %v2540_v17, 4  ;;  %v1131_v40 = vrot.slane %v1122_v62, %v10770_v46  ;;  %v1363_v48 = vsel %vm652_vm14, %v1362_v36, %v10805_v3 }
  0xb2   : > { %v2665_v57 = vrot.slane %v9883_v43, %v10662_v11  ;;  %v1366_v58 = vmul.f32 %v1363_v48, %v10708_v28  ;;  %v1367_v3 = vmul.f32 %v1362_v36, %v10713_v30  ;;  %v480_v48 = vld [vmem:[%s12525_s3] sm:$0x7]  ;;  %s12532_s3 = smov 71  }
  0xb3   : > { %898 = vrot.lane.b32.xlu0 %v893_v52, %s12517_s15  ;;  %646 = vrot.lane.b32.xlu1 %v637_v53, %s12476_s30  ;;  %v2338_v59 = vrot.slane %v2331_v54, %v10770_v46  ;;  %v2342_v63 = vrot.slane %v2331_v54, %v10767_v44  ;;  %v1013_v54 = vrot.slane %v1000_v39, %v10767_v44  ;;  %s12480_s30 = smov 1  }
  0xb4   : > { %v2426_v1 = vpop.permute.xlu0 %2425  ;;  %v2652_v31 = vpop.permute.xlu1 %2651  ;;  %v1383_v9 = vrot.slane %v1367_v3, %v10770_v46  ;;  %v1375_v60 = vrot.slane %v1366_v58, %v10770_v46 }
  0xb5   : > { %9870 = vmatprep.subr.msk.mxu0 %vm12488_vm2, %v2342_v63  ;;  %v2429_v5 = vrot.slane %v2426_v1, 4  ;;  %v1505_v63 = vrot.slane %v1489_v47, %v10770_v46 }
  0xb6   : > { %9871 = vmatpush1.msk.msra.mxu0 %vm12488_vm2, %v2338_v59  ;;  %v9879_v59 = vld [vmem:[%s12518_s2 + $0x44] sm:$0x7] }
  0xb7   : > { %1022 = vrot.lane.b32.xlu0 %v1017_v56, %s12521_s28  ;;  %772 = vrot.lane.b32.xlu1 %v765_v4, %s12472_s23  ;;  %v2431_v14 = vsel %vm12490_vm1, %v2429_v5, %v2430_v0  ;;  %v1009_v4 = vrot.slane %v1000_v39, %v10770_v46 }
  0xb8   : > { %v2432_v55 = vsel %vm12486_vm11, %v2431_v14, %v2428_v50  ;;  %v10891_v15 = vpop.permute.xlu0 %1728  ;;  %9872 = vmatmul.mubr.msk.f32.vlgmr.msra.gmra.mrb[0].mxu0 %vm12489_vm3, %v9869_v12  ;;  %v2654_v50 = vrot.slane %v2652_v31, 4  ;;  %v9884_v14 = vld [vmem:[%s12518_s2 + $0x48] sm:$0x7] }
  0xb9   : > { %v2443_v19 = vmul.f32 %v2441_v7, %v2432_v55  ;;  %2526 = vmatprep.mubr.f32.mxu0 %v10495_v8  ;;  %v1379_v7 = vrot.slane %v1366_v58, %v10767_v44  ;;  %v1606_v55 = vrot.slane %v10854_v49, 4  ;;  %v1730_v20 = vrot.slane %v10891_v15, 4  ;;  %v9888_v58 = vld [vmem:[%s12435_s1 + $0x26] sm:$0x3] }
  0xbb   : > { %1266 = vrot.lane.b32.xlu0 %v1261_v13, %s12522_s29  ;;  %770 = vrot.lane.b32.xlu1 %v761_v18, %s12472_s23  ;;  %v2450_v21 = vrot.slane %v2443_v19, %v10770_v46  ;;  %v2454_v23 = vrot.slane %v2443_v19, %v10767_v44  ;;  %v1241_v13 = vsel %vm776_vm4, %v1240_v45, %v10803_v2  ;;  %s12524_s23 = smov 56  }
  0xbc   : > { %v2538_v25 = vpop.permute.xlu0 %2537  ;;  %v1608_v2 = vsel %vm1607_vm13, %v1606_v55, %v10854_v49  ;;  %v1612_v19 = vmul.f32 %v1606_v55, %v10713_v30  ;;  %v9889_v55 = vld [vmem:[%s12518_s2 + $0x4c] sm:$0x7] }
  0xbd   : > { %v2541_v29 = vrot.slane %v2538_v25, 4  ;;  %9875 = vmatprep.subr.msk.mxu0 %vm12488_vm2, %v2454_v23  ;;  %v1611_v62 = vmul.f32 %v1608_v2, %v10708_v28  ;;  %v1736_v25 = vmul.f32 %v1730_v20, %v10713_v30 }
  0xbe   : > { %9876 = vmatpush1.msk.msra.mxu0 %vm12488_vm2, %v2450_v21  ;;  %v1485_v21 = vsel %vm526_vm15, %v1484_v35, %v10823_v22  ;;  %v1732_v35 = vsel %vm12486_vm11, %v1730_v20, %v10891_v15  ;;  %v505_v20 = vld [vmem:[%s12518_s2] sm:$0x7] }
  0xbf   : > { %1142 = vrot.lane.b32.xlu0 %v1135_v26, %s12520_s18  ;;  %896 = vrot.lane.b32.xlu1 %v889_v27, %s12517_s15  ;;  %v2543_v37 = vsel %vm12490_vm1, %v2541_v29, %v2542_v24  ;;  %v1624_v49 = vrot.slane %v1611_v62, %v10767_v44  ;;  %v1620_v23 = vrot.slane %v1611_v62, %v10770_v46 }
  0xc0   : > { %v10922_v38 = vpop.permute.xlu0 %1852  ;;  %v2544_v61 = vsel %vm1607_vm13, %v2543_v37, %v2540_v17  ;;  %9877 = vmatmul.mubr.msk.f32.vlgmr.msra.gmra.mrb[0].mxu0 %vm12489_vm3, %v9874_v34  ;;  %v1244_v17 = vmul.f32 %v1241_v13, %v10708_v28  ;;  %v1628_v24 = vrot.slane %v1612_v19, %v10770_v46  ;;  %v1488_v27 = vmul.f32 %v1485_v21, %v10708_v28 }
  0xc1   : > { %v2555_v42 = vmul.f32 %v2553_v32, %v2544_v61  ;;  %2638 = vmatprep.mubr.f32.mxu0 %v10495_v8  ;;  %v1854_v26 = vrot.slane %v10922_v38, 4  ;;  %v1752_v22 = vrot.slane %v1736_v25, %v10770_v46  ;;  %v1735_v37 = vmul.f32 %v1732_v35, %v10708_v28 }
  0xc2   : > { %v1257_v45 = vrot.slane %v1244_v17, %v10767_v44  ;;  %v1253_v18 = vrot.slane %v1244_v17, %v10770_v46  ;;  %v1501_v32 = vrot.slane %v1488_v27, %v10767_v44  ;;  %v1497_v34 = vrot.slane %v1488_v27, %v10770_v46 }
  0xc3   : > { %1140 = vrot.lane.b32.xlu0 %v1131_v40, %s12520_s18  ;;  %894 = vrot.lane.b32.xlu1 %v885_v41, %s12517_s15  ;;  %v2562_v51 = vrot.slane %v2555_v42, %v10770_v46  ;;  %v2566_v52 = vrot.slane %v2555_v42, %v10767_v44  ;;  %v1856_v29 = vsel %vm12485_vm8, %v1854_v26, %v10922_v38  ;;  %vm1635_vm8 = vcmask 72704  }
  0xc4   : > { %v2650_v53 = vpop.permute.xlu0 %2649  ;;  %v1859_v33 = vmul.f32 %v1856_v29, %v10708_v28  ;;  %v1748_v15 = vrot.slane %v1735_v37, %v10767_v44  ;;  %v1744_v40 = vrot.slane %v1735_v37, %v10770_v46  ;;  %v1860_v42 = vmul.f32 %v1854_v26, %v10713_v30  ;;  %v9894_v29 = vld [vmem:[%s12518_s2 + $0x50] sm:$0x7] }
  0xc5   : > { %v2653_v56 = vrot.slane %v2650_v53, 4  ;;  %9880 = vmatprep.subr.msk.mxu0 %vm12488_vm2, %v2566_v52 }
  0xc6   : > { %9881 = vmatpush1.msk.msra.mxu0 %vm12488_vm2, %v2562_v51  ;;  %v1872_v36 = vrot.slane %v1859_v33, %v10767_v44  ;;  %v1868_v61 = vrot.slane %v1859_v33, %v10770_v46  ;;  %v1876_v43 = vrot.slane %v1860_v42, %v10770_v46  ;;  %v10513_v51 = vmov 0  }
  0xc7   : > { %3099 = vrot.lane.b32.xlu0 %v10713_v30, %s12521_s28  ;;  %1020 = vrot.lane.b32.xlu1 %v1013_v54, %s12521_s28  ;;  %v2655_v0 = vsel %vm12490_vm1, %v2653_v56, %v2654_v50 }
  0xc8   : > { %v2656_v1 = vsel %vm526_vm15, %v2655_v0, %v2652_v31  ;;  %9882 = vmatmul.mubr.msk.f32.vlgmr.msra.gmra.mrb[0].mxu0 %vm12489_vm3, %v9879_v59  ;;  %v1977_v38 = vpop.permute.xlu0 %1976  ;;  %10422 = vset.pattern.permute.xlu0 %v10513_v51 }
  0xc9   : > { %v2667_v5 = vmul.f32 %v2665_v57, %v2656_v1  ;;  %2750 = vmatprep.mubr.f32.mxu0 %v10495_v8  ;;  %v1978_v31 = vrot.slane %v1977_v38, 4  ;;  %10423 = vset.pattern.permute.xlu1 %v10513_v51 }
  0xcb   : > { %1510 = vrot.lane.b32.xlu0 %v1505_v63, %s12523_s24  ;;  %1018 = vrot.lane.b32.xlu1 %v1009_v4, %s12521_s28  ;;  %v2674_v10 = vrot.slane %v2667_v5, %v10770_v46  ;;  %v2678_v12 = vrot.slane %v2667_v5, %v10767_v44  ;;  %v1984_v39 = vmul.f32 %v1978_v31, %v10713_v30 }
  0xcc   : > { %v1980_v47 = vsel %vm12484_vm6, %v1978_v31, %v1977_v38  ;;  %vm12526_vm6 = vcmask 449536  }
  0xcd   : > { %9885 = vmatprep.subr.msk.mxu0 %vm12488_vm2, %v2678_v12  ;;  %v2000_v41 = vrot.slane %v1984_v39, %v10770_v46  ;;  %v1983_v50 = vmul.f32 %v1980_v47, %v10708_v28  ;;  %v9899_v47 = vld [vmem:[%s12518_s2 + $0x54] sm:$0x7]  ;;  %vm12527_vm11 = vmmov %vm12526_vm6 }
  0xce   : > { %9886 = vmatpush1.msk.msra.mxu0 %vm12488_vm2, %v2674_v10 }
  0xcf   : > { %1386 = vrot.lane.b32.xlu0 %v1379_v7, %s12524_s23  ;;  %1388 = vrot.lane.b32.xlu1 %v1383_v9, %s12524_s23  ;;  %v1996_v52 = vrot.slane %v1983_v50, %v10767_v44  ;;  %v1992_v53 = vrot.slane %v1983_v50, %v10770_v46  ;;  %v9893_v9 = vld [vmem:[%s12435_s1 + $0x28] sm:$0x3] }
  0xd0   : > { %9887 = vmatmul.mubr.msk.f32.vlgmr.msra.gmra.mrb[0].mxu0 %vm12489_vm3, %v9884_v14 }
  0xd1   : > { %2862 = vmatprep.mubr.f32.mxu0 %v10495_v8 }
  0xd3   : > { %1384 = vrot.lane.b32.xlu0 %v1375_v60, %s12524_s23  ;;  %3097 = vrot.lane.b32.xlu1 %v10708_v28, %s12521_s28  ;;  %v2889_v60 = vrot.slane %v9893_v9, %v10662_v11 }
  0xd7   : > { %3209 = vrot.lane.b32.xlu0 %v10708_v28, %s12520_s18  ;;  %1264 = vrot.lane.b32.xlu1 %v1257_v45, %s12522_s29 }
  0xdb   : > { %3323 = vrot.lane.b32.xlu0 %v10713_v30, %s12522_s29  ;;  %1262 = vrot.lane.b32.xlu1 %v1253_v18, %s12522_s29 }
  0xdf   : > { %1631 = vrot.lane.b32.xlu0 %v1624_v49, %s12474_s17  ;;  %3211 = vrot.lane.b32.xlu1 %v10713_v30, %s12520_s18 }
  0xe3   : > { %1629 = vrot.lane.b32.xlu0 %v1620_v23, %s12474_s17  ;;  %1633 = vrot.lane.b32.xlu1 %v1628_v24, %s12474_s17  ;;  %s12482_s17 = smov 7   ;;  %v9898_v24 = vld [vmem:[%s12435_s1 + $0x2a] sm:$0x3] }
  0xe4   : > { %v3001_v35 = vrot.slane %v9898_v24, %v10662_v11 }
  0xe7   : > { %1508 = vrot.lane.b32.xlu1 %v1501_v32, %s12523_s24  ;;  %1757 = vrot.lane.b32.xlu0 %v1752_v22, %s12478_s13 }
  0xeb   : > { %1506 = vrot.lane.b32.xlu1 %v1497_v34, %s12523_s24  ;;  %3433 = vrot.lane.b32.xlu0 %v10708_v28, %s12524_s23 }
  0xef   : > { %3321 = vrot.lane.b32.xlu1 %v10708_v28, %s12522_s29  ;;  %1879 = vrot.lane.b32.xlu0 %v1872_v36, %s12482_s17 }
  0xf3   : > { %1755 = vrot.lane.b32.xlu1 %v1748_v15, %s12478_s13  ;;  %1877 = vrot.lane.b32.xlu0 %v1868_v61, %s12482_s17  ;;  %v9799_v15 = vld [vmem:[%s12518_s2 + $0x4] sm:$0x7] }
  0xf7   : > { %1753 = vrot.lane.b32.xlu1 %v1744_v40, %s12478_s13  ;;  %3547 = vrot.lane.b32.xlu0 %v10713_v30, %s12523_s24 }
  0xfb   : > { %3435 = vrot.lane.b32.xlu1 %v10713_v30, %s12524_s23  ;;  %2005 = vrot.lane.b32.xlu0 %v2000_v41, %s12480_s30  ;;  %v2764_v30 = vpop.permute.xlu1 %2763 }
  0xfc   : > { %v2766_v3 = vrot.slane %v2764_v30, 4 }
  0xff   : > { %1881 = vrot.lane.b32.xlu1 %v1876_v43, %s12482_s17  ;;  %483 = vperm.xlu0 %10422, %v480_v48   ;;  %v2874_v54 = vpop.permute.xlu1 %2873  ;;  %s12535_s17 = smov 119  }
 0x100   : > { %v2877_v17 = vrot.slane %v2874_v54, 4 }
 0x103   : > { %3545 = vrot.lane.b32.xlu1 %v10708_v28, %s12523_s24  ;;  %v2988_v57 = vpop.permute.xlu1 %2987  ;;  %v2777_v28 = vrot.slane %v9888_v58, %v10662_v11 }
 0x104   : > { %v2990_v32 = vrot.slane %v2988_v57, 4 }
 0x107   : > { %2003 = vrot.lane.b32.xlu1 %v1996_v52, %s12480_s30 }
 0x10b   : > { %2001 = vrot.lane.b32.xlu1 %v1992_v53, %s12480_s30  ;;  %s12530_s30 = smov 72  }
 0x10d   : > { %v525_v56 = vpop.permute.xlu0 %524 }
 0x111   : > { %v2762_v59 = vpop.permute.xlu0 %2761 }
 0x112   : > { %v2765_v63 = vrot.slane %v2762_v59, 4  ;;  %v9809_v59 = vld [vmem:[%s12518_s2 + $0xc] sm:$0x7] }
 0x114   : > { %v2767_v0 = vsel %vm12490_vm1, %v2765_v63, %v2766_v3 }
 0x115   : > { %v2768_v1 = vsel %vm652_vm14, %v2767_v0, %v2764_v30  ;;  %v11064_v4 = vpop.permute.xlu1 %1144  ;;  %v651_v5 = vpop.permute.xlu0 %650  ;;  %v9804_v30 = vld [vmem:[%s12518_s2 + $0x8] sm:$0x7] }
 0x116   : > { %v2779_v7 = vmul.f32 %v2777_v28, %v2768_v1 }
 0x118   : > { %v2786_v10 = vrot.slane %v2779_v7, %v10770_v46  ;;  %v2790_v12 = vrot.slane %v2779_v7, %v10767_v44  ;;  %v9814_v7 = vld [vmem:[%s12518_s2 + $0x10] sm:$0x7] }
 0x119   : > { %v2876_v13 = vpop.permute.xlu0 %2875  ;;  %v523_v14 = vpop.permute.xlu1 %522 }
 0x11a   : > { %v2878_v2 = vrot.slane %v2876_v13, 4  ;;  %9890 = vmatprep.subr.msk.mxu0 %vm12488_vm2, %v2790_v12  ;;  %v528_v45 = vsel %vm526_vm15, %v523_v14, %v525_v56 }
 0x11b   : > { %9795 = vmatprep.subr.msk.mxu1 %vm12488_vm2, %v528_v45  ;;  %9891 = vmatpush1.msk.msra.mxu0 %vm12488_vm2, %v2786_v10 }
 0x11c   : > { %v2879_v62 = vsel %vm12490_vm1, %v2877_v17, %v2878_v2  ;;  %9892 = vmatmul.mubr.msk.f32.vlgmr.msra.gmra.mrb[0].mxu0 %vm12489_vm3, %v9889_v55  ;;  %v9903_v55 = vld [vmem:[%s12435_s1 + $0x2c] sm:$0x3] }
 0x11d   : > { %v2880_v18 = vsel %vm776_vm4, %v2879_v62, %v2876_v13  ;;  %v775_v19 = vpop.permute.xlu0 %774  ;;  %v521_v49 = vpop.permute.xlu1 %520  ;;  %2974 = vmatprep.mubr.f32.mxu0 %v10495_v8  ;;  %v3113_v62 = vrot.slane %v9903_v55, %v10662_v11 }
 0x11e   : > { %v2891_v21 = vmul.f32 %v2889_v60, %v2880_v18  ;;  %v527_v23 = vsel %vm526_vm15, %v521_v49, %v523_v14 }
 0x11f   : > { %9796 = vmatpush1.msk.msra.mxu1 %vm12488_vm2, %v527_v23 }
 0x120   : > { %v2898_v25 = vrot.slane %v2891_v21, %v10770_v46  ;;  %v2902_v26 = vrot.slane %v2891_v21, %v10767_v44  ;;  %9797 = vmatmul.mubr.msk.f32.vlgmr.msra.gmra.mrb[0].mxu1 %vm12489_vm3, %v505_v20 }
 0x121   : > { %v2986_v27 = vpop.permute.xlu0 %2985  ;;  %v649_v22 = vpop.permute.xlu1 %648  ;;  %726 = vmatprep.mubr.f32.mxu1 %v10495_v8 }
 0x122   : > { %v2989_v33 = vrot.slane %v2986_v27, 4  ;;  %9895 = vmatprep.subr.msk.mxu0 %vm12488_vm2, %v2902_v26  ;;  %v654_v34 = vsel %vm652_vm14, %v649_v22, %v651_v5 }
 0x123   : > { %9800 = vmatprep.subr.msk.mxu1 %vm12488_vm2, %v654_v34  ;;  %9896 = vmatpush1.msk.msra.mxu0 %vm12488_vm2, %v2898_v25  ;;  %v9904_v34 = vld [vmem:[%s12518_s2 + $0x58] sm:$0x7] }
 0x124   : > { %v2991_v36 = vsel %vm12490_vm1, %v2989_v33, %v2990_v32  ;;  %9897 = vmatmul.mubr.msk.f32.vlgmr.msra.gmra.mrb[0].mxu0 %vm12489_vm3, %v9894_v29  ;;  %v9908_v33 = vld [vmem:[%s12435_s1 + $0x2e] sm:$0x3] }
 0x125   : > { %v2992_v37 = vsel %vm900_vm10, %v2991_v36, %v2988_v57  ;;  %v899_v38 = vpop.permute.xlu0 %898  ;;  %v647_v61 = vpop.permute.xlu1 %646  ;;  %3086 = vmatprep.mubr.f32.mxu0 %v10495_v8 }
 0x126   : > { %v653_v31 = vsel %vm652_vm14, %v647_v61, %v649_v22  ;;  %v3003_v39 = vmul.f32 %v3001_v35, %v2992_v37  ;;  %v9824_v22 = vld [vmem:[%s12518_s2 + $0x18] sm:$0x7]  ;;  %v3225_v61 = vrot.slane %v9908_v33, %v10662_v11 }
 0x127   : > { %9801 = vmatpush1.msk.msra.mxu1 %vm12488_vm2, %v653_v31 }
 0x128   : > { %9802 = vmatmul.mubr.msk.f32.vlgmr.msra.gmra.mrb[0].mxu1 %vm12489_vm3, %v9799_v15  ;;  %v3010_v40 = vrot.slane %v3003_v39, %v10770_v46  ;;  %v3014_v41 = vrot.slane %v3003_v39, %v10767_v44 }
 0x129   : > { %v1023_v42 = vpop.permute.xlu0 %1022  ;;  %v773_v43 = vpop.permute.xlu1 %772  ;;  %850 = vmatprep.mubr.f32.mxu1 %v10495_v8 }
 0x12a   : > { %9900 = vmatprep.subr.msk.mxu0 %vm12488_vm2, %v3014_v41  ;;  %v778_v48 = vsel %vm776_vm4, %v773_v43, %v775_v19  ;;  %v9829_v41 = vld [vmem:[%s12518_s2 + $0x1c] sm:$0x7] }
 0x12b   : > { %9805 = vmatprep.subr.msk.mxu1 %vm12488_vm2, %v778_v48  ;;  %9901 = vmatpush1.msk.msra.mxu0 %vm12488_vm2, %v3010_v40 }
 0x12c   : > { %9902 = vmatmul.mubr.msk.f32.vlgmr.msra.gmra.mrb[0].mxu0 %vm12489_vm3, %v9899_v47 }
 0x12d   : > { %v1267_v50 = vpop.permute.xlu0 %1266  ;;  %v771_v51 = vpop.permute.xlu1 %770  ;;  %3198 = vmatprep.mubr.f32.mxu0 %v10495_v8 }
 0x12e   : > { %v777_v52 = vsel %vm776_vm4, %v771_v51, %v773_v43  ;;  %v9909_v51 = vld [vmem:[%s12518_s2 + $0x5c] sm:$0x7] }
 0x12f   : > { %9806 = vmatpush1.msk.msra.mxu1 %vm12488_vm2, %v777_v52 }
 0x130   : > { %9807 = vmatmul.mubr.msk.f32.vlgmr.msra.gmra.mrb[0].mxu1 %vm12489_vm3, %v9804_v30 }
 0x131   : > { %v1143_v53 = vpop.permute.xlu0 %1142  ;;  %v897_v54 = vpop.permute.xlu1 %896  ;;  %974 = vmatprep.mubr.f32.mxu1 %v10495_v8 }
 0x132   : > { %v902_v56 = vsel %vm900_vm10, %v897_v54, %v899_v38  ;;  %v1147_v10 = vsel %vm872_vm9, %v1143_v53, %v11064_v4  ;;  %v9819_v4 = vld [vmem:[%s12518_s2 + $0x14] sm:$0x7] }
 0x133   : > { %9810 = vmatprep.subr.msk.mxu1 %vm12488_vm2, %v902_v56 }
 0x135   : > { %v1141_v57 = vpop.permute.xlu0 %1140  ;;  %v895_v58 = vpop.permute.xlu1 %894 }
 0x136   : > { %v901_v3 = vsel %vm900_vm10, %v895_v58, %v897_v54  ;;  %v1146_v12 = vsel %vm872_vm9, %v1141_v57, %v1143_v53  ;;  %v9834_v54 = vld [vmem:[%s12518_s2 + $0x20] sm:$0x7]  ;;  %v9913_v58 = vld [vmem:[%s12435_s1 + $0x30] sm:$0x3] }
 0x137   : > { %9811 = vmatpush1.msk.msra.mxu1 %vm12488_vm2, %v901_v3 }
 0x138   : > { %9812 = vmatmul.mubr.msk.f32.vlgmr.msra.gmra.mrb[0].mxu1 %vm12489_vm3, %v9809_v59 }
 0x139   : > { %v3100_v63 = vpop.permute.xlu0 %3099  ;;  %v1021_v28 = vpop.permute.xlu1 %1020  ;;  %1097 = vmatprep.mubr.f32.mxu1 %v10495_v8 }
 0x13a   : > { %v1025_v0 = vsel %vm996_vm12, %v1021_v28, %v1023_v42  ;;  %v3102_v17 = vrot.slane %v3100_v63, 4 }
 0x13b   : > { %9815 = vmatprep.subr.msk.mxu1 %vm12488_vm2, %v1025_v0 }
 0x13d   : > { %v11143_v1 = vpop.permute.xlu0 %1510  ;;  %v1019_v5 = vpop.permute.xlu1 %1018 }
 0x13e   : > { %v1024_v9 = vsel %vm996_vm12, %v1019_v5, %v1021_v28 }
 0x13f   : > { %9816 = vmatpush1.msk.msra.mxu1 %vm12488_vm2, %v1024_v9 }
 0x140   : > { %9817 = vmatmul.mubr.msk.f32.vlgmr.msra.gmra.mrb[0].mxu1 %vm12489_vm3, %v9814_v7  ;;  %9820 = vmatprep.subr.msk.mxu1 %vm12488_vm2, %v1147_v10  ;;  %v9839_v10 = vld [vmem:[%s12518_s2 + $0x24] sm:$0x7] }
 0x141   : > { %v1387_v13 = vpop.permute.xlu0 %1386  ;;  %9821 = vmatpush1.msk.msra.mxu1 %vm12488_vm2, %v1146_v12  ;;  %v1389_v14 = vpop.permute.xlu1 %1388  ;;  %1219 = vmatprep.mubr.f32.mxu1 %v10495_v8 }
 0x142   : > { %v1391_v32 = vsel %vm624_vm5, %v1387_v13, %v1389_v14 }
 0x145   : > { %v1385_v60 = vpop.permute.xlu0 %1384  ;;  %v3098_v2 = vpop.permute.xlu1 %3097 }
 0x146   : > { %v3101_v45 = vrot.slane %v3098_v2, 4  ;;  %v1390_v35 = vsel %vm624_vm5, %v1385_v60, %v1387_v13  ;;  %v9914_v2 = vld [vmem:[%s12518_s2 + $0x60] sm:$0x7] }
 0x148   : > { %v3103_v18 = vsel %vm12490_vm1, %v3101_v45, %v3102_v17  ;;  %9822 = vmatmul.mubr.msk.f32.vlgmr.msra.gmra.mrb[0].mxu1 %vm12489_vm3, %v9819_v4  ;;  %v9918_v45 = vld [vmem:[%s12435_s1 + $0x32] sm:$0x3] }
 0x149   : > { %v3104_v19 = vsel %vm996_vm12, %v3103_v18, %v3100_v63  ;;  %v3210_v49 = vpop.permute.xlu0 %3209  ;;  %v1265_v20 = vpop.permute.xlu1 %1264  ;;  %1341 = vmatprep.mubr.f32.mxu1 %v10495_v8 }
 0x14a   : > { %v1269_v21 = vsel %vm748_vm7, %v1265_v20, %v1267_v50  ;;  %v3115_v23 = vmul.f32 %v3113_v62, %v3104_v19  ;;  %v3213_v36 = vrot.slane %v3210_v49, 4  ;;  %v9844_v19 = vld [vmem:[%s12518_s2 + $0x28] sm:$0x7] }
 0x14b   : > { %9825 = vmatprep.subr.msk.mxu1 %vm12488_vm2, %v1269_v21 }
 0x14c   : > { %v3122_v24 = vrot.slane %v3115_v23, %v10770_v46  ;;  %v3126_v25 = vrot.slane %v3115_v23, %v10767_v44 }
 0x14d   : > { %v3324_v26 = vpop.permute.xlu0 %3323  ;;  %v1263_v27 = vpop.permute.xlu1 %1262 }
 0x14e   : > { %v1268_v29 = vsel %vm748_vm7, %v1263_v27, %v1265_v20  ;;  %9905 = vmatprep.subr.msk.mxu0 %vm12488_vm2, %v3126_v25  ;;  %v3326_v28 = vrot.slane %v3324_v26, 4  ;;  %v3449_v20 = vrot.slane %v9918_v45, %v10662_v11  ;;  %v9951_v45 = vld [vmem:[%s12435_s1 + $0xa] sm:$0x3] }
 0x14f   : > { %9826 = vmatpush1.msk.msra.mxu1 %vm12488_vm2, %v1268_v29  ;;  %9906 = vmatpush1.msk.msra.mxu0 %vm12488_vm2, %v3122_v24 }
 0x150   : > { %9827 = vmatmul.mubr.msk.f32.vlgmr.msra.gmra.mrb[0].mxu1 %vm12489_vm3, %v9824_v22  ;;  %9830 = vmatprep.subr.msk.mxu1 %vm12488_vm2, %v1391_v32  ;;  %v9923_v32 = vld [vmem:[%s12435_s1 + $0x34] sm:$0x3] }
 0x151   : > { %v1632_v37 = vpop.permute.xlu0 %1631  ;;  %9831 = vmatpush1.msk.msra.mxu1 %vm12488_vm2, %v1390_v35  ;;  %v3212_v38 = vpop.permute.xlu1 %3211  ;;  %1463 = vmatprep.mubr.f32.mxu1 %v10495_v8 }
 0x152   : > { %v3214_v15 = vrot.slane %v3212_v38, 4  ;;  %9907 = vmatmul.mubr.msk.f32.vlgmr.msra.gmra.mrb[0].mxu0 %vm12489_vm3, %v9904_v34 }
 0x153   : > { %3310 = vmatprep.mubr.f32.mxu0 %v10495_v8 }
 0x154   : > { %v3215_v31 = vsel %vm12490_vm1, %v3213_v36, %v3214_v15  ;;  %v3561_v15 = vrot.slane %v9923_v32, %v10662_v11 }
 0x155   : > { %v3216_v39 = vsel %vm872_vm9, %v3215_v31, %v3212_v38  ;;  %v1634_v40 = vpop.permute.xlu1 %1633  ;;  %v1630_v43 = vpop.permute.xlu0 %1629  ;;  %v9919_v38 = vld [vmem:[%s12518_s2 + $0x64] sm:$0x7] }
 0x156   : > { %v3227_v42 = vmul.f32 %v3225_v61, %v3216_v39  ;;  %v1637_v57 = vsel %vm1635_vm8, %v1632_v37, %v1634_v40  ;;  %v1636_v59 = vsel %vm1635_vm8, %v1630_v43, %v1632_v37  ;;  %v9849_v37 = vld [vmem:[%s12518_s2 + $0x2c] sm:$0x7] }
 0x158   : > { %v3234_v47 = vrot.slane %v3227_v42, %v10770_v46  ;;  %v3238_v48 = vrot.slane %v3227_v42, %v10767_v44  ;;  %9832 = vmatmul.mubr.msk.f32.vlgmr.msra.gmra.mrb[0].mxu1 %vm12489_vm3, %v9829_v41 }
 0x159   : > { %v1509_v50 = vpop.permute.xlu1 %1508  ;;  %1585 = vmatprep.mubr.f32.mxu1 %v10495_v8  ;;  %v1758_v52 = vpop.permute.xlu0 %1757 }
 0x15a   : > { %9910 = vmatprep.subr.msk.mxu0 %vm12488_vm2, %v3238_v48  ;;  %v1513_v30 = vsel %vm12526_vm6, %v1509_v50, %v11143_v1  ;;  %v3337_v1 = vrot.slane %v9913_v58, %v10662_v11  ;;  %vm12497_vm6 = vcmask 64512  }
 0x15b   : > { %9835 = vmatprep.subr.msk.mxu1 %vm12488_vm2, %v1513_v30  ;;  %9911 = vmatpush1.msk.msra.mxu0 %vm12488_vm2, %v3234_v47 }
 0x15c   : > { %9912 = vmatmul.mubr.msk.f32.vlgmr.msra.gmra.mrb[0].mxu0 %vm12489_vm3, %v9909_v51  ;;  %v9924_v51 = vld [vmem:[%s12518_s2 + $0x68] sm:$0x7] }
 0x15d   : > { %v1507_v53 = vpop.permute.xlu1 %1506  ;;  %3422 = vmatprep.mubr.f32.mxu0 %v10495_v8  ;;  %v3434_v63 = vpop.permute.xlu0 %3433 }
 0x15e   : > { %v1512_v56 = vsel %vm12527_vm11, %v1507_v53, %v1509_v50  ;;  %v3437_v49 = vrot.slane %v3434_v63, 4  ;;  %vm12487_vm11 = vcmask 56320   ;;  %v9854_v50 = vld [vmem:[%s12518_s2 + $0x30] sm:$0x7]  ;;  %s12536_s2 = smov 120  }
 0x15f   : > { %9836 = vmatpush1.msk.msra.mxu1 %vm12488_vm2, %v1512_v56 }
 0x160   : > { %9837 = vmatmul.mubr.msk.f32.vlgmr.msra.gmra.mrb[0].mxu1 %vm12489_vm3, %v9834_v54  ;;  %9840 = vmatprep.subr.msk.mxu1 %vm12488_vm2, %v1637_v57 }
 0x161   : > { %9841 = vmatpush1.msk.msra.mxu1 %vm12488_vm2, %v1636_v59  ;;  %v3322_v3 = vpop.permute.xlu1 %3321  ;;  %1709 = vmatprep.mubr.f32.mxu1 %v10495_v8  ;;  %v1880_v14 = vpop.permute.xlu0 %1879 }
 0x162   : > { %v3325_v0 = vrot.slane %v3322_v3, 4 }
 0x164   : > { %v3327_v5 = vsel %vm12490_vm1, %v3325_v0, %v3326_v28 }
 0x165   : > { %v3328_v7 = vsel %vm748_vm7, %v3327_v5, %v3324_v26  ;;  %v1756_v9 = vpop.permute.xlu1 %1755  ;;  %v1878_v62 = vpop.permute.xlu0 %1877  ;;  %v3677_v5 = vld [vmem:[%s12529_s4] sm:$0x7]  ;;  %s12537_s4 = smov 121  }
 0x166   : > { %v1761_v12 = vsel %vm12497_vm6, %v1756_v9, %v1758_v52  ;;  %v3339_v13 = vmul.f32 %v3337_v1, %v3328_v7  ;;  %v1884_v29 = vsel %vm12487_vm11, %v1878_v62, %v1880_v14  ;;  %v11304_v1 = vsub.s32 1, %v10648_v6  ;;  %v3713_v7 = vld [vmem:[%s12435_s1] sm:$0x3] }
 0x167   : > { %9845 = vmatprep.subr.msk.mxu1 %vm12488_vm2, %v1761_v12 }
 0x168   : > { %9842 = vmatmul.mubr.msk.f32.vlgmr.msra.gmra.mrb[0].mxu1 %vm12489_vm3, %v9839_v10  ;;  %v3346_v55 = vrot.slane %v3339_v13, %v10770_v46  ;;  %v3350_v17 = vrot.slane %v3339_v13, %v10767_v44  ;;  %v3718_v10 = vrot.slane %v3713_v7, %v10770_v46  ;;  %v3722_v12 = vrot.slane %v3713_v7, %v11304_v1 }
 0x169   : > { %v1754_v60 = vpop.permute.xlu1 %1753  ;;  %1833 = vmatprep.mubr.f32.mxu1 %v10495_v8  ;;  %v3548_v26 = vpop.permute.xlu0 %3547 }
 0x16a   : > { %v1760_v4 = vsel %vm12497_vm6, %v1754_v60, %v1756_v9  ;;  %9915 = vmatprep.subr.msk.mxu0 %vm12488_vm2, %v3350_v17  ;;  %v3550_v35 = vrot.slane %v3548_v26, 4  ;;  %v9931_v9 = vld [vmem:[%s12435_s1 + $0x2] sm:$0x3]  ;;  %v9941_v17 = vld [vmem:[%s12435_s1 + $0x6] sm:$0x3] }
 0x16b   : > { %9846 = vmatpush1.msk.msra.mxu1 %vm12488_vm2, %v1760_v4  ;;  %9916 = vmatpush1.msk.msra.mxu0 %vm12488_vm2, %v3346_v55  ;;  %v3830_v13 = vrot.slane %v9931_v9, %v10770_v46  ;;  %v3723_v55 = vcombine.low %v3718_v10, %v3722_v12  ;;  %v4058_v4 = vrot.slane %v9941_v17, %v11304_v1 }
 0x16c   : > { %9917 = vmatmul.mubr.msk.f32.vlgmr.msra.gmra.mrb[0].mxu0 %vm12489_vm3, %v9914_v2  ;;  %v4054_v2 = vrot.slane %v9941_v17, %v10770_v46 }
 0x16d   : > { %v3436_v18 = vpop.permute.xlu1 %3435  ;;  %3534 = vmatprep.mubr.f32.mxu0 %v10495_v8  ;;  %v2006_v31 = vpop.permute.xlu0 %2005 }
 0x16e   : > { %v3438_v21 = vrot.slane %v3436_v18, 4  ;;  %v4059_v62 = vcombine.low %v4054_v2, %v4058_v4 }
 0x170   : > { %v3439_v23 = vsel %vm12490_vm1, %v3437_v49, %v3438_v21  ;;  %9847 = vmatmul.mubr.msk.f32.vlgmr.msra.gmra.mrb[0].mxu1 %vm12489_vm3, %v9844_v19  ;;  %v4282_v19 = vrot.slane %v9951_v45, %v11304_v1  ;;  %v9961_v49 = vld [vmem:[%s12435_s1 + $0xe] sm:$0x3] }
 0x171   : > { %v3440_v24 = vsel %vm624_vm5, %v3439_v23, %v3436_v18  ;;  %v1882_v25 = vpop.permute.xlu1 %1881  ;;  %1957 = vmatprep.mubr.f32.mxu1 %v10495_v8  ;;  %v4278_v18 = vrot.slane %v9951_v45, %v10770_v46  ;;  %v4502_v21 = vrot.slane %v9961_v49, %v10770_v46  ;;  %v4506_v23 = vrot.slane %v9961_v49, %v11304_v1 }
 0x172   : > { %v3451_v27 = vmul.f32 %v3449_v20, %v3440_v24  ;;  %v1885_v22 = vsel %vm12487_vm11, %v1880_v14, %v1882_v25  ;;  %vm12528_vm11 = vcmask 449536   ;;  %v3834_v14 = vrot.slane %v9931_v9, %v11304_v1 }
 0x173   : > { %9850 = vmatprep.subr.msk.mxu1 %vm12488_vm2, %v1885_v22  ;;  %v4283_v20 = vcombine.low %v4278_v18, %v4282_v19  ;;  %v4507_v24 = vcombine.low %v4502_v21, %v4506_v23 }
 0x174   : > { %v3458_v33 = vrot.slane %v3451_v27, %v10770_v46  ;;  %v3462_v34 = vrot.slane %v3451_v27, %v10767_v44  ;;  %9851 = vmatpush1.msk.msra.mxu1 %vm12488_vm2, %v1884_v29  ;;  %v3835_v60 = vcombine.low %v3830_v13, %v3834_v14 }
 0x175   : > { %v3546_v36 = vpop.permute.xlu1 %3545 }
 0x176   : > { %v3549_v61 = vrot.slane %v3546_v36, 4  ;;  %9920 = vmatprep.subr.msk.mxu0 %vm12488_vm2, %v3462_v34  ;;  %v9936_v36 = vld [vmem:[%s12435_s1 + $0x4] sm:$0x3] }
 0x177   : > { %9921 = vmatpush1.msk.msra.mxu0 %vm12488_vm2, %v3458_v33 }
 0x178   : > { %v3551_v39 = vsel %vm12490_vm1, %v3549_v61, %v3550_v35  ;;  %9852 = vmatmul.mubr.msk.f32.vlgmr.msra.gmra.mrb[0].mxu1 %vm12489_vm3, %v9849_v37  ;;  %9922 = vmatmul.mubr.msk.f32.vlgmr.msra.gmra.mrb[0].mxu0 %vm12489_vm3, %v9919_v38  ;;  %v3942_v37 = vrot.slane %v9936_v36, %v10770_v46  ;;  %v3946_v38 = vrot.slane %v9936_v36, %v11304_v1  ;;  %v3685_v61 = vld [vmem:[%s12531_s5] sm:$0x7]  ;;  %vm12534_vm1 = vcmask 449536   ;;  %v9981_v36 = vld [vmem:[%s12435_s1 + $0x16] sm:$0x3]  ;;  %s12540_s5 = smov 8  }
 0x179   : > { %v3552_v40 = vsel %vm12528_vm11, %v3551_v39, %v3548_v26  ;;  %v2004_v41 = vpop.permute.xlu1 %2003  ;;  %2080 = vmatprep.mubr.f32.mxu1 %v10495_v8  ;;  %3646 = vmatprep.mubr.f32.mxu0 %v10495_v8  ;;  %vm3655_vm11 = vcmask 1042432  }
 0x17a   : > { %v2008_v42 = vsel %vm12489_vm3, %v2004_v41, %v2006_v31  ;;  %v3563_v43 = vmul.f32 %v3561_v15, %v3552_v40  ;;  %v9946_v15 = vld [vmem:[%s12435_s1 + $0x8] sm:$0x3]  ;;  %v3947_v31 = vcombine.low %v3942_v37, %v3946_v38 }
 0x17b   : > { %9855 = vmatprep.subr.msk.mxu1 %vm12488_vm2, %v2008_v42  ;;  %v4166_v39 = vrot.slane %v9946_v15, %v10770_v46  ;;  %v4170_v40 = vrot.slane %v9946_v15, %v11304_v1  ;;  %v4950_v15 = vrot.slane %v9981_v36, %v10770_v46 }
 0x17c   : > { %v3570_v11 = vrot.slane %v3563_v43, %v10770_v46  ;;  %v3574_v47 = vrot.slane %v3563_v43, %v10767_v44 }
 0x17d   : > { %v2002_v48 = vpop.permute.xlu1 %2001  ;;  %v4171_v42 = vcombine.low %v4166_v39, %v4170_v40 }
 0x17e   : > { %v2007_v30 = vsel %vm12489_vm3, %v2002_v48, %v2004_v41  ;;  %9925 = vmatprep.subr.msk.mxu0 %vm12488_vm2, %v3574_v47  ;;  %v484_v44 = vpop.permute.xlu0 %483  ;;  %v9956_v41 = vld [vmem:[%s12435_s1 + $0xc] sm:$0x3]  ;;  %v9966_v47 = vld [vmem:[%s12435_s1 + $0x10] sm:$0x3] }
 0x17f   : > { %9856 = vmatpush1.msk.msra.mxu1 %vm12488_vm2, %v2007_v30  ;;  %9926 = vmatpush1.msk.msra.mxu0 %vm12488_vm2, %v3570_v11  ;;  %v4390_v43 = vrot.slane %v9956_v41, %v10770_v46  ;;  %v4394_v11 = vrot.slane %v9956_v41, %v11304_v1 }
 0x180   : > { %9857 = vmatmul.mubr.msk.f32.vlgmr.msra.gmra.mrb[0].mxu1 %vm12489_vm3, %v9854_v50  ;;  %9927 = vmatmul.mubr.msk.f32.vlgmr.msra.gmra.mrb[0].mxu0 %vm12489_vm3, %v9924_v51  ;;  %v4614_v50 = vrot.slane %v9966_v47, %v10770_v46  ;;  %v4618_v51 = vrot.slane %v9966_v47, %v11304_v1 }
 0x181   : > { %3816 = vmatprep.mubr.f32.mxu1 %v10495_v8  ;;  %6812 = vmatprep.mubr.f32.mxu0 %v10495_v8  ;;  %v4395_v48 = vcombine.low %v4390_v43, %v4394_v11  ;;  %v9986_v43 = vld [vmem:[%s12435_s1 + $0x18] sm:$0x3] }
 0x182   : > { %v4619_v30 = vcombine.low %v4614_v50, %v4618_v51  ;;  %v5062_v50 = vrot.slane %v9986_v43, %v10770_v46  ;;  %v5066_v51 = vrot.slane %v9986_v43, %v11304_v1 }
 0x253   : > { %v2082_v52 = vpop.f32.mrb[0].mxu1  ;;  %v3648_v53 = vpop.f32.mrb[0].mxu0 }
 0x254   : > { %v10200_v54 = vadd.f32 %v2082_v52, %v484_v44  ;;  %v2084_v56 = vpop.f32.mrb[1].mxu1  ;;  %v3650_v57 = vpop.f32.mrb[1].mxu0 }
 0x255   : > { %v10202_v58 = vadd.f32 %v2084_v56, %v484_v44 }
 0x256   : > { %v10201_v59 = vadd.f32 %v10200_v54, %v3648_v53 }
 0x257   : > { %v10203_v3 = vadd.f32 %v10202_v58, %v3650_v57 }
 0x258   : > { %v3656_v63 = vsel %vm3655_vm11, %v10201_v59, 0.0 }
 0x259   : > { %v3657_v28 = vsel %vm3655_vm11, %v10203_v3, 0.0 }
 0x25a   : > { %v3658_v0 = vadd.f32 %v3657_v28, %v3656_v63 }
 0x25c   : > { %3659 = vadd.xlane.f32.xlu1 %v3658_v0 }
 0x26d   : > { %3680 = vperm.xlu1 %10423, %v3677_v5  }
 0x271   : > { %3724 = vrot.lane.b32.xlu1 %v3723_v55, %s12523_s24 }
 0x275   : > { %3836 = vrot.lane.b32.xlu1 %v3835_v60, %s12524_s23  ;;  %v9971_v60 = vld [vmem:[%s12435_s1 + $0x12] sm:$0x3] }
 0x276   : > { %v4726_v18 = vrot.slane %v9971_v60, %v10770_v46  ;;  %v4730_v19 = vrot.slane %v9971_v60, %v11304_v1 }
 0x278   : > { %v4731_v23 = vcombine.low %v4726_v18, %v4730_v19 }
 0x279   : > { %4060 = vrot.lane.b32.xlu1 %v4059_v62, %s12520_s18 }
 0x27d   : > { %4284 = vrot.lane.b32.xlu1 %v4283_v20, %s12517_s15 }
 0x281   : > { %4508 = vrot.lane.b32.xlu1 %v4507_v24, %s12530_s30  ;;  %v9976_v24 = vld [vmem:[%s12435_s1 + $0x14] sm:$0x3] }
 0x2e9   : > { %v3660_v25 = vpop.xlane.xlu1 %3659 }
 0x2ea   : > { %v3662_v26 = vmul.f32 0.00390625, %v3660_v25 }
 0x2ec   : > { %v3663_v27 = vsub.f32 %v10201_v59, %v3662_v26  ;;  %v3664_v22 = vsub.f32 %v10203_v3, %v3662_v26 }
 0x2ed   : > { %v3681_v58 = vpop.permute.xlu1 %3680 }
 0x2ee   : > { %v3665_v29 = vmul.f32 %v3663_v27, %v3663_v27  ;;  %v3666_v32 = vmul.f32 %v3664_v22, %v3664_v22 }
 0x2f0   : > { %v3667_v33 = vsel %vm3655_vm11, %v3665_v29, 0.0  ;;  %v3668_v34 = vsel %vm3655_vm11, %v3666_v32, 0.0  ;;  %v4842_v29 = vrot.slane %v9976_v24, %v11304_v1 }
 0x2f1   : > { %v3669_v35 = vadd.f32 %v3668_v34, %v3667_v33  ;;  %v3725_v13 = vpop.permute.xlu1 %3724 }
 0x2f2   : > { %v3726_v14 = vrot.slane %v3725_v13, 4 }
 0x2f3   : > { %3670 = vadd.xlane.f32.xlu0 %v3669_v35 }
 0x2f4   : > { %v3727_v55 = vsel %vm12534_vm1, %v3726_v14, %v3725_v13  ;;  %vm3744_vm1 = vcmask 23552  }
 0x2f5   : > { %v3837_v4 = vpop.permute.xlu1 %3836 }
 0x2f6   : > { %v3838_v62 = vrot.slane %v3837_v4, 4 }
 0x2f8   : > { %v3839_v21 = vsel %vm624_vm5, %v3838_v62, %v3837_v4 }
 0x2f9   : > { %v4061_v38 = vpop.permute.xlu1 %4060 }
 0x309   : > { %3688 = vperm.xlu0 %10422, %v3685_v61   ;;  %v4062_v61 = vrot.slane %v4061_v38, 4 }
 0x30b   : > { %v4063_v41 = vsel %vm872_vm9, %v4062_v61, %v4061_v38 }
 0x30d   : > { %3948 = vrot.lane.b32.xlu0 %v3947_v31, %s12522_s29  ;;  %v4954_v31 = vrot.slane %v9981_v36, %v11304_v1 }
 0x311   : > { %4172 = vrot.lane.b32.xlu0 %v4171_v42, %s12521_s28  ;;  %v4955_v42 = vcombine.low %v4950_v15, %v4954_v31 }
 0x315   : > { %4396 = vrot.lane.b32.xlu0 %v4395_v48, %s12532_s3 }
 0x319   : > { %4620 = vrot.lane.b32.xlu0 %v4619_v30, %s12533_s25 }
 0x380   : > { %v3671_v44 = vpop.xlane.xlu0 %3670 }
 0x381   : > { %v3672_v52 = vmul.f32 0.00390625, %v3671_v44 }
 0x383   : > { %v3673_v53 = vadd.f32 1e-05, %v3672_v52  ;;  %v4285_v52 = vpop.permute.xlu1 %4284 }
 0x385   : > { %10424 = vrsqrt.f32 %v3673_v53 }
 0x388   : > { %v3689_v63 = vpop.permute.xlu0 %3688 }
 0x38c   : > { %v3949_v25 = vpop.permute.xlu0 %3948 }
 0x38f   : > { %v10425_v54 = vpop.eup %10424 }
 0x390   : > { %v3675_v56 = vmul.f32 %v10425_v54, %v3663_v27  ;;  %v3676_v57 = vmul.f32 %v10425_v54, %v3664_v22  ;;  %v3950_v27 = vrot.slane %v3949_v25, 4  ;;  %v4838_v22 = vrot.slane %v9976_v24, %v10770_v46  ;;  %v4173_v11 = vpop.permute.xlu0 %4172 }
 0x391   : > { %v4174_v48 = vrot.slane %v4173_v11, 4  ;;  %v4286_v54 = vrot.slane %v4285_v52, 4 }
 0x392   : > { %v3683_v59 = vmul.f32 %v3681_v58, %v3675_v56  ;;  %v3684_v3 = vmul.f32 %v3681_v58, %v3676_v57  ;;  %v3951_v34 = vsel %vm748_vm7, %v3950_v27, %v3949_v25  ;;  %v4843_v35 = vcombine.low %v4838_v22, %v4842_v29  ;;  %v3732_v29 = vld [vmem:[%s12440_s6] sm:$0x7] }
 0x393   : > { %v4175_v53 = vsel %vm996_vm12, %v4174_v48, %v4173_v11  ;;  %v5067_v56 = vcombine.low %v5062_v50, %v5066_v51  ;;  %v4287_v58 = vsel %vm900_vm10, %v4286_v54, %v4285_v52 }
 0x394   : > { %v3691_v28 = vadd.f32 %v3689_v63, %v3683_v59  ;;  %v3692_v0 = vadd.f32 %v3689_v63, %v3684_v3  ;;  %v4397_v63 = vpop.permute.xlu0 %4396 }
 0x396   : > { %vm3693_vm2 = vcmp.ge.f32.partialorder %v3691_v28, 0.0  ;;  %vm3694_vm3 = vcmp.ge.f32.partialorder %v3692_v0, 0.0  ;;  %v3695_v5 = vmul.f32 0.01, %v3691_v28  ;;  %v3696_v7 = vmul.f32 0.01, %v3692_v0 }
 0x398   : > { %v3697_v9 = vsel %vm3693_vm2, %v3691_v28, %v3695_v5  ;;  %v3698_v10 = vsel %vm3694_vm3, %v3692_v0, %v3696_v7  ;;  %v4398_v0 = vrot.slane %v4397_v63, 4  ;;  %v4509_v5 = vpop.permute.xlu1 %4508  ;;  %vm12539_vm2 = vcmask 982016  }
 0x399   : > { %v3701_v12 = vcombine.low %v3697_v9, %v3698_v10  ;;  %v4510_v10 = vrot.slane %v4509_v5, 4  ;;  %vm12541_vm3 = vcmask 990208  }
 0x39a   : > { %v4399_v9 = vsel %vm776_vm4, %v4398_v0, %v4397_v63 }
 0x39b   : > { %3703 = vst [vmem:[#allocation2 + $0x4] sm:$0x77] %v3701_v12 }
 0x3a2   : > { %v11369_v17 = vld [vmem:[#allocation2] sm:$0x77]  ;;  %v11375_v45 = vld [vmem:[#allocation2 + $0x8] sm:$0x77] }
 0x3a3   : > { %v3730_v2 = vmul.f32 %v3727_v55, %v11369_v17  ;;  %v3731_v49 = vmul.f32 %v3726_v14, %v11375_v45  ;;  %v3842_v26 = vmul.f32 %v3839_v21, %v11369_v17  ;;  %v3843_v32 = vmul.f32 %v3838_v62, %v11375_v45  ;;  %v4621_v55 = vpop.permute.xlu0 %4620 }
 0x3a4   : > { %v3954_v37 = vmul.f32 %v3951_v34, %v11369_v17  ;;  %v3955_v39 = vmul.f32 %v3950_v27, %v11375_v45  ;;  %v4066_v47 = vmul.f32 %v4063_v41, %v11369_v17  ;;  %v4067_v30 = vmul.f32 %v4062_v61, %v11375_v45 }
 0x3a5   : > { %v3735_v20 = vcombine.high %v3730_v2, %v3730_v2  ;;  %3740 = vrot.lane.b32.xlu0 %v3731_v49, %s12533_s25  ;;  %v3848_v33 = vcombine.high %v3842_v26, %v3842_v26  ;;  %v4178_v57 = vmul.f32 %v4175_v53, %v11369_v17  ;;  %v4179_v59 = vmul.f32 %v4174_v48, %v11375_v45  ;;  %v9937_v53 = vld [vmem:[%s12440_s6 + $0x8] sm:$0x7] }
 0x3a6   : > { %v3960_v40 = vcombine.high %v3954_v37, %v3954_v37  ;;  %v4072_v44 = vcombine.high %v4066_v47, %v4066_v47  ;;  %v4290_v28 = vmul.f32 %v4287_v58, %v11369_v17  ;;  %v4402_v12 = vmul.f32 %v4399_v9, %v11369_v17  ;;  %v9942_v9 = vld [vmem:[%s12440_s6 + $0xc] sm:$0x7] }
 0x3a7   : > { %3738 = vrot.lane.b32.xlu1 %v3735_v20, %s12533_s25  ;;  %v4184_v3 = vcombine.high %v4178_v57, %v4178_v57  ;;  %v4291_v13 = vmul.f32 %v4286_v54, %v11375_v45  ;;  %v4511_v14 = vsel %vm652_vm14, %v4510_v10, %v4509_v5  ;;  %v4403_v60 = vmul.f32 %v4398_v0, %v11375_v45 }
 0x3a8   : > { %v4296_v7 = vcombine.high %v4290_v28, %v4290_v28  ;;  %v4514_v4 = vmul.f32 %v4511_v14, %v11369_v17  ;;  %v4622_v62 = vrot.slane %v4621_v55, 4  ;;  %v4515_v20 = vmul.f32 %v4510_v10, %v11375_v45 }
 0x3a9   : > { %4732 = vrot.lane.b32.xlu0 %v4731_v23, %s12535_s17 }
 0x3aa   : > { %v4520_v18 = vcombine.high %v4514_v4, %v4514_v4  ;;  %v4623_v19 = vsel %vm526_vm15, %v4622_v62, %v4621_v55  ;;  %v4627_v21 = vmul.f32 %v4622_v62, %v11375_v45 }
 0x3ab   : > { %3736 = vrot.lane.b32.xlu1 %v3730_v2, %s12533_s25  ;;  %v4408_v2 = vcombine.high %v4402_v12, %v4402_v12  ;;  %v4626_v49 = vmul.f32 %v4623_v19, %v11369_v17 }
 0x3ad   : > { %3853 = vrot.lane.b32.xlu0 %v3843_v32, %s12530_s30  ;;  %v4632_v23 = vcombine.high %v4626_v49, %v4626_v49 }
 0x3af   : > { %3851 = vrot.lane.b32.xlu1 %v3848_v33, %s12530_s30 }
 0x3b1   : > { %4844 = vrot.lane.b32.xlu0 %v4843_v35, %s12536_s2 }
 0x3b3   : > { %3849 = vrot.lane.b32.xlu1 %v3842_v26, %s12530_s30 }
 0x3b5   : > { %3965 = vrot.lane.b32.xlu0 %v3955_v39, %s12532_s3 }
 0x3b7   : > { %3963 = vrot.lane.b32.xlu1 %v3960_v40, %s12532_s3  ;;  %v9932_v40 = vld [vmem:[%s12440_s6 + $0x4] sm:$0x7] }
 0x3b9   : > { %4956 = vrot.lane.b32.xlu0 %v4955_v42, %s12537_s4 }
 0x3bb   : > { %3961 = vrot.lane.b32.xlu1 %v3954_v37, %s12532_s3 }
 0x3bd   : > { %4077 = vrot.lane.b32.xlu0 %v4067_v30, %s12517_s15 }
 0x3bf   : > { %4075 = vrot.lane.b32.xlu1 %v4072_v44, %s12517_s15 }
 0x3c1   : > { %5068 = vrot.lane.b32.xlu0 %v5067_v56, %s12519_s16 }
 0x3c3   : > { %4073 = vrot.lane.b32.xlu1 %v4066_v47, %s12517_s15 }
 0x3c5   : > { %4189 = vrot.lane.b32.xlu0 %v4179_v59, %s12521_s28 }
 0x3c7   : > { %4187 = vrot.lane.b32.xlu1 %v4184_v3, %s12521_s28 }
 0x3c9   : > { %4299 = vrot.lane.b32.xlu0 %v4296_v7, %s12520_s18 }
 0x3cb   : > { %4185 = vrot.lane.b32.xlu1 %v4178_v57, %s12521_s28 }
 0x3cd   : > { %4297 = vrot.lane.b32.xlu0 %v4290_v28, %s12520_s18 }
 0x3cf   : > { %4301 = vrot.lane.b32.xlu1 %v4291_v13, %s12520_s18 }
 0x3d1   : > { %4413 = vrot.lane.b32.xlu0 %v4403_v60, %s12522_s29 }
 0x3d3   : > { %4411 = vrot.lane.b32.xlu1 %v4408_v2, %s12522_s29 }
 0x3d5   : > { %4523 = vrot.lane.b32.xlu0 %v4520_v18, %s12524_s23 }
 0x3d7   : > { %4409 = vrot.lane.b32.xlu1 %v4402_v12, %s12522_s29 }
 0x3d9   : > { %4521 = vrot.lane.b32.xlu0 %v4514_v4, %s12524_s23 }
 0x3db   : > { %4525 = vrot.lane.b32.xlu1 %v4515_v20, %s12524_s23 }
 0x3dd   : > { %4637 = vrot.lane.b32.xlu0 %v4627_v21, %s12523_s24 }
 0x3df   : > { %4635 = vrot.lane.b32.xlu1 %v4632_v23, %s12523_s24 }
 0x3e3   : > { %4633 = vrot.lane.b32.xlu1 %v4626_v49, %s12523_s24  ;;  %v9947_v49 = vld [vmem:[%s12440_s6 + $0x10] sm:$0x7] }
 0x417   : > { %v3741_v24 = vpop.permute.xlu0 %3740 }
 0x419   : > { %v3739_v25 = vpop.permute.xlu1 %3738 }
 0x41a   : > { %v3743_v26 = vsel %vm526_vm15, %v3739_v25, %v3741_v24 }
 0x41b   : > { %9928 = vmatprep.subr.msk.mxu1 %vm3655_vm11, %v3743_v26  ;;  %v4733_v27 = vpop.permute.xlu0 %4732 }
 0x41c   : > { %v4734_v32 = vrot.slane %v4733_v27, 4 }
 0x41d   : > { %v3737_v22 = vpop.permute.xlu1 %3736 }
 0x41e   : > { %v3742_v33 = vsel %vm526_vm15, %v3737_v22, %v3739_v25  ;;  %v4735_v34 = vsel %vm1607_vm13, %v4734_v32, %v4733_v27  ;;  %v4739_v35 = vmul.f32 %v4734_v32, %v11375_v45  ;;  %v9952_v22 = vld [vmem:[%s12440_s6 + $0x14] sm:$0x7] }
 0x41f   : > { %9929 = vmatpush1.msk.msra.mxu1 %vm3655_vm11, %v3742_v33  ;;  %v4738_v36 = vmul.f32 %v4735_v34, %v11369_v17  ;;  %v3854_v37 = vpop.permute.xlu0 %3853 }
 0x420   : > { %9930 = vmatmul.mubr.msk.f32.vlgmr.msra.gmra.mrb[2].mxu1 %vm3744_vm1, %v3732_v29  ;;  %4749 = vrot.lane.b32.xlu1 %v4739_v35, %s12538_s0 }
 0x421   : > { %v3852_v38 = vpop.permute.xlu1 %3851  ;;  %3928 = vmatprep.mubr.f32.mxu1 %v10495_v8  ;;  %v4744_v15 = vcombine.high %v4738_v36, %v4738_v36 }
 0x422   : > { %v3856_v61 = vsel %vm652_vm14, %v3852_v38, %v3854_v37  ;;  %v9957_v37 = vld [vmem:[%s12440_s6 + $0x18] sm:$0x7] }
 0x423   : > { %9933 = vmatprep.subr.msk.mxu1 %vm3655_vm11, %v3856_v61  ;;  %v4845_v31 = vpop.permute.xlu0 %4844  ;;  %4747 = vrot.lane.b32.xlu0 %v4744_v15, %s12538_s0 }
 0x424   : > { %v4846_v41 = vrot.slane %v4845_v31, 4 }
 0x425   : > { %v3850_v39 = vpop.permute.xlu1 %3849 }
 0x426   : > { %v3855_v42 = vsel %vm652_vm14, %v3850_v39, %v3852_v38  ;;  %v4847_v43 = vsel %vm12539_vm2, %v4846_v41, %v4845_v31  ;;  %v4851_v51 = vmul.f32 %v4846_v41, %v11375_v45  ;;  %vm12543_vm2 = vcmask 1039360   ;;  %v9962_v41 = vld [vmem:[%s12440_s6 + $0x1c] sm:$0x7] }
 0x427   : > { %9934 = vmatpush1.msk.msra.mxu1 %vm3655_vm11, %v3855_v42  ;;  %v4850_v11 = vmul.f32 %v4847_v43, %v11369_v17  ;;  %v3966_v47 = vpop.permute.xlu0 %3965  ;;  %4745 = vrot.lane.b32.xlu0 %v4738_v36, %s12538_s0  ;;  %v9967_v43 = vld [vmem:[%s12440_s6 + $0x20] sm:$0x7] }
 0x428   : > { %9935 = vmatmul.mubr.msk.f32.vlgmr.msra.gmra.mrb[2].mxu1 %vm3744_vm1, %v9932_v40 }
 0x429   : > { %v3964_v48 = vpop.permute.xlu1 %3963  ;;  %4040 = vmatprep.mubr.f32.mxu1 %v10495_v8  ;;  %v4856_v30 = vcombine.high %v4850_v11, %v4850_v11 }
 0x42a   : > { %v3968_v50 = vsel %vm776_vm4, %v3964_v48, %v3966_v47 }
 0x42b   : > { %9938 = vmatprep.subr.msk.mxu1 %vm3655_vm11, %v3968_v50  ;;  %v4957_v44 = vpop.permute.xlu0 %4956  ;;  %4859 = vrot.lane.b32.xlu1 %v4856_v30, %s12540_s5  ;;  %v9972_v30 = vld [vmem:[%s12440_s6 + $0x24] sm:$0x7] }
 0x42c   : > { %4861 = vrot.lane.b32.xlu0 %v4851_v51, %s12540_s5  ;;  %v4958_v54 = vrot.slane %v4957_v44, 4 }
 0x42d   : > { %v3962_v52 = vpop.permute.xlu1 %3961 }
 0x42e   : > { %v3967_v56 = vsel %vm776_vm4, %v3962_v52, %v3964_v48  ;;  %v4959_v57 = vsel %vm12541_vm3, %v4958_v54, %v4957_v44  ;;  %v4963_v28 = vmul.f32 %v4958_v54, %v11375_v45  ;;  %vm12545_vm3 = vcmask 449536  }
 0x42f   : > { %9939 = vmatpush1.msk.msra.mxu1 %vm3655_vm11, %v3967_v56  ;;  %v4962_v58 = vmul.f32 %v4959_v57, %v11369_v17  ;;  %v4078_v59 = vpop.permute.xlu0 %4077  ;;  %4857 = vrot.lane.b32.xlu1 %v4850_v11, %s12540_s5  ;;  %v3706_v11 = vld [vmem:[%s12547_s7] sm:$0x7]  ;;  %v9977_v57 = vld [vmem:[%s12440_s6 + $0x28] sm:$0x7] }
 0x430   : > { %9940 = vmatmul.mubr.msk.f32.vlgmr.msra.gmra.mrb[2].mxu1 %vm3744_vm1, %v9937_v53 }
 0x431   : > { %v4076_v3 = vpop.permute.xlu1 %4075  ;;  %4152 = vmatprep.mubr.f32.mxu1 %v10495_v8  ;;  %v4968_v0 = vcombine.high %v4962_v58, %v4962_v58 }
 0x432   : > { %v4080_v63 = vsel %vm900_vm10, %v4076_v3, %v4078_v59  ;;  %v9991_v59 = vld [vmem:[%s12435_s1 + $0x1a] sm:$0x3] }
 0x433   : > { %9943 = vmatprep.subr.msk.mxu1 %vm3655_vm11, %v4080_v63  ;;  %v5069_v5 = vpop.permute.xlu0 %5068  ;;  %4973 = vrot.lane.b32.xlu1 %v4963_v28, %s12542_s21 }
 0x434   : > { %4971 = vrot.lane.b32.xlu0 %v4968_v0, %s12542_s21  ;;  %v5070_v10 = vrot.slane %v5069_v5, 4  ;;  %v5174_v0 = vrot.slane %v9991_v59, %v10770_v46 }
 0x435   : > { %v4074_v7 = vpop.permute.xlu1 %4073 }
 0x436   : > { %v4079_v12 = vsel %vm900_vm10, %v4074_v7, %v4076_v3  ;;  %v5071_v13 = vsel %vm12543_vm2, %v5070_v10, %v5069_v5  ;;  %v5075_v4 = vmul.f32 %v5070_v10, %v11375_v45  ;;  %vm12546_vm2 = vmmov %vm12545_vm3  ;;  %v5178_v5 = vrot.slane %v9991_v59, %v11304_v1 }
 0x437   : > { %9944 = vmatpush1.msk.msra.mxu1 %vm3655_vm11, %v4079_v12  ;;  %v5074_v14 = vmul.f32 %v5071_v13, %v11369_v17  ;;  %v4190_v55 = vpop.permute.xlu0 %4189  ;;  %v5181_v7 = vrot.slane %v11369_v17, 4  ;;  %v9982_v12 = vld [vmem:[%s12440_s6 + $0x2c] sm:$0x7] }
 0x438   : > { %9945 = vmatmul.mubr.msk.f32.vlgmr.msra.gmra.mrb[2].mxu1 %vm3744_vm1, %v9942_v9  ;;  %4969 = vrot.lane.b32.xlu0 %v4962_v58, %s12542_s21  ;;  %v5182_v9 = vrot.slane %v11375_v45, 4 }
 0x439   : > { %v4188_v60 = vpop.permute.xlu1 %4187  ;;  %4264 = vmatprep.mubr.f32.mxu1 %v10495_v8  ;;  %v5080_v62 = vcombine.high %v5074_v14, %v5074_v14 }
 0x43a   : > { %v4192_v2 = vsel %vm996_vm12, %v4188_v60, %v4190_v55 }
 0x43b   : > { %9948 = vmatprep.subr.msk.mxu1 %vm3655_vm11, %v4192_v2  ;;  %v4300_v18 = vpop.permute.xlu0 %4299  ;;  %5083 = vrot.lane.b32.xlu1 %v5080_v62, %s12544_s22 }
 0x43c   : > { %5085 = vrot.lane.b32.xlu0 %v5075_v4, %s12544_s22  ;;  %v9996_v4 = vld [vmem:[%s12435_s1 + $0x1c] sm:$0x3] }
 0x43d   : > { %v4186_v19 = vpop.permute.xlu1 %4185 }
 0x43e   : > { %v4191_v20 = vsel %vm996_vm12, %v4186_v19, %v4188_v60  ;;  %v9987_v19 = vld [vmem:[%s12440_s6 + $0x30] sm:$0x7] }
 0x43f   : > { %9949 = vmatpush1.msk.msra.mxu1 %vm3655_vm11, %v4191_v20  ;;  %v4298_v21 = vpop.permute.xlu0 %4297  ;;  %5081 = vrot.lane.b32.xlu1 %v5074_v14, %s12544_s22  ;;  %v5185_v14 = vcombine.low %v5174_v0, %v5178_v5 }
 0x440   : > { %9950 = vmatmul.mubr.msk.f32.vlgmr.msra.gmra.mrb[2].mxu1 %vm3744_vm1, %v9947_v49  ;;  %5282 = vrot.lane.b32.xlu0 %v11369_v17, %s12519_s16  ;;  %v4303_v25 = vsel %vm872_vm9, %v4298_v21, %v4300_v18  ;;  %v5277_v21 = vrot.slane %v9996_v4, %v10770_v46 }
 0x441   : > { %v4302_v23 = vpop.permute.xlu1 %4301  ;;  %4376 = vmatprep.mubr.f32.mxu1 %v10495_v8 }
 0x442   : > { %v4304_v24 = vsel %vm872_vm9, %v4300_v18, %v4302_v23  ;;  %v5281_v23 = vrot.slane %v9996_v4, %v11304_v1 }
 0x443   : > { %9953 = vmatprep.subr.msk.mxu1 %vm3655_vm11, %v4304_v24  ;;  %v4414_v26 = vpop.permute.xlu0 %4413  ;;  %5284 = vrot.lane.b32.xlu1 %v11375_v45, %s12519_s16  ;;  %v10001_v24 = vld [vmem:[%s12435_s1 + $0x1e] sm:$0x3] }
 0x444   : > { %9954 = vmatpush1.msk.msra.mxu1 %vm3655_vm11, %v4303_v25  ;;  %5388 = vrot.lane.b32.xlu0 %v11369_v17, %s12537_s4 }
 0x445   : > { %v4412_v27 = vpop.permute.xlu1 %4411 }
 0x446   : > { %v4416_v29 = vsel %vm748_vm7, %v4412_v27, %v4414_v26 }
 0x447   : > { %9958 = vmatprep.subr.msk.mxu1 %vm3655_vm11, %v4416_v29  ;;  %5390 = vrot.lane.b32.xlu1 %v11375_v45, %s12537_s4  ;;  %v4524_v32 = vpop.permute.xlu0 %4523 }
 0x448   : > { %9955 = vmatmul.mubr.msk.f32.vlgmr.msra.gmra.mrb[2].mxu1 %vm3744_vm1, %v9952_v22  ;;  %5494 = vrot.lane.b32.xlu0 %v11369_v17, %s12536_s2  ;;  %v5387_v22 = vrot.slane %v10001_v24, %v11304_v1 }
 0x449   : > { %v4410_v33 = vpop.permute.xlu1 %4409  ;;  %4488 = vmatprep.mubr.f32.mxu1 %v10495_v8 }
 0x44a   : > { %v4415_v34 = vsel %vm748_vm7, %v4410_v33, %v4412_v27  ;;  %v5383_v27 = vrot.slane %v10001_v24, %v10770_v46  ;;  %v10021_v24 = vld [vmem:[%s12435_s1 + $0x26] sm:$0x3] }
 0x44b   : > { %9959 = vmatpush1.msk.msra.mxu1 %vm3655_vm11, %v4415_v34  ;;  %5496 = vrot.lane.b32.xlu1 %v11375_v45, %s12536_s2  ;;  %v4522_v35 = vpop.permute.xlu0 %4521  ;;  %v10006_v34 = vld [vmem:[%s12435_s1 + $0x20] sm:$0x3] }
 0x44c   : > { %5600 = vrot.lane.b32.xlu0 %v11369_v17, %s12535_s17  ;;  %v4527_v61 = vsel %vm624_vm5, %v4522_v35, %v4524_v32 }
 0x44d   : > { %v4526_v36 = vpop.permute.xlu1 %4525 }
 0x44e   : > { %v4528_v38 = vsel %vm624_vm5, %v4524_v32, %v4526_v36  ;;  %v5291_v32 = vcombine.low %v5277_v21, %v5281_v23 }
 0x44f   : > { %9963 = vmatprep.subr.msk.mxu1 %vm3655_vm11, %v4528_v38  ;;  %5602 = vrot.lane.b32.xlu1 %v11375_v45, %s12535_s17  ;;  %v4638_v15 = vpop.permute.xlu0 %4637  ;;  %v5397_v38 = vcombine.low %v5383_v27, %v5387_v22  ;;  %v5807_v22 = vrot.slane %v10021_v24, %v10770_v46 }
 0x450   : > { %9960 = vmatmul.mubr.msk.f32.vlgmr.msra.gmra.mrb[2].mxu1 %vm3744_vm1, %v9957_v37  ;;  %5706 = vrot.lane.b32.xlu0 %v11369_v17, %s12533_s25 }
 0x451   : > { %v4636_v31 = vpop.permute.xlu1 %4635  ;;  %9964 = vmatpush1.msk.msra.mxu1 %vm3655_vm11, %v4527_v61  ;;  %4600 = vmatprep.mubr.f32.mxu1 %v10495_v8 }
 0x452   : > { %v4640_v39 = vsel %vm12545_vm3, %v4636_v31, %v4638_v15  ;;  %vm12548_vm3 = vcmask 56320   ;;  %v9992_v15 = vld [vmem:[%s12440_s6 + $0x34] sm:$0x7] }
 0x453   : > { %9968 = vmatprep.subr.msk.mxu1 %vm3655_vm11, %v4640_v39  ;;  %5708 = vrot.lane.b32.xlu1 %v11375_v45, %s12533_s25 }
 0x454   : > { %5812 = vrot.lane.b32.xlu0 %v11369_v17, %s12530_s30 }
 0x455   : > { %v4634_v40 = vpop.permute.xlu1 %4633 }
 0x456   : > { %v4639_v42 = vsel %vm12546_vm2, %v4634_v40, %v4636_v31  ;;  %vm12549_vm2 = vmmov %vm12548_vm3  ;;  %v5489_v31 = vrot.slane %v10006_v34, %v10770_v46 }
 0x457   : > { %5814 = vrot.lane.b32.xlu1 %v11375_v45, %s12530_s30 }
 0x458   : > { %9965 = vmatmul.mubr.msk.f32.vlgmr.msra.gmra.mrb[2].mxu1 %vm3744_vm1, %v9962_v41  ;;  %5918 = vrot.lane.b32.xlu0 %v11369_v17, %s12532_s3 }
 0x459   : > { %9969 = vmatpush1.msk.msra.mxu1 %vm3655_vm11, %v4639_v42  ;;  %4712 = vmatprep.mubr.f32.mxu1 %v10495_v8  ;;  %v5493_v42 = vrot.slane %v10006_v34, %v11304_v1 }
 0x45b   : > { %5920 = vrot.lane.b32.xlu1 %v11375_v45, %s12532_s3 }
 0x45c   : > { %6024 = vrot.lane.b32.xlu0 %v11369_v17, %s12517_s15 }
 0x45f   : > { %6026 = vrot.lane.b32.xlu1 %v11375_v45, %s12517_s15 }
 0x460   : > { %9970 = vmatmul.mubr.msk.f32.vlgmr.msra.gmra.mrb[2].mxu1 %vm3744_vm1, %v9967_v43  ;;  %6130 = vrot.lane.b32.xlu0 %v11369_v17, %s12521_s28 }
 0x461   : > { %4824 = vmatprep.mubr.f32.mxu1 %v10495_v8 }
 0x463   : > { %6132 = vrot.lane.b32.xlu1 %v11375_v45, %s12521_s28 }
 0x464   : > { %6236 = vrot.lane.b32.xlu0 %v11369_v17, %s12520_s18 }
 0x467   : > { %6238 = vrot.lane.b32.xlu1 %v11375_v45, %s12520_s18 }
 0x468   : > { %6342 = vrot.lane.b32.xlu0 %v11369_v17, %s12522_s29 }
 0x46b   : > { %6344 = vrot.lane.b32.xlu1 %v11375_v45, %s12522_s29 }
 0x46c   : > { %6448 = vrot.lane.b32.xlu0 %v11369_v17, %s12524_s23 }
 0x46f   : > { %6450 = vrot.lane.b32.xlu1 %v11375_v45, %s12524_s23 }
 0x470   : > { %6554 = vrot.lane.b32.xlu0 %v11369_v17, %s12523_s24 }
 0x473   : > { %6556 = vrot.lane.b32.xlu1 %v11375_v45, %s12523_s24 }
 0x474   : > { %3709 = vperm.xlu0 %10422, %v3706_v11  }
 0x492   : > { %v4750_v47 = vpop.permute.xlu1 %4749 }
 0x495   : > { %v4748_v48 = vpop.permute.xlu0 %4747 }
 0x496   : > { %v4752_v50 = vsel %vm1635_vm8, %v4748_v48, %v4750_v47 }
 0x497   : > { %9973 = vmatprep.subr.msk.mxu1 %vm3655_vm11, %v4752_v50  ;;  %v10011_v50 = vld [vmem:[%s12435_s1 + $0x22] sm:$0x3] }
 0x499   : > { %v4746_v51 = vpop.permute.xlu0 %4745 }
 0x49a   : > { %v4751_v44 = vsel %vm1635_vm8, %v4746_v51, %v4748_v48 }
 0x49b   : > { %9974 = vmatpush1.msk.msra.mxu1 %vm3655_vm11, %v4751_v44  ;;  %v5503_v44 = vcombine.low %v5489_v31, %v5493_v42  ;;  %v10012_v42 = vld [vmem:[%s12440_s6 + $0x44] sm:$0x7] }
 0x49c   : > { %9975 = vmatmul.mubr.msk.f32.vlgmr.msra.gmra.mrb[2].mxu1 %vm3744_vm1, %v9972_v30 }
 0x49d   : > { %v4860_v53 = vpop.permute.xlu1 %4859  ;;  %4936 = vmatprep.mubr.f32.mxu1 %v10495_v8 }
 0x49e   : > { %v4862_v52 = vpop.permute.xlu0 %4861 }
 0x49f   : > { %v4864_v54 = vsel %vm12497_vm6, %v4860_v53, %v4862_v52 }
 0x4a0   : > { %9978 = vmatprep.subr.msk.mxu1 %vm3655_vm11, %v4864_v54 }
 0x4a1   : > { %v4858_v56 = vpop.permute.xlu1 %4857 }
 0x4a2   : > { %v4863_v58 = vsel %vm12497_vm6, %v4858_v56, %v4860_v53  ;;  %vm12551_vm6 = vcmask 7168  }
 0x4a3   : > { %9979 = vmatpush1.msk.msra.mxu1 %vm3655_vm11, %v4863_v58  ;;  %v5599_v58 = vrot.slane %v10011_v50, %v11304_v1 }
 0x4a4   : > { %9980 = vmatmul.mubr.msk.f32.vlgmr.msra.gmra.mrb[2].mxu1 %vm3744_vm1, %v9977_v57  ;;  %v5595_v57 = vrot.slane %v10011_v50, %v10770_v46 }
 0x4a5   : > { %v4974_v63 = vpop.permute.xlu1 %4973  ;;  %5048 = vmatprep.mubr.f32.mxu1 %v10495_v8 }
 0x4a6   : > { %v4972_v3 = vpop.permute.xlu0 %4971 }
 0x4a7   : > { %v4976_v28 = vsel %vm12548_vm3, %v4972_v3, %v4974_v63  ;;  %vm12550_vm3 = vcmask 1043456   ;;  %v9997_v63 = vld [vmem:[%s12440_s6 + $0x38] sm:$0x7] }
 0x4a8   : > { %9983 = vmatprep.subr.msk.mxu1 %vm3655_vm11, %v4976_v28  ;;  %v5183_v55 = vsel %vm12550_vm3, %v5181_v7, %v5182_v9  ;;  %v5609_v9 = vcombine.low %v5595_v57, %v5599_v58  ;;  %v10017_v57 = vld [vmem:[%s12440_s6 + $0x48] sm:$0x7] }
 0x4a9   : > { %v5187_v45 = vmul.f32 %v5185_v14, %v5183_v55  ;;  %v10016_v14 = vld [vmem:[%s12435_s1 + $0x24] sm:$0x3] }
 0x4aa   : > { %v4970_v10 = vpop.permute.xlu0 %4969  ;;  %v5705_v4 = vrot.slane %v10016_v14, %v11304_v1 }
 0x4ab   : > { %v4975_v13 = vsel %vm12549_vm2, %v4970_v10, %v4972_v3  ;;  %vm12552_vm2 = vmmov %vm12551_vm6  ;;  %v5191_v20 = vcombine.high %v5187_v45, %v5187_v45 }
 0x4ac   : > { %9984 = vmatpush1.msk.msra.mxu1 %vm3655_vm11, %v4975_v13 }
 0x4ad   : > { %9985 = vmatmul.mubr.msk.f32.vlgmr.msra.gmra.mrb[2].mxu1 %vm3744_vm1, %v9982_v12  ;;  %v5084_v2 = vpop.permute.xlu1 %5083 }
 0x4ae   : > { %v5086_v60 = vpop.permute.xlu0 %5085  ;;  %5160 = vmatprep.mubr.f32.mxu1 %v10495_v8 }
 0x4af   : > { %v5088_v17 = vsel %vm12551_vm6, %v5084_v2, %v5086_v60  ;;  %vm12553_vm6 = vmmov %vm12550_vm3  ;;  %vm12554_vm3 = vcmask 1039360  }
 0x4b0   : > { %9988 = vmatprep.subr.msk.mxu1 %vm3655_vm11, %v5088_v17 }
 0x4b1   : > { %v5082_v18 = vpop.permute.xlu1 %5081 }
 0x4b2   : > { %v5283_v62 = vpop.permute.xlu0 %5282  ;;  %v5087_v49 = vsel %vm12552_vm2, %v5082_v18, %v5084_v2  ;;  %vm12555_vm2 = vmmov %vm12553_vm6 }
 0x4b3   : > { %9989 = vmatpush1.msk.msra.mxu1 %vm3655_vm11, %v5087_v49  ;;  %v5286_v29 = vrot.slane %v5283_v62, 4  ;;  %v10002_v62 = vld [vmem:[%s12440_s6 + $0x3c] sm:$0x7] }
 0x4b4   : > { %9993 = vmatprep.subr.msk.mxu1 %vm3655_vm11, %v5191_v20 }
 0x4b5   : > { %9990 = vmatmul.mubr.msk.f32.vlgmr.msra.gmra.mrb[2].mxu1 %vm3744_vm1, %v9987_v19  ;;  %v5285_v26 = vpop.permute.xlu1 %5284 }
 0x4b6   : > { %v5389_v25 = vpop.permute.xlu0 %5388  ;;  %9994 = vmatpush1.msk.msra.mxu1 %vm3655_vm11, %v5187_v45  ;;  %5263 = vmatprep.mubr.f32.mxu1 %v10495_v8  ;;  %v5287_v33 = vrot.slane %v5285_v26, 4  ;;  %v5701_v45 = vrot.slane %v10016_v14, %v10770_v46  ;;  %v10022_v14 = vld [vmem:[%s12440_s6 + $0x4c] sm:$0x7] }
 0x4b7   : > { %v5392_v39 = vrot.slane %v5389_v25, 4 }
 0x4b8   : > { %v5288_v35 = vsel %vm12553_vm6, %v5286_v29, %v5287_v33  ;;  %vm12556_vm6 = vcmask 990208   ;;  %v5715_v20 = vcombine.low %v5701_v45, %v5705_v4  ;;  %v5811_v29 = vrot.slane %v10021_v24, %v11304_v1 }
 0x4b9   : > { %v5289_v36 = vsel %vm12554_vm3, %v5288_v35, %v5285_v26  ;;  %v5391_v61 = vpop.permute.xlu1 %5390  ;;  %vm12557_vm3 = vmmov %vm12555_vm2 }
 0x4ba   : > { %v5495_v37 = vpop.permute.xlu0 %5494  ;;  %v5293_v40 = vmul.f32 %v5291_v32, %v5289_v36  ;;  %v5393_v41 = vrot.slane %v5391_v61, 4  ;;  %v10007_v32 = vld [vmem:[%s12440_s6 + $0x40] sm:$0x7]  ;;  %v5821_v36 = vcombine.low %v5807_v22, %v5811_v29 }
 0x4bb   : > { %v5498_v51 = vrot.slane %v5495_v37, 4 }
 0x4bc   : > { %v5297_v43 = vcombine.high %v5293_v40, %v5293_v40  ;;  %v5394_v11 = vsel %vm12555_vm2, %v5392_v39, %v5393_v41  ;;  %vm12558_vm2 = vcmask 982016  }
 0x4bd   : > { %9995 = vmatmul.mubr.msk.f32.vlgmr.msra.gmra.mrb[2].mxu1 %vm3744_vm1, %v9992_v15  ;;  %v5395_v47 = vsel %vm12556_vm6, %v5394_v11, %v5391_v61  ;;  %v5497_v48 = vpop.permute.xlu1 %5496  ;;  %vm12559_vm6 = vmmov %vm12557_vm3  ;;  %v10026_v61 = vld [vmem:[%s12435_s1 + $0x28] sm:$0x3] }
 0x4be   : > { %5369 = vmatprep.mubr.f32.mxu1 %v10495_v8  ;;  %v5399_v30 = vmul.f32 %v5397_v38, %v5395_v47  ;;  %v5499_v52 = vrot.slane %v5497_v48, 4  ;;  %9998 = vmatprep.subr.msk.mxu1 %vm3655_vm11, %v5297_v43  ;;  %v5601_v53 = vpop.permute.xlu0 %5600  ;;  %v5917_v41 = vrot.slane %v10026_v61, %v11304_v1 }
 0x4bf   : > { %9999 = vmatpush1.msk.msra.mxu1 %vm3655_vm11, %v5293_v40  ;;  %v5604_v28 = vrot.slane %v5601_v53, 4  ;;  %v5913_v40 = vrot.slane %v10026_v61, %v10770_v46 }
 0x4c0   : > { %v5403_v54 = vcombine.high %v5399_v30, %v5399_v30  ;;  %v5500_v56 = vsel %vm12557_vm3, %v5498_v51, %v5499_v52 }
 0x4c1   : > { %v5501_v59 = vsel %vm12558_vm2, %v5500_v56, %v5497_v48  ;;  %v5603_v3 = vpop.permute.xlu1 %5602  ;;  %vm12560_vm2 = vmmov %vm12557_vm3  ;;  %v5927_v48 = vcombine.low %v5913_v40, %v5917_v41 }
 0x4c2   : > { %v5505_v0 = vmul.f32 %v5503_v44, %v5501_v59  ;;  %v5605_v5 = vrot.slane %v5603_v3, 4  ;;  %10003 = vmatprep.subr.msk.mxu1 %vm3655_vm11, %v5403_v54  ;;  %v5707_v12 = vpop.permute.xlu0 %5706 }
 0x4c3   : > { %v5710_v2 = vrot.slane %v5707_v12, 4 }
 0x4c4   : > { %v5509_v7 = vcombine.high %v5505_v0, %v5505_v0  ;;  %v5606_v10 = vsel %vm12559_vm6, %v5604_v28, %v5605_v5  ;;  %vm12561_vm6 = vmmov %vm12560_vm2  ;;  %v10036_v5 = vld [vmem:[%s12435_s1 + $0x2c] sm:$0x3] }
 0x4c5   : > { %10000 = vmatmul.mubr.msk.f32.vlgmr.msra.gmra.mrb[2].mxu1 %vm3744_vm1, %v9997_v63  ;;  %v5607_v13 = vsel %vm1607_vm13, %v5606_v10, %v5603_v3  ;;  %v5709_v55 = vpop.permute.xlu1 %5708  ;;  %v6125_v12 = vrot.slane %v10036_v5, %v10770_v46 }
 0x4c6   : > { %10004 = vmatpush1.msk.msra.mxu1 %vm3655_vm11, %v5399_v30  ;;  %5475 = vmatprep.mubr.f32.mxu1 %v10495_v8  ;;  %v5711_v60 = vrot.slane %v5709_v55, 4  ;;  %v5611_v17 = vmul.f32 %v5609_v9, %v5607_v13  ;;  %v5813_v21 = vpop.permute.xlu0 %5812  ;;  %v10031_v30 = vld [vmem:[%s12435_s1 + $0x2a] sm:$0x3]  ;;  %v6129_v13 = vrot.slane %v10036_v5, %v11304_v1 }
 0x4c7   : > { %10008 = vmatprep.subr.msk.mxu1 %vm3655_vm11, %v5509_v7  ;;  %v5816_v26 = vrot.slane %v5813_v21, 4  ;;  %v6019_v54 = vrot.slane %v10031_v30, %v10770_v46  ;;  %v6023_v56 = vrot.slane %v10031_v30, %v11304_v1 }
 0x4c8   : > { %v5712_v18 = vsel %vm12557_vm3, %v5710_v2, %v5711_v60  ;;  %v5615_v49 = vcombine.high %v5611_v17, %v5611_v17  ;;  %vm12562_vm3 = vmmov %vm12560_vm2 }
 0x4c9   : > { %v5815_v19 = vpop.permute.xlu1 %5814  ;;  %v5713_v23 = vsel %vm526_vm15, %v5712_v18, %v5709_v55  ;;  %v6033_v63 = vcombine.low %v6019_v54, %v6023_v56 }
 0x4ca   : > { %v5817_v25 = vrot.slane %v5815_v19, 4  ;;  %v5717_v27 = vmul.f32 %v5715_v20, %v5713_v23  ;;  %v5919_v37 = vpop.permute.xlu0 %5918  ;;  %v10027_v23 = vld [vmem:[%s12440_s6 + $0x50] sm:$0x7] }
 0x4cb   : > { %v5922_v31 = vrot.slane %v5919_v37, 4 }
 0x4cc   : > { %v5818_v33 = vsel %vm12560_vm2, %v5816_v26, %v5817_v25  ;;  %v5721_v35 = vcombine.high %v5717_v27, %v5717_v27 }
 0x4cd   : > { %10005 = vmatmul.mubr.msk.f32.vlgmr.msra.gmra.mrb[2].mxu1 %vm3744_vm1, %v10002_v62  ;;  %v5921_v34 = vpop.permute.xlu1 %5920  ;;  %v5819_v38 = vsel %vm652_vm14, %v5818_v33, %v5815_v19  ;;  %v10041_v62 = vld [vmem:[%s12435_s1 + $0x2e] sm:$0x3] }
 0x4ce   : > { %10009 = vmatpush1.msk.msra.mxu1 %vm3655_vm11, %v5505_v0  ;;  %5581 = vmatprep.mubr.f32.mxu1 %v10495_v8  ;;  %v5923_v15 = vrot.slane %v5921_v34, 4  ;;  %v5823_v39 = vmul.f32 %v5821_v36, %v5819_v38  ;;  %v6025_v50 = vpop.permute.xlu0 %6024  ;;  %v6231_v20 = vrot.slane %v10041_v62, %v10770_v46  ;;  %v6235_v21 = vrot.slane %v10041_v62, %v11304_v1  ;;  %v10032_v38 = vld [vmem:[%s12440_s6 + $0x54] sm:$0x7] }
 0x4cf   : > { %10013 = vmatprep.subr.msk.mxu1 %vm3655_vm11, %v5615_v49  ;;  %v6028_v52 = vrot.slane %v6025_v50, 4 }
 0x4d0   : > { %v5924_v43 = vsel %vm12561_vm6, %v5922_v31, %v5923_v15  ;;  %v5827_v47 = vcombine.high %v5823_v39, %v5823_v39  ;;  %vm12563_vm6 = vmmov %vm12560_vm2 }
 0x4d1   : > { %v6027_v11 = vpop.permute.xlu1 %6026  ;;  %v5925_v51 = vsel %vm776_vm4, %v5924_v43, %v5921_v34 }
 0x4d2   : > { %v6029_v44 = vrot.slane %v6027_v11, 4  ;;  %v5929_v53 = vmul.f32 %v5927_v48, %v5925_v51  ;;  %v6131_v28 = vpop.permute.xlu0 %6130  ;;  %v10037_v51 = vld [vmem:[%s12440_s6 + $0x58] sm:$0x7] }
 0x4d3   : > { %v6134_v9 = vrot.slane %v6131_v28, 4 }
 0x4d4   : > { %v6030_v58 = vsel %vm12562_vm3, %v6028_v52, %v6029_v44  ;;  %v5933_v3 = vcombine.high %v5929_v53, %v5929_v53  ;;  %vm12564_vm3 = vmmov %vm12560_vm2 }
 0x4d5   : > { %10010 = vmatmul.mubr.msk.f32.vlgmr.msra.gmra.mrb[2].mxu1 %vm3744_vm1, %v10007_v32  ;;  %v6133_v59 = vpop.permute.xlu1 %6132  ;;  %v6031_v0 = vsel %vm900_vm10, %v6030_v58, %v6027_v11  ;;  %v10046_v32 = vld [vmem:[%s12435_s1 + $0x30] sm:$0x3] }
 0x4d6   : > { %10014 = vmatpush1.msk.msra.mxu1 %vm3655_vm11, %v5611_v17  ;;  %5687 = vmatprep.mubr.f32.mxu1 %v10495_v8  ;;  %v6135_v7 = vrot.slane %v6133_v59, 4  ;;  %v6035_v10 = vmul.f32 %v6033_v63, %v6031_v0  ;;  %v6139_v17 = vcombine.low %v6125_v12, %v6129_v13  ;;  %v6237_v45 = vpop.permute.xlu0 %6236  ;;  %v6337_v36 = vrot.slane %v10046_v32, %v10770_v46  ;;  %v10042_v0 = vld [vmem:[%s12440_s6 + $0x5c] sm:$0x7]  ;;  %v10047_v13 = vld [vmem:[%s12440_s6 + $0x60] sm:$0x7] }
 0x4d7   : > { %10018 = vmatprep.subr.msk.mxu1 %vm3655_vm11, %v5721_v35  ;;  %v6240_v19 = vrot.slane %v6237_v45, 4  ;;  %v6341_v37 = vrot.slane %v10046_v32, %v11304_v1 }
 0x4d8   : > { %v6136_v55 = vsel %vm12560_vm2, %v6134_v9, %v6135_v7  ;;  %v6039_v2 = vcombine.high %v6035_v10, %v6035_v10 }
 0x4d9   : > { %v6239_v60 = vpop.permute.xlu1 %6238  ;;  %v6137_v4 = vsel %vm996_vm12, %v6136_v55, %v6133_v59  ;;  %v10052_v55 = vld [vmem:[%s12440_s6 + $0x64] sm:$0x7] }
 0x4da   : > { %v6241_v18 = vrot.slane %v6239_v60, 4  ;;  %v6141_v49 = vmul.f32 %v6139_v17, %v6137_v4  ;;  %v6343_v22 = vpop.permute.xlu0 %6342 }
 0x4db   : > { %v6346_v34 = vrot.slane %v6343_v22, 4 }
 0x4dc   : > { %v6242_v24 = vsel %vm12563_vm6, %v6240_v19, %v6241_v18  ;;  %v6145_v26 = vcombine.high %v6141_v49, %v6141_v49  ;;  %vm12565_vm6 = vmmov %vm12560_vm2 }
 0x4dd   : > { %10015 = vmatmul.mubr.msk.f32.vlgmr.msra.gmra.mrb[2].mxu1 %vm3744_vm1, %v10012_v42  ;;  %v6345_v25 = vpop.permute.xlu1 %6344  ;;  %v6243_v29 = vsel %vm872_vm9, %v6242_v24, %v6239_v60  ;;  %v10051_v42 = vld [vmem:[%s12435_s1 + $0x32] sm:$0x3]  ;;  %v10057_v60 = vld [vmem:[%s12440_s6 + $0x68] sm:$0x7] }
 0x4de   : > { %10019 = vmatpush1.msk.msra.mxu1 %vm3655_vm11, %v5717_v27  ;;  %5793 = vmatprep.mubr.f32.mxu1 %v10495_v8  ;;  %v6245_v27 = vcombine.low %v6231_v20, %v6235_v21  ;;  %v6347_v33 = vrot.slane %v6345_v25, 4  ;;  %v6449_v40 = vpop.permute.xlu0 %6448  ;;  %v6443_v48 = vrot.slane %v10051_v42, %v10770_v46  ;;  %v6447_v50 = vrot.slane %v10051_v42, %v11304_v1  ;;  %v6678_v20 = vld [vmem:[%s12443_s9] sm:$0x7] }
 0x4df   : > { %10023 = vmatprep.subr.msk.mxu1 %vm3655_vm11, %v5827_v47  ;;  %v6452_v11 = vrot.slane %v6449_v40, 4  ;;  %v6710_v21 = vld [vmem:[%s12435_s1] sm:$0x3] }
 0x4e0   : > { %v6247_v35 = vmul.f32 %v6245_v27, %v6243_v29  ;;  %v6348_v61 = vsel %vm12564_vm3, %v6346_v34, %v6347_v33  ;;  %vm12566_vm3 = vcmask 449536   ;;  %v6715_v24 = vrot.slane %v6710_v21, %v10770_v46  ;;  %v10079_v29 = vld [vmem:[%s12435_s1 + $0x8] sm:$0x3] }
 0x4e1   : > { %v6451_v15 = vpop.permute.xlu1 %6450  ;;  %v6349_v41 = vsel %vm748_vm7, %v6348_v61, %v6345_v25  ;;  %v6719_v25 = vrot.slane %v6710_v21, %v11304_v1  ;;  %v7162_v33 = vrot.slane %v10079_v29, %v10770_v46  ;;  %v7166_v34 = vrot.slane %v10079_v29, %v11304_v1  ;;  %v10099_v61 = vld [vmem:[%s12435_s1 + $0x10] sm:$0x3] }
 0x4e2   : > { %v6251_v31 = vcombine.high %v6247_v35, %v6247_v35  ;;  %v6453_v43 = vrot.slane %v6451_v15, 4  ;;  %v6555_v54 = vpop.permute.xlu0 %6554 }
 0x4e3   : > { %v6558_v59 = vrot.slane %v6555_v54, 4  ;;  %v6720_v22 = vcombine.low %v6715_v24, %v6719_v25  ;;  %v6670_v54 = vld [vmem:[%s12442_s8] sm:$0x7] }
 0x4e4   : > { %v6454_v30 = vsel %vm12560_vm2, %v6452_v11, %v6453_v43 }
 0x4e5   : > { %10020 = vmatmul.mubr.msk.f32.vlgmr.msra.gmra.mrb[2].mxu1 %vm3744_vm1, %v10017_v57  ;;  %v6557_v44 = vpop.permute.xlu1 %6556  ;;  %v6455_v56 = vsel %vm624_vm5, %v6454_v30, %v6451_v15  ;;  %v10056_v57 = vld [vmem:[%s12435_s1 + $0x34] sm:$0x3] }
 0x4e6   : > { %10024 = vmatpush1.msk.msra.mxu1 %vm3655_vm11, %v5823_v39  ;;  %5899 = vmatprep.mubr.f32.mxu1 %v10495_v8  ;;  %v6351_v39 = vcombine.low %v6337_v36, %v6341_v37  ;;  %v6559_v58 = vrot.slane %v6557_v44, 4  ;;  %v6549_v63 = vrot.slane %v10056_v57, %v10770_v46  ;;  %v6553_v28 = vrot.slane %v10056_v57, %v11304_v1 }
 0x4e7   : > { %10028 = vmatprep.subr.msk.mxu1 %vm3655_vm11, %v5933_v3  ;;  %v7167_v36 = vcombine.low %v7162_v33, %v7166_v34 }
 0x4e8   : > { %v6353_v47 = vmul.f32 %v6351_v39, %v6349_v41  ;;  %v6560_v5 = vsel %vm12565_vm6, %v6558_v59, %v6559_v58  ;;  %v6563_v9 = vcombine.low %v6549_v63, %v6553_v28  ;;  %v7614_v39 = vrot.slane %v10099_v61, %v11304_v1 }
 0x4ea   : > { %v6357_v52 = vcombine.high %v6353_v47, %v6353_v47 }
 0x4ed   : > { %10025 = vmatmul.mubr.msk.f32.vlgmr.msra.gmra.mrb[2].mxu1 %vm3744_vm1, %v10022_v14 }
 0x4ee   : > { %10029 = vmatpush1.msk.msra.mxu1 %vm3655_vm11, %v5929_v53  ;;  %6005 = vmatprep.mubr.f32.mxu1 %v10495_v8  ;;  %v6457_v53 = vcombine.low %v6443_v48, %v6447_v50 }
 0x4ef   : > { %10033 = vmatprep.subr.msk.mxu1 %vm3655_vm11, %v6039_v2 }
 0x4f0   : > { %v6459_v3 = vmul.f32 %v6457_v53, %v6455_v56  ;;  %v10074_v56 = vld [vmem:[%s12435_s1 + $0x6] sm:$0x3] }
 0x4f1   : > { %v7050_v58 = vrot.slane %v10074_v56, %v10770_v46  ;;  %v7054_v59 = vrot.slane %v10074_v56, %v11304_v1 }
 0x4f2   : > { %v6463_v7 = vcombine.high %v6459_v3, %v6459_v3 }
 0x4f3   : > { %v3710_v2 = vpop.permute.xlu0 %3709  ;;  %v7055_v63 = vcombine.low %v7050_v58, %v7054_v59 }
 0x4f5   : > { %10030 = vmatmul.mubr.msk.f32.vlgmr.msra.gmra.mrb[2].mxu1 %vm3744_vm1, %v10027_v23  ;;  %v10069_v23 = vld [vmem:[%s12435_s1 + $0x4] sm:$0x3] }
 0x4f6   : > { %10034 = vmatpush1.msk.msra.mxu1 %vm3655_vm11, %v6035_v10  ;;  %6111 = vmatprep.mubr.f32.mxu1 %v10495_v8  ;;  %v6561_v10 = vsel %vm12566_vm3, %v6560_v5, %v6557_v44  ;;  %v6942_v27 = vrot.slane %v10069_v23, %v11304_v1  ;;  %v10064_v44 = vld [vmem:[%s12435_s1 + $0x2] sm:$0x3]  ;;  %v10094_v5 = vld [vmem:[%s12435_s1 + $0xe] sm:$0x3] }
 0x4f7   : > { %10038 = vmatprep.subr.msk.mxu1 %vm3655_vm11, %v6145_v26  ;;  %v6565_v12 = vmul.f32 %v6563_v9, %v6561_v10  ;;  %v6938_v26 = vrot.slane %v10069_v23, %v10770_v46  ;;  %v6830_v53 = vrot.slane %v10064_v44, %v11304_v1  ;;  %v7498_v9 = vrot.slane %v10094_v5, %v10770_v46 }
 0x4f8   : > { %v7502_v10 = vrot.slane %v10094_v5, %v11304_v1 }
 0x4f9   : > { %v6569_v14 = vcombine.high %v6565_v12, %v6565_v12  ;;  %v6943_v32 = vcombine.low %v6938_v26, %v6942_v27 }
 0x4fd   : > { %10035 = vmatmul.mubr.msk.f32.vlgmr.msra.gmra.mrb[2].mxu1 %vm3744_vm1, %v10032_v38 }
 0x4fe   : > { %10039 = vmatpush1.msk.msra.mxu1 %vm3655_vm11, %v6141_v49  ;;  %6217 = vmatprep.mubr.f32.mxu1 %v10495_v8 }
 0x4ff   : > { %10043 = vmatprep.subr.msk.mxu1 %vm3655_vm11, %v6251_v31  ;;  %v7610_v31 = vrot.slane %v10099_v61, %v10770_v46 }
 0x501   : > { %v7615_v40 = vcombine.low %v7610_v31, %v7614_v39 }
 0x505   : > { %10040 = vmatmul.mubr.msk.f32.vlgmr.msra.gmra.mrb[2].mxu1 %vm3744_vm1, %v10037_v51 }
 0x506   : > { %10044 = vmatpush1.msk.msra.mxu1 %vm3655_vm11, %v6247_v35  ;;  %6323 = vmatprep.mubr.f32.mxu1 %v10495_v8  ;;  %v10089_v35 = vld [vmem:[%s12435_s1 + $0xc] sm:$0x3] }
 0x507   : > { %10048 = vmatprep.subr.msk.mxu1 %vm3655_vm11, %v6357_v52  ;;  %v7386_v37 = vrot.slane %v10089_v35, %v10770_v46  ;;  %v7390_v38 = vrot.slane %v10089_v35, %v11304_v1  ;;  %v6826_v52 = vrot.slane %v10064_v44, %v10770_v46  ;;  %v10114_v44 = vld [vmem:[%s12435_s1 + $0x16] sm:$0x3] }
 0x508   : > { %v7950_v56 = vrot.slane %v10114_v44, %v11304_v1 }
 0x509   : > { %v7391_v15 = vcombine.low %v7386_v37, %v7390_v38  ;;  %v6831_v57 = vcombine.low %v6826_v52, %v6830_v53 }
 0x50d   : > { %10045 = vmatmul.mubr.msk.f32.vlgmr.msra.gmra.mrb[2].mxu1 %vm3744_vm1, %v10042_v0 }
 0x50e   : > { %10049 = vmatpush1.msk.msra.mxu1 %vm3655_vm11, %v6353_v47  ;;  %6429 = vmatprep.mubr.f32.mxu1 %v10495_v8 }
 0x50f   : > { %10053 = vmatprep.subr.msk.mxu1 %vm3655_vm11, %v6463_v7 }
 0x515   : > { %10050 = vmatmul.mubr.msk.f32.vlgmr.msra.gmra.mrb[2].mxu1 %vm3744_vm1, %v10047_v13 }
 0x516   : > { %10054 = vmatpush1.msk.msra.mxu1 %vm3655_vm11, %v6459_v3  ;;  %6535 = vmatprep.mubr.f32.mxu1 %v10495_v8  ;;  %v10084_v3 = vld [vmem:[%s12435_s1 + $0xa] sm:$0x3] }
 0x517   : > { %10058 = vmatprep.subr.msk.mxu1 %vm3655_vm11, %v6569_v14  ;;  %v7274_v28 = vrot.slane %v10084_v3, %v10770_v46  ;;  %v7278_v0 = vrot.slane %v10084_v3, %v11304_v1 }
 0x519   : > { %v7279_v7 = vcombine.low %v7274_v28, %v7278_v0  ;;  %v10119_v28 = vld [vmem:[%s12435_s1 + $0x18] sm:$0x3] }
 0x51d   : > { %10055 = vmatmul.mubr.msk.f32.vlgmr.msra.gmra.mrb[2].mxu1 %vm3744_vm1, %v10052_v55 }
 0x51e   : > { %10059 = vmatpush1.msk.msra.mxu1 %vm3655_vm11, %v6565_v12  ;;  %6641 = vmatprep.mubr.f32.mxu1 %v10495_v8  ;;  %v7503_v12 = vcombine.low %v7498_v9, %v7502_v10  ;;  %v8062_v9 = vrot.slane %v10119_v28, %v11304_v1 }
 0x525   : > { %10060 = vmatmul.mubr.msk.f32.vlgmr.msra.gmra.mrb[2].mxu1 %vm3744_vm1, %v10057_v60 }
 0x5f8   : > { %v6643_v17 = vpop.f32.mrb[2].mxu1 }
 0x5f9   : > { %v10204_v45 = vadd.f32 %v6643_v17, %v3710_v2  ;;  %v6645_v4 = vpop.f32.mrb[3].mxu1 }
 0x5fa   : > { %v10205_v62 = vadd.f32 %v6645_v4, %v3710_v2 }
 0x5fb   : > { %v6650_v18 = vsel %vm3655_vm11, %v10204_v45, 0.0 }
 0x5fc   : > { %v6651_v19 = vsel %vm3655_vm11, %v10205_v62, 0.0 }
 0x5fd   : > { %v6652_v49 = vadd.f32 %v6651_v19, %v6650_v18 }
 0x5ff   : > { %6653 = vadd.xlane.f32.xlu1 %v6652_v49 }
 0x610   : > { %6681 = vperm.xlu1 %10423, %v6678_v20  }
 0x614   : > { %6721 = vrot.lane.b32.xlu1 %v6720_v22, %s12523_s24  ;;  %v10104_v22 = vld [vmem:[%s12435_s1 + $0x12] sm:$0x3] }
 0x615   : > { %v7722_v33 = vrot.slane %v10104_v22, %v10770_v46  ;;  %v7726_v34 = vrot.slane %v10104_v22, %v11304_v1 }
 0x617   : > { %v7727_v31 = vcombine.low %v7722_v33, %v7726_v34 }
 0x618   : > { %6944 = vrot.lane.b32.xlu1 %v6943_v32, %s12522_s29 }
 0x61c   : > { %7168 = vrot.lane.b32.xlu1 %v7167_v36, %s12521_s28 }
 0x620   : > { %7392 = vrot.lane.b32.xlu1 %v7391_v15, %s12532_s3 }
 0x624   : > { %7616 = vrot.lane.b32.xlu1 %v7615_v40, %s12533_s25  ;;  %v10109_v40 = vld [vmem:[%s12435_s1 + $0x14] sm:$0x3] }
 0x68c   : > { %v6654_v41 = vpop.xlane.xlu1 %6653 }
 0x68d   : > { %v6655_v42 = vmul.f32 0.00390625, %v6654_v41 }
 0x68f   : > { %v6656_v43 = vsub.f32 %v10204_v45, %v6655_v42  ;;  %v6657_v11 = vsub.f32 %v10205_v62, %v6655_v42 }
 0x690   : > { %v6682_v18 = vpop.permute.xlu1 %6681 }
 0x691   : > { %v6658_v47 = vmul.f32 %v6656_v43, %v6656_v43  ;;  %v6659_v48 = vmul.f32 %v6657_v11, %v6657_v11 }
 0x693   : > { %v6660_v50 = vsel %vm3655_vm11, %v6658_v47, 0.0  ;;  %v6661_v51 = vsel %vm3655_vm11, %v6659_v48, 0.0 }
 0x694   : > { %v6662_v30 = vadd.f32 %v6661_v51, %v6660_v50  ;;  %v6722_v26 = vpop.permute.xlu1 %6721 }
 0x695   : > { %v6723_v27 = vrot.slane %v6722_v26, 4 }
 0x696   : > { %6663 = vadd.xlane.f32.xlu0 %v6662_v30 }
 0x697   : > { %v6724_v29 = vsel %vm12566_vm3, %v6723_v27, %v6722_v26  ;;  %vm12569_vm3 = vcmask 1039360  }
 0x698   : > { %v6945_v42 = vpop.permute.xlu1 %6944 }
 0x699   : > { %v6946_v47 = vrot.slane %v6945_v42, 4 }
 0x69b   : > { %v6947_v30 = vsel %vm748_vm7, %v6946_v47, %v6945_v42 }
 0x69c   : > { %v7169_v5 = vpop.permute.xlu1 %7168 }
 0x69d   : > { %v7170_v10 = vrot.slane %v7169_v5, 4 }
 0x6ac   : > { %6673 = vperm.xlu0 %10422, %v6670_v54   ;;  %v7946_v54 = vrot.slane %v10114_v44, %v10770_v46 }
 0x6ae   : > { %v7951_v3 = vcombine.low %v7946_v54, %v7950_v56 }
 0x6b0   : > { %6832 = vrot.lane.b32.xlu0 %v6831_v57, %s12524_s23 }
 0x6b4   : > { %7056 = vrot.lane.b32.xlu0 %v7055_v63, %s12520_s18 }
 0x6b8   : > { %7280 = vrot.lane.b32.xlu0 %v7279_v7, %s12517_s15  ;;  %v8058_v7 = vrot.slane %v10119_v28, %v10770_v46 }
 0x6bc   : > { %7504 = vrot.lane.b32.xlu0 %v7503_v12, %s12530_s30 }
 0x723   : > { %v6664_v13 = vpop.xlane.xlu0 %6663 }
 0x724   : > { %v6665_v14 = vmul.f32 0.00390625, %v6664_v13 }
 0x726   : > { %v6666_v55 = vadd.f32 1e-05, %v6665_v14 }
 0x728   : > { %10426 = vrsqrt.f32 %v6666_v55 }
 0x72b   : > { %v6674_v45 = vpop.permute.xlu0 %6673 }
 0x72f   : > { %v6833_v32 = vpop.permute.xlu0 %6832 }
 0x730   : > { %v6834_v37 = vrot.slane %v6833_v32, 4 }
 0x732   : > { %v10427_v60 = vpop.eup %10426  ;;  %v6835_v39 = vsel %vm624_vm5, %v6834_v37, %v6833_v32 }
 0x733   : > { %v6668_v2 = vmul.f32 %v10427_v60, %v6656_v43  ;;  %v6669_v17 = vmul.f32 %v10427_v60, %v6657_v11  ;;  %v7834_v43 = vrot.slane %v10109_v40, %v10770_v46  ;;  %v7838_v11 = vrot.slane %v10109_v40, %v11304_v1  ;;  %v7057_v53 = vpop.permute.xlu0 %7056 }
 0x734   : > { %v7058_v57 = vrot.slane %v7057_v53, 4  ;;  %v8063_v60 = vcombine.low %v8058_v7, %v8062_v9 }
 0x735   : > { %v6676_v4 = vmul.f32 %v6674_v45, %v6668_v2  ;;  %v6677_v62 = vmul.f32 %v6674_v45, %v6669_v17  ;;  %v7839_v51 = vcombine.low %v7834_v43, %v7838_v11  ;;  %v7171_v2 = vsel %vm996_vm12, %v7170_v10, %v7169_v5 }
 0x736   : > { %v7059_v63 = vsel %vm872_vm9, %v7058_v57, %v7057_v53 }
 0x737   : > { %v6684_v19 = vadd.f32 %v6682_v18, %v6676_v4  ;;  %v6685_v49 = vadd.f32 %v6682_v18, %v6677_v62  ;;  %v7281_v13 = vpop.permute.xlu0 %7280 }
 0x738   : > { %v7282_v14 = vrot.slane %v7281_v13, 4 }
 0x739   : > { %vm6686_vm2 = vcmp.ge.f32.partialorder %v6684_v19, 0.0  ;;  %vm6687_vm6 = vcmp.ge.f32.partialorder %v6685_v49, 0.0  ;;  %v6688_v20 = vmul.f32 0.01, %v6684_v19  ;;  %v6689_v21 = vmul.f32 0.01, %v6685_v49 }
 0x73a   : > { %v7283_v17 = vsel %vm900_vm10, %v7282_v14, %v7281_v13 }
 0x73b   : > { %v6690_v23 = vsel %vm6686_vm2, %v6684_v19, %v6688_v20  ;;  %v6691_v24 = vsel %vm6687_vm6, %v6685_v49, %v6689_v21  ;;  %v7393_v19 = vpop.permute.xlu1 %7392  ;;  %v7505_v49 = vpop.permute.xlu0 %7504  ;;  %vm12567_vm2 = vcmask 982016   ;;  %vm12568_vm6 = vcmask 990208  }
 0x73c   : > { %v6694_v25 = vcombine.low %v6690_v23, %v6691_v24  ;;  %v7394_v20 = vrot.slane %v7393_v19, 4  ;;  %v7506_v23 = vrot.slane %v7505_v49, 4 }
 0x73e   : > { %6696 = vst [vmem:[#allocation2 + $0x4] sm:$0x77] %v6694_v25  ;;  %v7395_v24 = vsel %vm776_vm4, %v7394_v20, %v7393_v19  ;;  %v7507_v25 = vsel %vm652_vm14, %v7506_v23, %v7505_v49 }
 0x73f   : > { %v7617_v32 = vpop.permute.xlu1 %7616 }
 0x740   : > { %v7618_v34 = vrot.slane %v7617_v32, 4 }
 0x745   : > { %v11912_v35 = vld [vmem:[#allocation2] sm:$0x77]  ;;  %v11914_v36 = vld [vmem:[#allocation2 + $0x8] sm:$0x77] }
 0x746   : > { %v6727_v38 = vmul.f32 %v6724_v29, %v11912_v35  ;;  %v6728_v61 = vmul.f32 %v6723_v27, %v11914_v36  ;;  %v6838_v41 = vmul.f32 %v6835_v39, %v11912_v35  ;;  %v6839_v48 = vmul.f32 %v6834_v37, %v11914_v36 }
 0x747   : > { %v6950_v52 = vmul.f32 %v6947_v30, %v11912_v35  ;;  %v6951_v58 = vmul.f32 %v6946_v47, %v11914_v36  ;;  %v7062_v0 = vmul.f32 %v7059_v63, %v11912_v35  ;;  %v7063_v12 = vmul.f32 %v7058_v57, %v11914_v36 }
 0x748   : > { %v6732_v15 = vcombine.high %v6727_v38, %v6727_v38  ;;  %6737 = vrot.lane.b32.xlu1 %v6728_v61, %s12533_s25  ;;  %v6844_v50 = vcombine.high %v6838_v41, %v6838_v41  ;;  %v7174_v45 = vmul.f32 %v7171_v2, %v11912_v35  ;;  %v7175_v4 = vmul.f32 %v7170_v10, %v11914_v36 }
 0x749   : > { %v6956_v59 = vcombine.high %v6950_v52, %v6950_v52  ;;  %v7068_v55 = vcombine.high %v7062_v0, %v7062_v0  ;;  %v7286_v62 = vmul.f32 %v7283_v17, %v11912_v35  ;;  %v7287_v26 = vmul.f32 %v7282_v14, %v11914_v36 }
 0x74a   : > { %6735 = vrot.lane.b32.xlu0 %v6732_v15, %s12533_s25  ;;  %v7180_v18 = vcombine.high %v7174_v45, %v7174_v45  ;;  %v7398_v27 = vmul.f32 %v7395_v24, %v11912_v35  ;;  %v7399_v22 = vmul.f32 %v7394_v20, %v11914_v36  ;;  %v7510_v29 = vmul.f32 %v7507_v25, %v11912_v35  ;;  %v10075_v24 = vld [vmem:[%s12444_s10 + $0x3] sm:$0x1] }
 0x74b   : > { %v7292_v21 = vcombine.high %v7286_v62, %v7286_v62  ;;  %v7511_v61 = vmul.f32 %v7506_v23, %v11914_v36 }
 0x74c   : > { %7728 = vrot.lane.b32.xlu1 %v7727_v31, %s12535_s17  ;;  %v7404_v33 = vcombine.high %v7398_v27, %v7398_v27  ;;  %v7516_v37 = vcombine.high %v7510_v29, %v7510_v29  ;;  %v7623_v31 = vmul.f32 %v7618_v34, %v11914_v36 }
 0x74e   : > { %6733 = vrot.lane.b32.xlu0 %v6727_v38, %s12533_s25  ;;  %v7619_v38 = vsel %vm526_vm15, %v7618_v34, %v7617_v32 }
 0x74f   : > { %v7622_v15 = vmul.f32 %v7619_v38, %v11912_v35 }
 0x750   : > { %6849 = vrot.lane.b32.xlu1 %v6839_v48, %s12530_s30  ;;  %v6729_v48 = vld [vmem:[%s12444_s10] sm:$0x1] }
 0x751   : > { %v7628_v39 = vcombine.high %v7622_v15, %v7622_v15 }
 0x752   : > { %6847 = vrot.lane.b32.xlu0 %v6844_v50, %s12530_s30 }
 0x754   : > { %7840 = vrot.lane.b32.xlu1 %v7839_v51, %s12536_s2 }
 0x756   : > { %6845 = vrot.lane.b32.xlu0 %v6838_v41, %s12530_s30 }
 0x758   : > { %6961 = vrot.lane.b32.xlu1 %v6951_v58, %s12532_s3 }
 0x75a   : > { %6959 = vrot.lane.b32.xlu0 %v6956_v59, %s12532_s3 }
 0x75c   : > { %7952 = vrot.lane.b32.xlu1 %v7951_v3, %s12537_s4  ;;  %v10065_v3 = vld [vmem:[%s12444_s10 + $0x1] sm:$0x1] }
 0x75e   : > { %6957 = vrot.lane.b32.xlu0 %v6950_v52, %s12532_s3 }
 0x760   : > { %7073 = vrot.lane.b32.xlu1 %v7063_v12, %s12517_s15 }
 0x762   : > { %7071 = vrot.lane.b32.xlu0 %v7068_v55, %s12517_s15 }
 0x764   : > { %8064 = vrot.lane.b32.xlu1 %v8063_v60, %s12519_s16  ;;  %v10070_v60 = vld [vmem:[%s12444_s10 + $0x2] sm:$0x1] }
 0x766   : > { %7069 = vrot.lane.b32.xlu0 %v7062_v0, %s12517_s15 }
 0x768   : > { %7185 = vrot.lane.b32.xlu1 %v7175_v4, %s12521_s28 }
 0x76a   : > { %7183 = vrot.lane.b32.xlu0 %v7180_v18, %s12521_s28 }
 0x76c   : > { %7295 = vrot.lane.b32.xlu1 %v7292_v21, %s12520_s18 }
 0x76e   : > { %7181 = vrot.lane.b32.xlu0 %v7174_v45, %s12521_s28 }
 0x770   : > { %7293 = vrot.lane.b32.xlu1 %v7286_v62, %s12520_s18 }
 0x772   : > { %7297 = vrot.lane.b32.xlu0 %v7287_v26, %s12520_s18 }
 0x774   : > { %7409 = vrot.lane.b32.xlu1 %v7399_v22, %s12522_s29 }
 0x776   : > { %7407 = vrot.lane.b32.xlu0 %v7404_v33, %s12522_s29 }
 0x778   : > { %7519 = vrot.lane.b32.xlu1 %v7516_v37, %s12524_s23 }
 0x77a   : > { %7405 = vrot.lane.b32.xlu0 %v7398_v27, %s12522_s29 }
 0x77c   : > { %7517 = vrot.lane.b32.xlu1 %v7510_v29, %s12524_s23 }
 0x77e   : > { %7521 = vrot.lane.b32.xlu0 %v7511_v61, %s12524_s23 }
 0x780   : > { %7633 = vrot.lane.b32.xlu1 %v7623_v31, %s12523_s24 }
 0x782   : > { %7631 = vrot.lane.b32.xlu0 %v7628_v39, %s12523_s24 }
 0x786   : > { %7629 = vrot.lane.b32.xlu0 %v7622_v15, %s12523_s24  ;;  %v10080_v15 = vld [vmem:[%s12444_s10 + $0x4] sm:$0x1] }
 0x7ba   : > { %v6738_v40 = vpop.permute.xlu1 %6737 }
 0x7bc   : > { %v6736_v41 = vpop.permute.xlu0 %6735 }
 0x7bd   : > { %v6740_v42 = vsel %vm526_vm15, %v6736_v41, %v6738_v40 }
 0x7be   : > { %10061 = vmatprep.subr.msk.mxu0 %vm3655_vm11, %v6740_v42  ;;  %v7729_v43 = vpop.permute.xlu1 %7728 }
 0x7bf   : > { %v7730_v11 = vrot.slane %v7729_v43, 4 }
 0x7c0   : > { %v6734_v47 = vpop.permute.xlu0 %6733 }
 0x7c1   : > { %v7731_v50 = vsel %vm1607_vm13, %v7730_v11, %v7729_v43  ;;  %v7735_v51 = vmul.f32 %v7730_v11, %v11914_v36  ;;  %v6739_v30 = vsel %vm526_vm15, %v6734_v47, %v6736_v41  ;;  %v10085_v47 = vld [vmem:[%s12444_s10 + $0x5] sm:$0x1] }
 0x7c2   : > { %v7734_v44 = vmul.f32 %v7731_v50, %v11912_v35  ;;  %10062 = vmatpush1.msk.msra.mxu0 %vm3655_vm11, %v6739_v30  ;;  %v6850_v52 = vpop.permute.xlu1 %6849 }
 0x7c3   : > { %10063 = vmatmul.mubr.msk.f32.vlgmr.msra.gmra.mrb[2].mxu0 %vm3744_vm1, %v6729_v48  ;;  %7745 = vrot.lane.b32.xlu0 %v7735_v51, %s12538_s0 }
 0x7c4   : > { %v7740_v53 = vcombine.high %v7734_v44, %v7734_v44  ;;  %v6848_v54 = vpop.permute.xlu0 %6847  ;;  %6924 = vmatprep.mubr.f32.mxu0 %v10495_v8 }
 0x7c5   : > { %v6852_v56 = vsel %vm652_vm14, %v6848_v54, %v6850_v52 }
 0x7c6   : > { %7743 = vrot.lane.b32.xlu1 %v7740_v53, %s12538_s0  ;;  %10066 = vmatprep.subr.msk.mxu0 %vm3655_vm11, %v6852_v56  ;;  %v7841_v57 = vpop.permute.xlu1 %7840  ;;  %v10090_v53 = vld [vmem:[%s12444_s10 + $0x6] sm:$0x1] }
 0x7c7   : > { %v7842_v58 = vrot.slane %v7841_v57, 4 }
 0x7c8   : > { %v6846_v59 = vpop.permute.xlu0 %6845 }
 0x7c9   : > { %v7843_v63 = vsel %vm12567_vm2, %v7842_v58, %v7841_v57  ;;  %v6851_v28 = vsel %vm652_vm14, %v6846_v59, %v6848_v54  ;;  %v7847_v7 = vmul.f32 %v7842_v58, %v11914_v36  ;;  %vm12570_vm2 = vcmask 449536  }
 0x7ca   : > { %v7846_v0 = vmul.f32 %v7843_v63, %v11912_v35  ;;  %7741 = vrot.lane.b32.xlu1 %v7734_v44, %s12538_s0  ;;  %10067 = vmatpush1.msk.msra.mxu0 %vm3655_vm11, %v6851_v28  ;;  %v6962_v5 = vpop.permute.xlu1 %6961  ;;  %v10100_v28 = vld [vmem:[%s12444_s10 + $0x8] sm:$0x1] }
 0x7cb   : > { %10068 = vmatmul.mubr.msk.f32.vlgmr.msra.gmra.mrb[2].mxu0 %vm3744_vm1, %v10065_v3  ;;  %v10095_v3 = vld [vmem:[%s12444_s10 + $0x7] sm:$0x1] }
 0x7cc   : > { %v7852_v9 = vcombine.high %v7846_v0, %v7846_v0  ;;  %v6960_v10 = vpop.permute.xlu0 %6959  ;;  %7036 = vmatprep.mubr.f32.mxu0 %v10495_v8 }
 0x7cd   : > { %v6964_v12 = vsel %vm776_vm4, %v6960_v10, %v6962_v5 }
 0x7ce   : > { %7857 = vrot.lane.b32.xlu1 %v7847_v7, %s12540_s5  ;;  %7855 = vrot.lane.b32.xlu0 %v7852_v9, %s12540_s5  ;;  %v7953_v13 = vpop.permute.xlu1 %7952 }
 0x7cf   : > { %10071 = vmatprep.subr.msk.mxu0 %vm3655_vm11, %v6964_v12  ;;  %v7954_v14 = vrot.slane %v7953_v13, 4  ;;  %v10105_v12 = vld [vmem:[%s12444_s10 + $0x9] sm:$0x1] }
 0x7d0   : > { %v6958_v55 = vpop.permute.xlu0 %6957 }
 0x7d1   : > { %v7955_v2 = vsel %vm12568_vm6, %v7954_v14, %v7953_v13  ;;  %v6963_v17 = vsel %vm776_vm4, %v6958_v55, %v6960_v10  ;;  %v7959_v62 = vmul.f32 %v7954_v14, %v11914_v36  ;;  %vm12571_vm6 = vmmov %vm12570_vm2 }
 0x7d2   : > { %v7958_v45 = vmul.f32 %v7955_v2, %v11912_v35  ;;  %7853 = vrot.lane.b32.xlu0 %v7846_v0, %s12540_s5  ;;  %10072 = vmatpush1.msk.msra.mxu0 %vm3655_vm11, %v6963_v17  ;;  %v7074_v4 = vpop.permute.xlu1 %7073  ;;  %v6699_v0 = vld [vmem:[#allocation3] sm:$0x1]  ;;  %v10110_v17 = vld [vmem:[%s12444_s10 + $0xa] sm:$0x1] }
 0x7d3   : > { %10073 = vmatmul.mubr.msk.f32.vlgmr.msra.gmra.mrb[2].mxu0 %vm3744_vm1, %v10070_v60 }
 0x7d4   : > { %v7964_v18 = vcombine.high %v7958_v45, %v7958_v45  ;;  %v7072_v19 = vpop.permute.xlu0 %7071  ;;  %7148 = vmatprep.mubr.f32.mxu0 %v10495_v8 }
 0x7d5   : > { %v7076_v49 = vsel %vm900_vm10, %v7072_v19, %v7074_v4  ;;  %v10124_v4 = vld [vmem:[%s12435_s1 + $0x1a] sm:$0x3] }
 0x7d6   : > { %7969 = vrot.lane.b32.xlu0 %v7959_v62, %s12542_s21  ;;  %7967 = vrot.lane.b32.xlu1 %v7964_v18, %s12542_s21  ;;  %v8065_v20 = vpop.permute.xlu1 %8064 }
 0x7d7   : > { %10076 = vmatprep.subr.msk.mxu0 %vm3655_vm11, %v7076_v49  ;;  %v8066_v21 = vrot.slane %v8065_v20, 4  ;;  %v8170_v49 = vrot.slane %v10124_v4, %v10770_v46 }
 0x7d8   : > { %v7070_v23 = vpop.permute.xlu0 %7069 }
 0x7d9   : > { %v8067_v25 = vsel %vm12569_vm3, %v8066_v21, %v8065_v20  ;;  %v7075_v26 = vsel %vm900_vm10, %v7070_v23, %v7072_v19  ;;  %v8071_v29 = vmul.f32 %v8066_v21, %v11914_v36  ;;  %vm12572_vm3 = vcmask 64512  }
 0x7da   : > { %v8070_v27 = vmul.f32 %v8067_v25, %v11912_v35  ;;  %7965 = vrot.lane.b32.xlu1 %v7958_v45, %s12542_s21  ;;  %10077 = vmatpush1.msk.msra.mxu0 %vm3655_vm11, %v7075_v26  ;;  %v7186_v22 = vpop.permute.xlu1 %7185  ;;  %v8174_v20 = vrot.slane %v10124_v4, %v11304_v1  ;;  %v8177_v21 = vrot.slane %v11912_v35, 4  ;;  %v8178_v23 = vrot.slane %v11914_v36, 4  ;;  %v10115_v25 = vld [vmem:[%s12444_s10 + $0xb] sm:$0x1] }
 0x7db   : > { %10078 = vmatmul.mubr.msk.f32.vlgmr.msra.gmra.mrb[2].mxu0 %vm3744_vm1, %v10075_v24 }
 0x7dc   : > { %v8076_v32 = vcombine.high %v8070_v27, %v8070_v27  ;;  %v7184_v33 = vpop.permute.xlu0 %7183  ;;  %7260 = vmatprep.mubr.f32.mxu0 %v10495_v8 }
 0x7dd   : > { %v7188_v34 = vsel %vm996_vm12, %v7184_v33, %v7186_v22 }
 0x7de   : > { %8081 = vrot.lane.b32.xlu1 %v8071_v29, %s12544_s22  ;;  %8079 = vrot.lane.b32.xlu0 %v8076_v32, %s12544_s22  ;;  %v7296_v37 = vpop.permute.xlu1 %7295 }
 0x7df   : > { %10081 = vmatprep.subr.msk.mxu0 %vm3655_vm11, %v7188_v34 }
 0x7e0   : > { %v7182_v38 = vpop.permute.xlu0 %7181 }
 0x7e1   : > { %v7187_v61 = vsel %vm996_vm12, %v7182_v38, %v7184_v33  ;;  %v10129_v33 = vld [vmem:[%s12435_s1 + $0x1c] sm:$0x3]  ;;  %v10120_v38 = vld [vmem:[%s12444_s10 + $0xc] sm:$0x1] }
 0x7e2   : > { %8278 = vrot.lane.b32.xlu1 %v11912_v35, %s12519_s16  ;;  %8077 = vrot.lane.b32.xlu0 %v8070_v27, %s12544_s22  ;;  %v7294_v31 = vpop.permute.xlu1 %7293  ;;  %v8181_v27 = vcombine.low %v8170_v49, %v8174_v20 }
 0x7e3   : > { %10082 = vmatpush1.msk.msra.mxu0 %vm3655_vm11, %v7187_v61  ;;  %v7299_v42 = vsel %vm872_vm9, %v7294_v31, %v7296_v37  ;;  %v8273_v31 = vrot.slane %v10129_v33, %v10770_v46 }
 0x7e4   : > { %10083 = vmatmul.mubr.msk.f32.vlgmr.msra.gmra.mrb[2].mxu0 %vm3744_vm1, %v10080_v15  ;;  %v7298_v39 = vpop.permute.xlu0 %7297 }
 0x7e5   : > { %v7300_v40 = vsel %vm872_vm9, %v7296_v37, %v7298_v39  ;;  %7372 = vmatprep.mubr.f32.mxu0 %v10495_v8  ;;  %v8277_v39 = vrot.slane %v10129_v33, %v11304_v1 }
 0x7e6   : > { %8384 = vrot.lane.b32.xlu1 %v11912_v35, %s12537_s4  ;;  %8280 = vrot.lane.b32.xlu0 %v11914_v36, %s12519_s16  ;;  %v7410_v41 = vpop.permute.xlu1 %7409  ;;  %s462_s16 = sand.u32 1, %s10484_s20  }
 0x7e7   : > { %10086 = vmatprep.subr.msk.mxu0 %vm3655_vm11, %v7300_v40  ;;  %v10134_v40 = vld [vmem:[%s12435_s1 + $0x1e] sm:$0x3] }
 0x7e8   : > { %10087 = vmatpush1.msk.msra.mxu0 %vm3655_vm11, %v7299_v42  ;;  %v7408_v43 = vpop.permute.xlu0 %7407 }
 0x7e9   : > { %v7412_v11 = vsel %vm748_vm7, %v7408_v43, %v7410_v41 }
 0x7ea   : > { %8490 = vrot.lane.b32.xlu1 %v11912_v35, %s12536_s2  ;;  %8386 = vrot.lane.b32.xlu0 %v11914_v36, %s12537_s4  ;;  %v7520_v48 = vpop.permute.xlu1 %7519 }
 0x7eb   : > { %10091 = vmatprep.subr.msk.mxu0 %vm3655_vm11, %v7412_v11  ;;  %v8383_v11 = vrot.slane %v10134_v40, %v11304_v1 }
 0x7ec   : > { %10088 = vmatmul.mubr.msk.f32.vlgmr.msra.gmra.mrb[2].mxu0 %vm3744_vm1, %v10085_v47  ;;  %v7406_v50 = vpop.permute.xlu0 %7405 }
 0x7ed   : > { %v7411_v51 = vsel %vm748_vm7, %v7406_v50, %v7408_v43  ;;  %7484 = vmatprep.mubr.f32.mxu0 %v10495_v8  ;;  %v8379_v43 = vrot.slane %v10134_v40, %v10770_v46  ;;  %v10154_v40 = vld [vmem:[%s12435_s1 + $0x26] sm:$0x3] }
 0x7ee   : > { %8596 = vrot.lane.b32.xlu1 %v11912_v35, %s12535_s17  ;;  %8492 = vrot.lane.b32.xlu0 %v11914_v36, %s12536_s2  ;;  %v7518_v30 = vpop.permute.xlu1 %7517  ;;  %s10199_s2 = sshll.u32 %s10621_s12, 5  ;;  %s10515_s12 = smov [#allocation6]  }
 0x7ef   : > { %10092 = vmatpush1.msk.msra.mxu0 %vm3655_vm11, %v7411_v51  ;;  %v7523_v54 = vsel %vm624_vm5, %v7518_v30, %v7520_v48  ;;  %v10139_v51 = vld [vmem:[%s12435_s1 + $0x20] sm:$0x3] }
 0x7f0   : > { %v7522_v44 = vpop.permute.xlu0 %7521 }
 0x7f1   : > { %v7524_v52 = vsel %vm624_vm5, %v7520_v48, %v7522_v44  ;;  %v8287_v48 = vcombine.low %v8273_v31, %v8277_v39 }
 0x7f2   : > { %8702 = vrot.lane.b32.xlu1 %v11912_v35, %s12533_s25  ;;  %8598 = vrot.lane.b32.xlu0 %v11914_v36, %s12535_s17  ;;  %v7634_v56 = vpop.permute.xlu1 %7633  ;;  %s9793_s17 = sshll.u32 %s462_s16, 1 }
 0x7f3   : > { %10096 = vmatprep.subr.msk.mxu0 %vm3655_vm11, %v7524_v52  ;;  %v8393_v52 = vcombine.low %v8379_v43, %v8383_v11  ;;  %v8803_v11 = vrot.slane %v10154_v40, %v10770_v46 }
 0x7f4   : > { %10093 = vmatmul.mubr.msk.f32.vlgmr.msra.gmra.mrb[2].mxu0 %vm3744_vm1, %v10090_v53  ;;  %v7632_v57 = vpop.permute.xlu0 %7631 }
 0x7f5   : > { %10097 = vmatpush1.msk.msra.mxu0 %vm3655_vm11, %v7523_v54  ;;  %v7636_v58 = vsel %vm12570_vm2, %v7632_v57, %v7634_v56  ;;  %7596 = vmatprep.mubr.f32.mxu0 %v10495_v8  ;;  %vm12573_vm2 = vmmov %vm12572_vm3  ;;  %v10125_v56 = vld [vmem:[%s12444_s10 + $0xd] sm:$0x1] }
 0x7f6   : > { %8808 = vrot.lane.b32.xlu1 %v11912_v35, %s12530_s30  ;;  %8704 = vrot.lane.b32.xlu0 %v11914_v36, %s12533_s25  ;;  %s464_s25 = scalar_lea.vmem [#allocation6], %s9793_s17 }
 0x7f7   : > { %10101 = vmatprep.subr.msk.mxu0 %vm3655_vm11, %v7636_v58  ;;  %s9730_s27 = sshll.u32 %s464_s25, 4  ;;  %s12392_s27 = int_to_ptr.vmem [resolvable:$true] %s9730_s27 }
 0x7f8   : > { %v7630_v59 = vpop.permute.xlu0 %7629 }
 0x7f9   : > { %v7635_v63 = vsel %vm12571_vm6, %v7630_v59, %v7632_v57  ;;  %v8485_v57 = vrot.slane %v10139_v51, %v10770_v46 }
 0x7fa   : > { %8914 = vrot.lane.b32.xlu1 %v11912_v35, %s12532_s3  ;;  %8810 = vrot.lane.b32.xlu0 %v11914_v36, %s12530_s30  ;;  %s10434_s30 = sshll.u32 %s10515_s12, 4  ;;  %s10435_s30 = int_to_ptr.vmem [resolvable:$false] %s10434_s30 }
 0x7fb   : > { %p10437_p0 = scmp.lt.s32.totalorder %s12392_s27, %s10435_s30 }
 0x7fc   : > { %10098 = vmatmul.mubr.msk.f32.vlgmr.msra.gmra.mrb[2].mxu0 %vm3744_vm1, %v10095_v3 }
 0x7fd   : > { %10102 = vmatpush1.msk.msra.mxu0 %vm3655_vm11, %v7635_v63  ;;  %7708 = vmatprep.mubr.f32.mxu0 %v10495_v8  ;;  %v8489_v63 = vrot.slane %v10139_v51, %v11304_v1 }
 0x7fe   : > { %9020 = vrot.lane.b32.xlu1 %v11912_v35, %s12517_s15  ;;  %8916 = vrot.lane.b32.xlu0 %v11914_v36, %s12532_s3  ;;  %s10436_s3 = scalar_lea.vmem %s10435_s30, 64 }
 0x802   : > { %9126 = vrot.lane.b32.xlu1 %v11912_v35, %s12521_s28  ;;  %9022 = vrot.lane.b32.xlu0 %v11914_v36, %s12517_s15 }
 0x804   : > { %10103 = vmatmul.mubr.msk.f32.vlgmr.msra.gmra.mrb[2].mxu0 %vm3744_vm1, %v10100_v28 }
 0x805   : > { %7820 = vmatprep.mubr.f32.mxu0 %v10495_v8 }
 0x806   : > { %9232 = vrot.lane.b32.xlu1 %v11912_v35, %s12520_s18  ;;  %9128 = vrot.lane.b32.xlu0 %v11914_v36, %s12521_s28 }
 0x80a   : > { %9338 = vrot.lane.b32.xlu1 %v11912_v35, %s12522_s29  ;;  %9234 = vrot.lane.b32.xlu0 %v11914_v36, %s12520_s18  ;;  %s9716_s18 = scalar_lea.sflag [#allocation7], %s462_s16 }
 0x80e   : > { %9444 = vrot.lane.b32.xlu1 %v11912_v35, %s12524_s23  ;;  %9340 = vrot.lane.b32.xlu0 %v11914_v36, %s12522_s29 }
 0x812   : > { %9550 = vrot.lane.b32.xlu1 %v11912_v35, %s12523_s24  ;;  %9446 = vrot.lane.b32.xlu0 %v11914_v36, %s12524_s23  ;;  %s12599_s23 = sld [smem:[#allocation21_spill]] }
 0x816   : > { %6702 = vperm.xlu1 %10423, %v6699_v0   ;;  %9552 = vrot.lane.b32.xlu0 %v11914_v36, %s12523_s24  ;;  %s10430_s24 = scalar_lea.vmem %s12392_s27, 32 }
 0x817   : > { %p10431_p11 = scmp.ne.s32.totalorder %s12392_s27, %s10430_s24  ;;  %p10438_p1 = scmp.lt.s32.totalorder %s10436_s3, %s10430_s24 }
 0x818   : > { %s12390_s15 = scalar_lea.hbm %s12599_s23, %s10199_s2 }
 0x819   : > { %p10432_p12 = pnand %p10431_p11, %p10638_p5  ;;  %p10439_p2 = por %p10438_p1, %p10437_p0 }
 0x81b   : > { %p10433_p13 = pneg %p10432_p12 }
 0x81d   : > { %p10440_p3 = pnand %p10439_p2, %p10433_p13 }
 0x835   : > { %v7746_v5 = vpop.permute.xlu0 %7745 }
 0x838   : > { %v7744_v7 = vpop.permute.xlu1 %7743 }
 0x839   : > { %v7748_v9 = vsel %vm1635_vm8, %v7744_v7, %v7746_v5 }
 0x83a   : > { %10106 = vmatprep.subr.msk.mxu0 %vm3655_vm11, %v7748_v9  ;;  %v10144_v9 = vld [vmem:[%s12435_s1 + $0x22] sm:$0x3] }
 0x83c   : > { %v7742_v10 = vpop.permute.xlu1 %7741 }
 0x83d   : > { %v7747_v13 = vsel %vm1635_vm8, %v7742_v10, %v7744_v7  ;;  %vm12574_vm8 = vcmask 56320  }
 0x83e   : > { %10107 = vmatpush1.msk.msra.mxu0 %vm3655_vm11, %v7747_v13  ;;  %vm12575_vm6 = vmmov %vm12574_vm8  ;;  %v8499_v13 = vcombine.low %v8485_v57, %v8489_v63  ;;  %v10145_v63 = vld [vmem:[%s12444_s10 + $0x11] sm:$0x1] }
 0x83f   : > { %10108 = vmatmul.mubr.msk.f32.vlgmr.msra.gmra.mrb[2].mxu0 %vm3744_vm1, %v10105_v12 }
 0x840   : > { %v7856_v14 = vpop.permute.xlu0 %7855  ;;  %v7858_v55 = vpop.permute.xlu1 %7857  ;;  %7932 = vmatprep.mubr.f32.mxu0 %v10495_v8 }
 0x841   : > { %v7860_v60 = vsel %vm12572_vm3, %v7856_v14, %v7858_v55  ;;  %vm12576_vm3 = vcmask 1043456  }
 0x842   : > { %10111 = vmatprep.subr.msk.mxu0 %vm3655_vm11, %v7860_v60  ;;  %v8179_v22 = vsel %vm12576_vm3, %v8177_v21, %v8178_v23 }
 0x843   : > { %v8183_v36 = vmul.f32 %v8181_v27, %v8179_v22  ;;  %v10149_v27 = vld [vmem:[%s12435_s1 + $0x24] sm:$0x3] }
 0x844   : > { %v7854_v2 = vpop.permute.xlu0 %7853  ;;  %v8701_v33 = vrot.slane %v10149_v27, %v11304_v1 }
 0x845   : > { %v7859_v45 = vsel %vm12573_vm2, %v7854_v2, %v7856_v14  ;;  %vm12577_vm2 = vcmask 7168   ;;  %v8187_v15 = vcombine.high %v8183_v36, %v8183_v36 }
 0x846   : > { %10112 = vmatpush1.msk.msra.mxu0 %vm3655_vm11, %v7859_v45  ;;  %v8595_v45 = vrot.slane %v10144_v9, %v11304_v1 }
 0x847   : > { %10113 = vmatmul.mubr.msk.f32.vlgmr.msra.gmra.mrb[2].mxu0 %vm3744_vm1, %v10110_v17  ;;  %v8591_v17 = vrot.slane %v10144_v9, %v10770_v46 }
 0x848   : > { %v7970_v62 = vpop.permute.xlu0 %7969  ;;  %v7968_v18 = vpop.permute.xlu1 %7967  ;;  %8044 = vmatprep.mubr.f32.mxu0 %v10495_v8 }
 0x849   : > { %v7972_v19 = vsel %vm12574_vm8, %v7968_v18, %v7970_v62  ;;  %vm12578_vm8 = vmmov %vm12577_vm2  ;;  %v8605_v23 = vcombine.low %v8591_v17, %v8595_v45  ;;  %v10150_v17 = vld [vmem:[%s12444_s10 + $0x12] sm:$0x1] }
 0x84a   : > { %10116 = vmatprep.subr.msk.mxu0 %vm3655_vm11, %v7972_v19 }
 0x84c   : > { %v7966_v24 = vpop.permute.xlu1 %7965 }
 0x84d   : > { %v7971_v26 = vsel %vm12575_vm6, %v7966_v24, %v7968_v18  ;;  %vm12579_vm6 = vmmov %vm12576_vm3  ;;  %vm12580_vm3 = vcmask 1039360   ;;  %v10130_v18 = vld [vmem:[%s12444_s10 + $0xe] sm:$0x1] }
 0x84e   : > { %10117 = vmatpush1.msk.msra.mxu0 %vm3655_vm11, %v7971_v26 }
 0x84f   : > { %10118 = vmatmul.mubr.msk.f32.vlgmr.msra.gmra.mrb[2].mxu0 %vm3744_vm1, %v10115_v25 }
 0x850   : > { %v8080_v29 = vpop.permute.xlu0 %8079  ;;  %v8082_v32 = vpop.permute.xlu1 %8081  ;;  %8156 = vmatprep.mubr.f32.mxu0 %v10495_v8 }
 0x851   : > { %v8084_v35 = vsel %vm12577_vm2, %v8080_v29, %v8082_v32  ;;  %vm12581_vm2 = vmmov %vm12579_vm6 }
 0x852   : > { %10121 = vmatprep.subr.msk.mxu0 %vm3655_vm11, %v8084_v35 }
 0x854   : > { %v8078_v34 = vpop.permute.xlu0 %8077  ;;  %v8279_v37 = vpop.permute.xlu1 %8278 }
 0x855   : > { %v8083_v61 = vsel %vm12578_vm8, %v8078_v34, %v8080_v29  ;;  %v8282_v47 = vrot.slane %v8279_v37, 4  ;;  %vm12582_vm8 = vcmask 990208   ;;  %v10135_v34 = vld [vmem:[%s12444_s10 + $0xf] sm:$0x1] }
 0x856   : > { %10122 = vmatpush1.msk.msra.mxu0 %vm3655_vm11, %v8083_v61 }
 0x857   : > { %10123 = vmatmul.mubr.msk.f32.vlgmr.msra.gmra.mrb[2].mxu0 %vm3744_vm1, %v10120_v38  ;;  %10126 = vmatprep.subr.msk.mxu0 %vm3655_vm11, %v8187_v15 }
 0x858   : > { %v8281_v41 = vpop.permute.xlu0 %8280  ;;  %10127 = vmatpush1.msk.msra.mxu0 %vm3655_vm11, %v8183_v36  ;;  %v8385_v42 = vpop.permute.xlu1 %8384  ;;  %8259 = vmatprep.mubr.f32.mxu0 %v10495_v8  ;;  %v8697_v36 = vrot.slane %v10149_v27, %v10770_v46  ;;  %v10155_v27 = vld [vmem:[%s12444_s10 + $0x13] sm:$0x1] }
 0x859   : > { %v8283_v50 = vrot.slane %v8281_v41, 4  ;;  %v8388_v59 = vrot.slane %v8385_v42, 4 }
 0x85a   : > { %v8711_v15 = vcombine.low %v8697_v36, %v8701_v33 }
 0x85b   : > { %v8284_v30 = vsel %vm12579_vm6, %v8282_v47, %v8283_v50  ;;  %vm12583_vm6 = vmmov %vm12581_vm2  ;;  %v8807_v47 = vrot.slane %v10154_v40, %v11304_v1 }
 0x85c   : > { %v8285_v44 = vsel %vm12580_vm3, %v8284_v30, %v8281_v41  ;;  %v8387_v53 = vpop.permute.xlu0 %8386  ;;  %v8491_v54 = vpop.permute.xlu1 %8490  ;;  %vm12584_vm3 = vcmask 982016  }
 0x85d   : > { %v8289_v58 = vmul.f32 %v8287_v48, %v8285_v44  ;;  %v8389_v3 = vrot.slane %v8387_v53, 4  ;;  %v8494_v12 = vrot.slane %v8491_v54, 4  ;;  %v10140_v48 = vld [vmem:[%s12444_s10 + $0x10] sm:$0x1]  ;;  %v8817_v44 = vcombine.low %v8803_v11, %v8807_v47  ;;  %v10159_v54 = vld [vmem:[%s12435_s1 + $0x28] sm:$0x3] }
 0x85f   : > { %v8293_v28 = vcombine.high %v8289_v58, %v8289_v58  ;;  %v8390_v0 = vsel %vm12581_vm2, %v8388_v59, %v8389_v3  ;;  %10128 = vmatmul.mubr.msk.f32.vlgmr.msra.gmra.mrb[2].mxu0 %vm3744_vm1, %v10125_v56  ;;  %v8909_v59 = vrot.slane %v10159_v54, %v10770_v46  ;;  %v8913_v3 = vrot.slane %v10159_v54, %v11304_v1 }
 0x860   : > { %v8391_v5 = vsel %vm12582_vm8, %v8390_v0, %v8387_v53  ;;  %v8493_v7 = vpop.permute.xlu0 %8492  ;;  %8365 = vmatprep.mubr.f32.mxu0 %v10495_v8  ;;  %v8597_v55 = vpop.permute.xlu1 %8596  ;;  %vm12594_vm8 = vcmask 449536  }
 0x861   : > { %v8395_v10 = vmul.f32 %v8393_v52, %v8391_v5  ;;  %v8495_v14 = vrot.slane %v8493_v7, 4  ;;  %10131 = vmatprep.subr.msk.mxu0 %vm3655_vm11, %v8293_v28  ;;  %v8600_v49 = vrot.slane %v8597_v55, 4 }
 0x862   : > { %10132 = vmatpush1.msk.msra.mxu0 %vm3655_vm11, %v8289_v58 }
 0x863   : > { %v8399_v60 = vcombine.high %v8395_v10, %v8395_v10  ;;  %v8496_v2 = vsel %vm12583_vm6, %v8494_v12, %v8495_v14  ;;  %v10164_v12 = vld [vmem:[%s12435_s1 + $0x2a] sm:$0x3]  ;;  %vm12595_vm6 = vcmask 1040384  }
 0x864   : > { %v8497_v4 = vsel %vm12584_vm3, %v8496_v2, %v8493_v7  ;;  %v8599_v62 = vpop.permute.xlu0 %8598  ;;  %v8703_v26 = vpop.permute.xlu1 %8702  ;;  %v8923_v7 = vcombine.low %v8909_v59, %v8913_v3  ;;  %v9019_v2 = vrot.slane %v10164_v12, %v11304_v1  ;;  %vm12596_vm3 = vmmov %vm12595_vm6 }
 0x865   : > { %v8501_v19 = vmul.f32 %v8499_v13, %v8497_v4  ;;  %v8601_v20 = vrot.slane %v8599_v62, 4  ;;  %10136 = vmatprep.subr.msk.mxu0 %vm3655_vm11, %v8399_v60  ;;  %v8706_v35 = vrot.slane %v8703_v26, 4  ;;  %v9015_v60 = vrot.slane %v10164_v12, %v10770_v46 }
 0x867   : > { %v8505_v21 = vcombine.high %v8501_v19, %v8501_v19  ;;  %v8602_v24 = vsel %vm12581_vm2, %v8600_v49, %v8601_v20  ;;  %10133 = vmatmul.mubr.msk.f32.vlgmr.msra.gmra.mrb[2].mxu0 %vm3744_vm1, %v10130_v18  ;;  %v9029_v18 = vcombine.low %v9015_v60, %v9019_v2  ;;  %v10169_v20 = vld [vmem:[%s12435_s1 + $0x2c] sm:$0x3] }
 0x868   : > { %v8603_v25 = vsel %vm1607_vm13, %v8602_v24, %v8599_v62  ;;  %10137 = vmatpush1.msk.msra.mxu0 %vm3655_vm11, %v8395_v10  ;;  %v8705_v22 = vpop.permute.xlu0 %8704  ;;  %8471 = vmatprep.mubr.f32.mxu0 %v10495_v8  ;;  %vm12585_vm13 = vmmov %vm12581_vm2  ;;  %v8809_v39 = vpop.permute.xlu1 %8808  ;;  %v9125_v26 = vrot.slane %v10169_v20, %v11304_v1 }
 0x869   : > { %v8707_v29 = vrot.slane %v8705_v22, 4  ;;  %10141 = vmatprep.subr.msk.mxu0 %vm3655_vm11, %v8505_v21  ;;  %v8607_v32 = vmul.f32 %v8605_v23, %v8603_v25  ;;  %v8812_v43 = vrot.slane %v8809_v39, 4  ;;  %v9121_v25 = vrot.slane %v10169_v20, %v10770_v46  ;;  %v10160_v39 = vld [vmem:[%s12444_s10 + $0x14] sm:$0x1] }
 0x86b   : > { %v8708_v37 = vsel %vm12585_vm13, %v8706_v35, %v8707_v29  ;;  %v8611_v61 = vcombine.high %v8607_v32, %v8607_v32  ;;  %v9135_v35 = vcombine.low %v9121_v25, %v9125_v26 }
 0x86c   : > { %v8811_v38 = vpop.permute.xlu0 %8810  ;;  %v8709_v31 = vsel %vm526_vm15, %v8708_v37, %v8705_v22  ;;  %vm12586_vm15 = vmmov %vm12581_vm2  ;;  %v8915_v53 = vpop.permute.xlu1 %8914 }
 0x86d   : > { %v8813_v41 = vrot.slane %v8811_v38, 4  ;;  %v8713_v42 = vmul.f32 %v8711_v15, %v8709_v31  ;;  %v8918_v58 = vrot.slane %v8915_v53, 4  ;;  %v10165_v53 = vld [vmem:[%s12444_s10 + $0x15] sm:$0x1] }
 0x86f   : > { %10138 = vmatmul.mubr.msk.f32.vlgmr.msra.gmra.mrb[2].mxu0 %vm3744_vm1, %v10135_v34  ;;  %v8814_v50 = vsel %vm12586_vm15, %v8812_v43, %v8813_v41  ;;  %v8717_v30 = vcombine.high %v8713_v42, %v8713_v42  ;;  %v10174_v34 = vld [vmem:[%s12435_s1 + $0x2e] sm:$0x3] }
 0x870   : > { %10142 = vmatpush1.msk.msra.mxu0 %vm3655_vm11, %v8501_v19  ;;  %8577 = vmatprep.mubr.f32.mxu0 %v10495_v8  ;;  %v8917_v51 = vpop.permute.xlu0 %8916  ;;  %v8815_v52 = vsel %vm652_vm14, %v8814_v50, %v8811_v38  ;;  %vm12587_vm14 = vmmov %vm12581_vm2  ;;  %v9021_v10 = vpop.permute.xlu1 %9020  ;;  %v9227_v15 = vrot.slane %v10174_v34, %v10770_v46  ;;  %v9231_v31 = vrot.slane %v10174_v34, %v11304_v1 }
 0x871   : > { %10146 = vmatprep.subr.msk.mxu0 %vm3655_vm11, %v8611_v61  ;;  %v8919_v56 = vrot.slane %v8917_v51, 4  ;;  %v8819_v57 = vmul.f32 %v8817_v44, %v8815_v52  ;;  %v9024_v55 = vrot.slane %v9021_v10, 4  ;;  %v10170_v10 = vld [vmem:[%s12444_s10 + $0x16] sm:$0x1] }
 0x872   : > { %v9241_v43 = vcombine.low %v9227_v15, %v9231_v31 }
 0x873   : > { %v8920_v28 = vsel %vm12587_vm14, %v8918_v58, %v8919_v56  ;;  %v8823_v5 = vcombine.high %v8819_v57, %v8819_v57 }
 0x874   : > { %v9023_v0 = vpop.permute.xlu0 %9022  ;;  %v8921_v9 = vsel %vm776_vm4, %v8920_v28, %v8917_v51  ;;  %vm12588_vm4 = vmmov %vm12581_vm2  ;;  %v9127_v49 = vpop.permute.xlu1 %9126 }
 0x875   : > { %v9025_v13 = vrot.slane %v9023_v0, 4  ;;  %v8925_v14 = vmul.f32 %v8923_v7, %v8921_v9  ;;  %v9130_v24 = vrot.slane %v9127_v49, 4  ;;  %v10175_v49 = vld [vmem:[%s12444_s10 + $0x17] sm:$0x1] }
 0x877   : > { %10143 = vmatmul.mubr.msk.f32.vlgmr.msra.gmra.mrb[2].mxu0 %vm3744_vm1, %v10140_v48  ;;  %v9026_v45 = vsel %vm12588_vm4, %v9024_v55, %v9025_v13  ;;  %v8929_v62 = vcombine.high %v8925_v14, %v8925_v14  ;;  %v10179_v48 = vld [vmem:[%s12435_s1 + $0x30] sm:$0x3] }
 0x878   : > { %10147 = vmatpush1.msk.msra.mxu0 %vm3655_vm11, %v8607_v32  ;;  %8683 = vmatprep.mubr.f32.mxu0 %v10495_v8  ;;  %v9129_v4 = vpop.permute.xlu0 %9128  ;;  %v9027_v19 = vsel %vm900_vm10, %v9026_v45, %v9023_v0  ;;  %vm12589_vm10 = vmmov %vm12581_vm2  ;;  %v9233_v33 = vpop.permute.xlu1 %9232  ;;  %v9333_v44 = vrot.slane %v10179_v48, %v10770_v46  ;;  %v9337_v52 = vrot.slane %v10179_v48, %v11304_v1  ;;  %v9678_v48 = vld [vmem:[#allocation5] sm:$0x1] }
 0x879   : > { %10151 = vmatprep.subr.msk.mxu0 %vm3655_vm11, %v8717_v30  ;;  %v9131_v21 = vrot.slane %v9129_v4, 4  ;;  %v9031_v23 = vmul.f32 %v9029_v18, %v9027_v19  ;;  %v9236_v61 = vrot.slane %v9233_v33, 4 }
 0x87a   : > { %v9347_v58 = vcombine.low %v9333_v44, %v9337_v52 }
 0x87b   : > { %v9132_v22 = vsel %vm12589_vm10, %v9130_v24, %v9131_v21  ;;  %v9035_v32 = vcombine.high %v9031_v23, %v9031_v23 }
 0x87c   : > { %v9235_v29 = vpop.permute.xlu0 %9234  ;;  %v9133_v36 = vsel %vm996_vm12, %v9132_v22, %v9129_v4  ;;  %vm12590_vm12 = vmmov %vm12581_vm2  ;;  %v9339_v47 = vpop.permute.xlu1 %9338  ;;  %v10190_v22 = vld [vmem:[%s12444_s10 + $0x1a] sm:$0x1] }
 0x87d   : > { %v9237_v37 = vrot.slane %v9235_v29, 4  ;;  %v9137_v38 = vmul.f32 %v9135_v35, %v9133_v36  ;;  %v9342_v30 = vrot.slane %v9339_v47, 4 }
 0x87f   : > { %10148 = vmatmul.mubr.msk.f32.vlgmr.msra.gmra.mrb[2].mxu0 %vm3744_vm1, %v10145_v63  ;;  %v9238_v40 = vsel %vm12590_vm12, %v9236_v61, %v9237_v37  ;;  %v10184_v63 = vld [vmem:[%s12435_s1 + $0x32] sm:$0x3] }
 0x880   : > { %10152 = vmatpush1.msk.msra.mxu0 %vm3655_vm11, %v8713_v42  ;;  %8789 = vmatprep.mubr.f32.mxu0 %v10495_v8  ;;  %v9341_v41 = vpop.permute.xlu0 %9340  ;;  %v9141_v42 = vcombine.high %v9137_v38, %v9137_v38  ;;  %v9239_v11 = vsel %vm872_vm9, %v9238_v40, %v9235_v29  ;;  %vm12591_vm9 = vmmov %vm12581_vm2  ;;  %v9445_v3 = vpop.permute.xlu1 %9444  ;;  %v9439_v7 = vrot.slane %v10184_v63, %v10770_v46 }
 0x881   : > { %10156 = vmatprep.subr.msk.mxu0 %vm3655_vm11, %v8823_v5  ;;  %v9343_v50 = vrot.slane %v9341_v41, 4  ;;  %v9243_v51 = vmul.f32 %v9241_v43, %v9239_v11  ;;  %v9448_v5 = vrot.slane %v9445_v3, 4  ;;  %v9443_v9 = vrot.slane %v10184_v63, %v11304_v1 }
 0x883   : > { %v9344_v54 = vsel %vm12591_vm9, %v9342_v30, %v9343_v50  ;;  %v9453_v55 = vcombine.low %v9439_v7, %v9443_v9 }
 0x884   : > { %v9447_v56 = vpop.permute.xlu0 %9446  ;;  %v9345_v59 = vsel %vm748_vm7, %v9344_v54, %v9341_v41  ;;  %vm12592_vm7 = vmmov %vm12581_vm2  ;;  %v9551_v2 = vpop.permute.xlu1 %9550  ;;  %v10514_v54 = vmov 1966171168  }
 0x885   : > { %v9449_v28 = vrot.slane %v9447_v56, 4  ;;  %v9349_v0 = vmul.f32 %v9347_v58, %v9345_v59 }
 0x887   : > { %10153 = vmatmul.mubr.msk.f32.vlgmr.msra.gmra.mrb[2].mxu0 %vm3744_vm1, %v10150_v17  ;;  %v9450_v12 = vsel %vm12592_vm7, %v9448_v5, %v9449_v28  ;;  %v10189_v17 = vld [vmem:[%s12435_s1 + $0x34] sm:$0x3] }
 0x888   : > { %10157 = vmatpush1.msk.msra.mxu0 %vm3655_vm11, %v8819_v57  ;;  %8895 = vmatprep.mubr.f32.mxu0 %v10495_v8  ;;  %v9247_v57 = vcombine.high %v9243_v51, %v9243_v51  ;;  %v9553_v13 = vpop.permute.xlu0 %9552  ;;  %v9451_v60 = vsel %vm624_vm5, %v9450_v12, %v9447_v56  ;;  %v9545_v18 = vrot.slane %v10189_v17, %v10770_v46  ;;  %vm12593_vm5 = vmmov %vm12581_vm2  ;;  %v9700_v56 = vunpack.c.l.s4 %v10514_v54 }
 0x889   : > { %10161 = vmatprep.subr.msk.mxu0 %vm3655_vm11, %v8929_v62  ;;  %v9555_v45 = vrot.slane %v9553_v13, 4  ;;  %v9455_v4 = vmul.f32 %v9453_v55, %v9451_v60  ;;  %v9554_v62 = vrot.slane %v9551_v2, 4  ;;  %v9549_v19 = vrot.slane %v10189_v17, %v11304_v1  ;;  %v10180_v1 = vld [vmem:[%s12444_s10 + $0x18] sm:$0x1] }
 0x88b   : > { %v9556_v20 = vsel %vm12593_vm5, %v9554_v62, %v9555_v45  ;;  %v9459_v21 = vcombine.high %v9455_v4, %v9455_v4 }
 0x88c   : > { %v9557_v24 = vsel %vm12594_vm8, %v9556_v20, %v9553_v13 }
 0x88f   : > { %10158 = vmatmul.mubr.msk.f32.vlgmr.msra.gmra.mrb[2].mxu0 %vm3744_vm1, %v10155_v27  ;;  %v10185_v27 = vld [vmem:[%s12444_s10 + $0x19] sm:$0x1] }
 0x890   : > { %10162 = vmatpush1.msk.msra.mxu0 %vm3655_vm11, %v8925_v14  ;;  %9001 = vmatprep.mubr.f32.mxu0 %v10495_v8  ;;  %v9353_v14 = vcombine.high %v9349_v0, %v9349_v0 }
 0x891   : > { %10166 = vmatprep.subr.msk.mxu0 %vm3655_vm11, %v9035_v32 }
 0x895   : > { %v6703_v29 = vpop.permute.xlu1 %6702 }
 0x896   : > { %v6708_v32 = vrot.slane %v6703_v29, %v10770_v46 }
 0x897   : > { %10163 = vmatmul.mubr.msk.f32.vlgmr.msra.gmra.mrb[2].mxu0 %vm3744_vm1, %v10160_v39 }
 0x898   : > { %10167 = vmatpush1.msk.msra.mxu0 %vm3655_vm11, %v9031_v23  ;;  %9107 = vmatprep.mubr.f32.mxu0 %v10495_v8  ;;  %v9559_v23 = vcombine.low %v9545_v18, %v9549_v19 }
 0x899   : > { %10171 = vmatprep.subr.msk.mxu0 %vm3655_vm11, %v9141_v42 }
 0x89a   : > { %v9561_v25 = vmul.f32 %v9559_v23, %v9557_v24 }
 0x89c   : > { %v9565_v26 = vcombine.high %v9561_v25, %v9561_v25 }
 0x89f   : > { %10168 = vmatmul.mubr.msk.f32.vlgmr.msra.gmra.mrb[2].mxu0 %vm3744_vm1, %v10165_v53 }
 0x8a0   : > { %10172 = vmatpush1.msk.msra.mxu0 %vm3655_vm11, %v9137_v38  ;;  %9213 = vmatprep.mubr.f32.mxu0 %v10495_v8 }
 0x8a1   : > { %10176 = vmatprep.subr.msk.mxu0 %vm3655_vm11, %v9247_v57 }
 0x8a7   : > { %10173 = vmatmul.mubr.msk.f32.vlgmr.msra.gmra.mrb[2].mxu0 %vm3744_vm1, %v10170_v10 }
 0x8a8   : > { %10177 = vmatpush1.msk.msra.mxu0 %vm3655_vm11, %v9243_v51  ;;  %9319 = vmatprep.mubr.f32.mxu0 %v10495_v8 }
 0x8a9   : > { %10181 = vmatprep.subr.msk.mxu0 %vm3655_vm11, %v9353_v14 }
 0x8af   : > { %10178 = vmatmul.mubr.msk.f32.vlgmr.msra.gmra.mrb[2].mxu0 %vm3744_vm1, %v10175_v49 }
 0x8b0   : > { %10182 = vmatpush1.msk.msra.mxu0 %vm3655_vm11, %v9349_v0  ;;  %9425 = vmatprep.mubr.f32.mxu0 %v10495_v8  ;;  %v9701_v0 = vunpack.c.0.s8 %v9700_v56 }
 0x8b1   : > { %10186 = vmatprep.subr.msk.mxu0 %vm3655_vm11, %v9459_v21 }
 0x8b2   : > { %v9704_v12 = vsub.s32 %v9701_v0, %v10648_v6 }
 0x8b7   : > { %10183 = vmatmul.mubr.msk.f32.vlgmr.msra.gmra.mrb[2].mxu0 %vm3744_vm1, %v10180_v1 }
 0x8b8   : > { %10187 = vmatpush1.msk.msra.mxu0 %vm3655_vm11, %v9455_v4  ;;  %9531 = vmatprep.mubr.f32.mxu0 %v10495_v8 }
 0x8b9   : > { %10191 = vmatprep.subr.msk.mxu0 %vm3655_vm11, %v9565_v26 }
 0x8bf   : > { %10188 = vmatmul.mubr.msk.f32.vlgmr.msra.gmra.mrb[2].mxu0 %vm3744_vm1, %v10185_v27 }
 0x8c0   : > { %10192 = vmatpush1.msk.msra.mxu0 %vm3655_vm11, %v9561_v25  ;;  %9637 = vmatprep.mubr.f32.mxu0 %v10495_v8  ;;  %v9666_v8 = vld [vmem:[#allocation4] sm:$0x1]  ;;  %vm12597_vm11 = vmmov %vm12596_vm3 }
 0x8c7   : > { %10193 = vmatmul.mubr.msk.f32.vlgmr.msra.gmra.mrb[2].mxu0 %vm3744_vm1, %v10190_v22  ;;  %vm12598_vm1 = vmmov %vm12596_vm3 }
 0x99a   : > { %v9639_v35 = vpop.f32.mrb[2].mxu0 }
 0x99b   : > { %v10206_v36 = vadd.f32 %v9639_v35, %v6708_v32  ;;  %v9641_v33 = vpop.f32.mrb[3].mxu0 }
 0x99c   : > { %v10207_v34 = vadd.f32 %v9641_v33, %v6708_v32 }
 0x99d   : > { %v9646_v37 = vsel %vm12595_vm6, %v10206_v36, 0.0 }
 0x99e   : > { %v9647_v38 = vsel %vm12596_vm3, %v10207_v34, 0.0 }
 0x99f   : > { %v9648_v61 = vadd.f32 %v9647_v38, %v9646_v37 }
 0x9a1   : > { %9649 = vadd.xlane.f32.xlu0 %v9648_v61 }
 0x9b7   : > { %9669 = vperm.xlu0 %10422, %v9666_v8  }
 0xa2e   : > { %v9650_v15 = vpop.xlane.xlu0 %9649 }
 0xa2f   : > { %v9651_v31 = vmul.f32 0.00390625, %v9650_v15 }
 0xa31   : > { %v9652_v39 = vsub.f32 %v10206_v36, %v9651_v31  ;;  %v9653_v40 = vsub.f32 %v10207_v34, %v9651_v31 }
 0xa33   : > { %v9654_v41 = vmul.f32 %v9652_v39, %v9652_v39  ;;  %v9655_v42 = vmul.f32 %v9653_v40, %v9653_v40 }
 0xa35   : > { %v9656_v43 = vsel %vm12597_vm11, %v9654_v41, 0.0  ;;  %v9657_v11 = vsel %vm12598_vm1, %v9655_v42, 0.0 }
 0xa36   : > { %v9658_v47 = vadd.f32 %v9657_v11, %v9656_v43  ;;  %v9670_v44 = vpop.permute.xlu0 %9669 }
 0xa37   : > { %v9675_v57 = vrot.slane %v9670_v44, %v10770_v46 }
 0xa38   : > { %9659 = vadd.xlane.f32.xlu1 %v9658_v47 }
 0xa49   : > { %9681 = vperm.xlu1 %10423, %v9678_v48  }
 0xac5   : > { %v9660_v50 = vpop.xlane.xlu1 %9659 }
 0xac6   : > { %v9661_v51 = vmul.f32 0.00390625, %v9660_v50 }
 0xac8   : > { %v9662_v30 = vadd.f32 1e-05, %v9661_v51 }
 0xac9   : > { %v9682_v53 = vpop.permute.xlu1 %9681 }
 0xaca   : > { %10428 = vrsqrt.f32 %v9662_v30  ;;  %v9687_v28 = vrot.slane %v9682_v53, %v10770_v46 }
 0xad4   : > { %v10429_v52 = vpop.eup %10428 }
 0xad5   : > { %v9664_v58 = vmul.f32 %v10429_v52, %v9652_v39  ;;  %v9665_v59 = vmul.f32 %v10429_v52, %v9653_v40 }
 0xad7   : > { %v9676_v3 = vmul.f32 %v9675_v57, %v9664_v58  ;;  %v9677_v63 = vmul.f32 %v9675_v57, %v9665_v59 }
 0xad9   : > { %v9688_v5 = vadd.f32 %v9687_v28, %v9676_v3  ;;  %v9689_v7 = vadd.f32 %v9687_v28, %v9677_v63 }
 0xadb   : > { %vm9690_vm2 = vcmp.ge.f32.partialorder %v9688_v5, 0.0  ;;  %vm9691_vm13 = vcmp.ge.f32.partialorder %v9689_v7, 0.0  ;;  %v9692_v9 = vmul.f32 0.01, %v9688_v5  ;;  %v9693_v10 = vmul.f32 0.01, %v9689_v7 }
 0xadd   : > { %v9694_v13 = vsel %vm9690_vm2, %v9688_v5, %v9692_v9  ;;  %v9695_v14 = vsel %vm9691_vm13, %v9689_v7, %v9693_v10 }
 0xade   : > { %v9698_v55 = vcombine.low %v9694_v13, %v9695_v14 }
 0xae0   : > { %v9705_v60 = vrot.slane %v9698_v55, %v9704_v12 }
 0xae2   : > { %v9712_v2 = vrot.slane %v9705_v60, %v9704_v12 }
 0xae4   : > { %9714 = vst.msk [vmem:[%s464_s25] sm:$0x3] %vm10673_vm0, %v9712_v2 }
 0xae5   : > { %10443 = shalt.err (!%p10440_p3)
}
 0xae6   : > { %s10444_s13 = scalar_lea.hbm %s12390_s15, 32  ;;  %s10448_s5 = scalar_lea.hbm %s12599_s23, 64 }
 0xae7   : > { %p10445_p4 = scmp.ne.s32.totalorder %s12390_s15, %s10444_s13  ;;  %p10449_p9 = scmp.lt.u32.totalorder %s12390_s15, %s12599_s23 }
 0xae8   : > { %p10450_p10 = scmp.lt.u32.totalorder %s10448_s5, %s10444_s13  ;;  %p10452_p12 = scmp.lt.u32.totalorder %s10444_s13, %s12390_s15 }
 0xae9   : > { %p10446_p7 = pnand %p10445_p4, %p10638_p5 }
 0xaea   : > { %p10451_p11 = por %p10450_p10, %p10449_p9 }
 0xaeb   : > { %p10447_p8 = pneg %p10446_p7 }
 0xaec   : > { %p10453_p13 = por %p10452_p12, %p10451_p11 }
 0xaee   : > { %p10454_p0 = pnand %p10453_p13, %p10447_p8 }
 0xaf0   : > { %10457 = shalt.err (!%p10454_p0)
}
 0xaf1   : > { %10362 = dma.vmem_to_hbm [thread:$0]  (%p10638_p5), %s12392_s27, 32, %s12390_s15, %s9716_s18  }
 0xaf2 PF: > { %s12600_s19 = sld [smem:[#allocation11_spill]]  ;;  %s12601_s22 = sld [smem:[#allocation9_spill]] }
 0xaf8   : > { %p10368_p1 = scmp.ge.s32.totalorder %s12600_s19, 2  ;;  %s9742_s4 = sand.u32 1, %s12601_s22  }
 0xaf9   : > { %s9743_s16 = scalar_lea.sflag [#allocation7], %s9742_s4 }
 0xafa   : > { %p10365_p2 = pnand %p10368_p1, %p10642_p6 }
 0xafc   : > { %10475 = dma.done.wait (!%p10365_p2), %s9743_s16, 32  }
 0xafd   : > { %10477 = vsyncadd (!%p10365_p2), %s9743_s16, 4294967264  ;;  %s12603_s11 = sld [smem:[#allocation12_spill]]  ;;  %s12604_s17 = sld [smem:[#allocation10_spill]] }
 0xafe   : > { %s12605_s21 = sld [smem:[#allocation13_spill]]  ;;  %s12606_s19 = smov %s10484_s20 }
 0xb03   : > { %p30_p3 = scmp.ge.s32.totalorder %s12603_s11, 4   ;;  %s12607_s20 = smov %s12604_s17 }
 0xb05   :  { %32 = sbr.rel (!%p30_p3) target bundleno = 11 (0xb), region = 216 }
 0xb0c   :  { %9748 = vsyncpa [#allocation7], 1 }
 0xb0d   :  { %9750 = vsyncpa [#allocation7 + $0x1], 1 }

</bundles_post_ra>
